<compile_context>
chip_gen: v6e
topology: v6e:2x2x1
jax: 0.10.0
libtpu: 0.0.40
codegen_flags: <defaults>
</compile_context>

<pallas_src>
import functools

import jax
import jax.numpy as jnp
import numpy as np
from jax.experimental import pallas as pl
from jax.experimental.pallas import tpu as pltpu

_LPAD = 128  # left halo of the conv line buffer (lane-aligned, must be >= W+1)


# ------------------------------ spec helper ----------------------------------
def _const_spec(arr):
    nd = arr.ndim
    return pl.BlockSpec(arr.shape, lambda b, _nd=nd: (0,) * _nd)


# ------------------------------ fused kernel ---------------------------------
def _sfcm_kernel(thr, eps, H, W, Cfp, up, low, cpg, use_groups, block_b, rz,
                 *refs):
    if use_groups:
        (x_ref, cols_ref, ffwd_ref, cw_ref, binv_ref, wstack_ref, lmask_ref,
         mgrp_ref, o_ref, ubuf) = refs
    else:
        (x_ref, cols_ref, ffwd_ref, cw_ref, binv_ref, wstack_ref, lmask_ref,
         o_ref, ubuf) = refs
        mgrp_ref = None

    HW = H * W
    rows = ubuf.shape[0]
    uw = ubuf.shape[1]

    # Zero the halo lanes of the conv line buffer with two ALIGNED 128-lane
    # stores.  Done every grid step (cheap, amortized over block_b samples):
    # correct under megacore grid sharding (no reliance on program_id == 0)
    # and no stale-VMEM reads through the dy=+-1 boundary taps.  The per-
    # sample u store below never touches these columns again.
    ubuf[:, :_LPAD] = jnp.zeros((rows, _LPAD), jnp.float32)
    ubuf[:, rz:] = jnp.zeros((rows, uw - rz), jnp.float32)

    gscale = cols_ref[:, 0:1]            # (C,1)   gamma * nsf
    gbias = cols_ref[:, 1:2]             # (C,1)   beta  * nsf
    bg = cols_ref[:low, 2:3]             # (low,1) GWC2 bias
    cwr = cw_ref[0]                      # (Cfp, HW)
    cwi = cw_ref[1]
    mneg = lmask_ref[0:1]                # (1,HW) 0/1 mask for dx = -1 taps
    mpos = lmask_ref[1:2]                # (1,HW) 0/1 mask for dx = +1 taps
    inv_hw = 1.0 / float(HW)
    n = float(HW * cpg)

    for bi in range(block_b):            # unrolled: block_b samples per step
        x = x_ref[bi]                    # (C, HW)

        # -------- SFRM: GroupBatchnorm2d + logit-threshold gate -------------
        s1 = jnp.sum(x, axis=1, keepdims=True)                 # (C,1)
        if use_groups:
            mean_c = jnp.dot(mgrp_ref[...], s1,
                             preferred_element_type=jnp.float32) * (1.0 / n)
        else:                                                  # 1 chan / group
            mean_c = s1 * (1.0 / n)
        d = x - mean_c
        ss = jnp.sum(d * d, axis=1, keepdims=True)             # centered 2-pass
        if use_groups:
            var_c = jnp.dot(mgrp_ref[...], ss,
                            preferred_element_type=jnp.float32) * (1.0 / (n - 1.0))
        else:
            var_c = ss * (1.0 / (n - 1.0))
        std_c = jnp.sqrt(var_c)                                # torch.std (unbiased)
        # gn*nsf + x == x*(1+s) + (beta*nsf - mean*s), s = gamma*nsf/(std+eps);
        # sigmoid(t) >= gate  <=>  t >= logit(gate) == thr  (monotonicity).
        s = gscale / (std_c + eps)                             # (C,1) column math
        t_arg = x * (1.0 + s) + (gbias - mean_c * s)
        xs = jnp.where(t_arg >= thr, x, 0.0)                   # (C, HW)

        # -------- FDFM: channel rfft/irfft (norm='ortho') as DFT matmuls ----
        hm = jnp.dot(ffwd_ref[...], xs, preferred_element_type=jnp.float32)
        hre = hm[:Cfp]                                         # real bins
        him = hm[Cfp:]                                         # imag bins
        pre = hre * cwr - him * cwi                            # complex weight mul
        pim = hre * cwi + him * cwr
        xf = (jnp.dot(binv_ref[0], pre, preferred_element_type=jnp.float32)
              + jnp.dot(binv_ref[1], pim, preferred_element_type=jnp.float32)
              + xs)                                            # irfft + residual

        # -------- CFM --------------------------------------------------------
        # One stacked matmul gives PWC1@squeeze1, 2*(PWC2@squeeze2) and the 9
        # per-tap slabs of the grouped 3x3 conv (GWC2 o squeeze2).
        zu = jnp.dot(wstack_ref[...], xf, preferred_element_type=jnp.float32)
        pwc1 = zu[:up]
        y2 = zu[up:up + low]
        u0 = up + low
        ubuf[:, _LPAD:_LPAD + HW] = zu[u0:]                    # aligned lane store

        gwc2 = zu[u0 + 4 * low:u0 + 5 * low]                   # centre tap (vregs)
        t = 0
        for dy in (-1, 0, 1):
            for dx in (-1, 0, 1):
                if dy == 0 and dx == 0:
                    t += 1
                    continue
                base = _LPAD + dy * W + dx
                ut = ubuf[t * low:(t + 1) * low, base:base + HW]
                if dx == -1:                                   # column boundary
                    ut = ut * mneg
                elif dx == 1:
                    ut = ut * mpos
                gwc2 = gwc2 + ut                               # dy halo reads 0.0
                t += 1
        y1 = pwc1 + gwc2 + bg                                  # (low, HW)

        # GAP + joint channel softmax, written straight into output row slices.
        g1 = jnp.sum(y1, axis=1, keepdims=True) * inv_hw       # (up, 1)
        g2 = jnp.sum(y2, axis=1, keepdims=True) * inv_hw       # (low, 1)
        m = jnp.maximum(jnp.max(g1, axis=0, keepdims=True),
                        jnp.max(g2, axis=0, keepdims=True))
        e1 = jnp.exp(g1 - m)
        e2 = jnp.exp(g2 - m)
        inv_den = 1.0 / (jnp.sum(e1, axis=0, keepdims=True)
                         + jnp.sum(e2, axis=0, keepdims=True))
        o_ref[bi, :up, :] = (e1 * inv_den) * y1
        o_ref[bi, up:, :] = (e2 * inv_den) * y2


# ------------------------------ builder / glue --------------------------------
def build_sfcm_forward(C, H, W, gamma, beta, cw, w_sq1, w_sq2, w_gwc2, b_gwc2,
                       w_pwc1, w_pwc2, *, group_num=16, gate=0.5, eps=1e-10,
                       alpha=0.5, group_size=2, block_b=None):
    HW = H * W
    up = int(alpha * C)
    low = C - up
    Cf = C // 2 + 1                      # FDFM dim == number of rfft bins
    Cfp = ((Cf + 7) // 8) * 8            # pad to a sublane multiple
    assert C % group_num == 0
    cpg = C // group_num
    use_groups = cpg > 1
    assert up == low, "PWC1 + GWC2 add requires up_channel == low_channel"
    assert up % 8 == 0 and C % 8 == 0, "clean sublane slices require x8 dims"
    assert low % group_size == 0
    assert 0.0 < gate < 1.0
    assert _LPAD >= W + 1
    thr = float(np.log(gate / (1.0 - gate)))   # sigmoid(t)>=gate <=> t>=thr

    gamma = np.asarray(gamma, np.float32).reshape(C)
    beta = np.asarray(beta, np.float32).reshape(C)
    nsf = np.abs(1.0 - gamma) + beta / np.sum(np.abs(1.0 - gamma) + beta)

    # Per-channel columns packed into one small (C, 4) constant.
    cols = np.zeros((C, 4), np.float32)
    cols[:, 0] = gamma * nsf                                   # gscale
    cols[:, 1] = beta * nsf                                    # gbias
    cols[:low, 2] = np.asarray(b_gwc2, np.float32).reshape(low)  # GWC2 bias

    # FDFM: channel-dim rFFT / irFFT (norm='ortho') as stacked real|imag mats.
    cc = np.arange(C, dtype=np.float64)
    kk = np.arange(Cf, dtype=np.float64)
    scale = 1.0 / np.sqrt(C)
    ang = 2.0 * np.pi * np.outer(kk, cc) / C                   # (Cf, C)
    ffwd = np.zeros((2 * Cfp, C), np.float32)
    ffwd[:Cf] = (np.cos(ang) * scale).astype(np.float32)
    ffwd[Cfp:Cfp + Cf] = (-np.sin(ang) * scale).astype(np.float32)
    coef = np.full((Cf,), 2.0)
    coef[0] = 1.0
    if C % 2 == 0:
        coef[C // 2] = 1.0
    binv2 = np.zeros((2, C, Cfp), np.float32)                  # [re, im] halves
    binv2[0, :, :Cf] = coef[None, :] * np.cos(ang.T) * scale
    binv2[1, :, :Cf] = -coef[None, :] * np.sin(ang.T) * scale
    cw = np.asarray(cw, np.float32)                            # (Cf, H, W, 2)
    cw2 = np.zeros((2, Cfp, HW), np.float32)
    cw2[0, :Cf] = cw[..., 0].reshape(Cf, HW)
    cw2[1, :Cf] = cw[..., 1].reshape(Cf, HW)

    # CFM: precompose 1x1 chains, fold squeeze2 into GWC2, stack EVERYTHING
    # into one (up + low + 9*low, C) matrix -> a single MXU matmul in-kernel.
    wsq1 = np.asarray(w_sq1, np.float32).reshape(up, C)
    wsq2 = np.asarray(w_sq2, np.float32).reshape(low, C)
    wp1 = np.asarray(w_pwc1, np.float32).reshape(up, up)
    wp2 = np.asarray(w_pwc2, np.float32).reshape(low, low)
    wg = np.asarray(w_gwc2, np.float32)                        # (low, low//gs, 3, 3)
    per_g = low // group_size
    weff = np.zeros((low, C, 3, 3), np.float32)
    for g in range(group_size):
        sl = slice(g * per_g, (g + 1) * per_g)
        weff[sl] = np.einsum('oikl,ic->ockl', wg[sl], wsq2[sl])
    wstack = np.zeros((up + low + 9 * low, C), np.float32)
    wstack[:up] = wp1 @ wsq1
    wstack[up:up + low] = 2.0 * (wp2 @ wsq2)
    t = 0
    for ky in range(3):                                        # same tap order as kernel
        for kx in range(3):
            wstack[up + low + t * low: up + low + (t + 1) * low] = weff[:, :, ky, kx]
            t += 1

    # Precomputed 0/1 lane masks for the dx = -1 / dx = +1 conv taps.
    wcol = np.arange(HW) % W
    lmask = np.zeros((2, HW), np.float32)
    lmask[0] = (wcol >= 1).astype(np.float32)
    lmask[1] = (wcol <= W - 2).astype(np.float32)

    # Conv line-buffer geometry (halo zeroing uses aligned 128-lane stores).
    rz = _LPAD + (HW // 128) * 128                   # aligned right-halo start
    uw = _LPAD + (-(-(HW + W + 1) // 128)) * 128     # buffer width
    assert rz <= _LPAD + HW and uw >= _LPAD + HW + W + 1

    consts = [cols, ffwd, cw2, binv2, wstack, lmask]
    if use_groups:
        mgrp = (np.arange(C)[:, None] // cpg
                == np.arange(C)[None, :] // cpg).astype(np.float32)
        consts.append(mgrp)
    consts = [jnp.asarray(a) for a in consts]

    def _pick_block_b(B):
        if block_b is not None:
            assert B % block_b == 0
            return block_b
        best = 1
        for dcand in range(1, min(B, 4) + 1):        # even #steps (v7x megacore)
            if B % dcand == 0 and (B // dcand) % 2 == 0:
                best = dcand
        if best == 1:
            for dcand in range(1, min(B, 4) + 1):    # else just >= 2 steps
                if B % dcand == 0 and B // dcand >= 2:
                    best = dcand
        return best

    def forward(x_nchw):
        B = x_nchw.shape[0]
        bb = _pick_block_b(B)
        nsteps = B // bb
        x2 = x_nchw.reshape(B, C, HW)       # NCHW is already (C, HW)-major
        kernel = functools.partial(_sfcm_kernel, thr, eps, H, W, Cfp, up, low,
                                   cpg, use_groups, bb, rz)
        in_specs = ([pl.BlockSpec((bb, C, HW), lambda b: (b, 0, 0))]
                    + [_const_spec(a) for a in consts])
        out_spec = pl.BlockSpec((bb, C, HW), lambda b: (b, 0, 0))
        out2 = pl.pallas_call(
            kernel,
            out_shape=jax.ShapeDtypeStruct((B, C, HW), jnp.float32),
            grid=(nsteps,),
            in_specs=in_specs,
            out_specs=out_spec,
            scratch_shapes=[pltpu.VMEM((9 * low, uw), jnp.float32)],
            compiler_params=pltpu.CompilerParams(
                dimension_semantics=("parallel",)),
        )(x2, *consts)
        return out2.reshape(B, C, H, W)

    return forward


# ----------------------------------- demo -------------------------------------
if __name__ == "__main__":
    # SFCM defaults: group_num=16, gate=0.5, alpha=1/2, group_size=2, k=3;
    # FDFM hard-codes h=w=20, so spatial must be 20x20.  B=4 -> block_b=2,
    # grid=(2,) (two samples per step, both v7x TensorCores busy).
    B, C, H, W = 4, 16, 20, 20
    G = 16
    gate = 0.5
    eps = 1e-10
    alpha = 0.5
    group_size = 2
    up = int(alpha * C)
    low = C - up
    Cf = C // 2 + 1
    HW = H * W

    key = jax.random.PRNGKey(0)
    ks = jax.random.split(key, 10)

    x_nchw = jax.random.normal(ks[0], (B, C, H, W), jnp.float32)

    # ---- deterministic synthetic parameters (shapes from the module __init__) --
    gamma = jax.random.normal(ks[1], (C,), jnp.float32)       # GroupBatchnorm2d
    beta = jnp.zeros((C,), jnp.float32)
    cw = 0.25 * jax.random.normal(ks[2], (Cf, H, W, 2), jnp.float32)
    w_sq1 = 0.3 * jax.random.normal(ks[3], (up, C, 1, 1), jnp.float32)
    w_sq2 = 0.3 * jax.random.normal(ks[4], (low, C, 1, 1), jnp.float32)
    w_gwc2 = 0.3 * jax.random.normal(ks[5], (low, low // group_size, 3, 3),
                                     jnp.float32)
    b_gwc2 = 0.1 * jax.random.normal(ks[6], (low,), jnp.float32)
    w_pwc1 = 0.3 * jax.random.normal(ks[7], (up, up, 1, 1), jnp.float32)
    w_pwc2 = 0.3 * jax.random.normal(ks[8], (low, low, 1, 1), jnp.float32)
    # NOTE: CFM.GWC1 exists in __init__ but is never used in forward().

    forward = build_sfcm_forward(C, H, W, gamma, beta, cw, w_sq1, w_sq2,
                                 w_gwc2, b_gwc2, w_pwc1, w_pwc2,
                                 group_num=G, gate=gate, eps=eps,
                                 alpha=alpha, group_size=group_size)
    sfcm_forward = jax.jit(forward)
    out = sfcm_forward(x_nchw)
    jax.block_until_ready(out)

    # ---- pure-JAX reference mirroring the PyTorch forward (sanity check) ----
    def reference(x):
        HP = jax.lax.Precision.HIGHEST
        nsf = jnp.abs(1.0 - gamma) + beta / jnp.sum(jnp.abs(1.0 - gamma) + beta)
        xg = x.reshape(B, G, -1)
        mean = jnp.mean(xg, axis=2, keepdims=True)
        nn = xg.shape[2]
        var = jnp.sum((xg - mean) ** 2, axis=2, keepdims=True) / (nn - 1)
        xn = ((xg - mean) / (jnp.sqrt(var) + eps)).reshape(B, C, H, W)
        gn_x = xn * gamma[None, :, None, None] + beta[None, :, None, None]
        new_in = jax.nn.sigmoid(gn_x * nsf[None, :, None, None] + x)
        xs = jnp.where(new_in >= gate, x, 0.0)
        xfft = jnp.fft.rfft(xs, axis=1, norm='ortho')
        wc = cw[..., 0] + 1j * cw[..., 1]
        xif = jnp.fft.irfft(xfft * wc[None], n=C, axis=1, norm='ortho')
        xf = xif.astype(jnp.float32) + xs
        x_up = jnp.einsum('oc,bchw->bohw', w_sq1.reshape(up, C), xf, precision=HP)
        x_dn = jnp.einsum('oc,bchw->bohw', w_sq2.reshape(low, C), xf, precision=HP)
        pwc1 = jnp.einsum('oi,bihw->bohw', w_pwc1.reshape(up, up), x_up,
                          precision=HP)
        gwc2 = jax.lax.conv_general_dilated(
            x_dn, w_gwc2, (1, 1), ((1, 1), (1, 1)),
            dimension_numbers=('NCHW', 'OIHW', 'NCHW'),
            feature_group_count=group_size, precision=HP)
        gwc2 = gwc2 + b_gwc2[None, :, None, None]
        y1 = pwc1 + gwc2
        pwc2 = jnp.einsum('oi,bihw->bohw', w_pwc2.reshape(low, low), x_dn,
                          precision=HP)
        y2 = pwc2 + pwc2
        a1 = jnp.mean(y1, axis=(2, 3), keepdims=True)
        a2 = jnp.mean(y2, axis=(2, 3), keepdims=True)
        smx = jax.nn.softmax(jnp.concatenate([a1, a2], axis=1), axis=1)
        return jnp.concatenate([smx[:, :up] * y1, smx[:, up:] * y2], axis=1)

    ref = reference(x_nchw)
    # tolerant check: the SFRM gate is a threshold comparison, so a handful of
    # borderline elements may flip; a real math bug would corrupt most elements.
    tol = 3e-2 * float(jnp.max(jnp.abs(ref))) + 1e-4
    bad_frac = float(jnp.mean((jnp.abs(out - ref) > tol).astype(jnp.float32)))
    assert out.shape == (B, C, H, W) and out.dtype == jnp.float32
    assert bad_frac <= 5e-3, f"kernel/reference mismatch fraction: {bad_frac}"
    print("KERNEL_OK")
</pallas_src>

<mosaic_0001>
module attributes {stable_mosaic.version = 11 : i64} {
  func.func @_sfcm_kernel(%arg0: i32, %arg1: memref<2x16x400xf32, #tpu.memory_space<vmem>>, %arg2: memref<16x4xf32, #tpu.memory_space<vmem>>, %arg3: memref<32x16xf32, #tpu.memory_space<vmem>>, %arg4: memref<2x16x400xf32, #tpu.memory_space<vmem>>, %arg5: memref<2x16x16xf32, #tpu.memory_space<vmem>>, %arg6: memref<88x16xf32, #tpu.memory_space<vmem>>, %arg7: memref<2x400xf32, #tpu.memory_space<vmem>>, %arg8: memref<2x16x400xf32, #tpu.memory_space<vmem>>, %arg9: memref<72x640xf32, #tpu.memory_space<vmem>>) attributes {dimension_semantics = [#tpu.dimension_semantics<parallel>], iteration_bounds = array<i64: 2>, scalar_prefetch = 0 : i64, scratch_operands = 1 : i64, tpu.core_type = #tpu.core_type<tc>, window_params = [{transform_indices = @transform_0, window_bounds = array<i64: 2, 16, 400>}, {pipeline_mode = #tpu.pipeline_mode<synchronous>, transform_indices = @transform_1, window_bounds = array<i64: 16, 4>}, {pipeline_mode = #tpu.pipeline_mode<synchronous>, transform_indices = @transform_2, window_bounds = array<i64: 32, 16>}, {pipeline_mode = #tpu.pipeline_mode<synchronous>, transform_indices = @transform_3, window_bounds = array<i64: 2, 16, 400>}, {pipeline_mode = #tpu.pipeline_mode<synchronous>, transform_indices = @transform_4, window_bounds = array<i64: 2, 16, 16>}, {pipeline_mode = #tpu.pipeline_mode<synchronous>, transform_indices = @transform_5, window_bounds = array<i64: 88, 16>}, {pipeline_mode = #tpu.pipeline_mode<synchronous>, transform_indices = @transform_6, window_bounds = array<i64: 2, 400>}, {transform_indices = @transform_7, window_bounds = array<i64: 2, 16, 400>}]} {
    %cst = arith.constant 0.000000e+00 : f32
    %0 = vector.broadcast %cst : f32 to vector<72x128xf32>
    %c0 = arith.constant 0 : index
    %c0_0 = arith.constant 0 : index
    %1 = vector.load %arg9[%c0, %c0_0] : memref<72x640xf32, #tpu.memory_space<vmem>>, vector<72x128xf32>
    tpu.vector_store %arg9[%c0, %c0_0], %0 {strides = array<i32>} : memref<72x640xf32, #tpu.memory_space<vmem>>, vector<72x128xf32>,
    %cst_1 = arith.constant 0.000000e+00 : f32
    %2 = vector.broadcast %cst_1 : f32 to vector<72x128xf32>
    %c0_2 = arith.constant 0 : index
    %c512 = arith.constant 512 : index
    %3 = vector.load %arg9[%c0_2, %c512] : memref<72x640xf32, #tpu.memory_space<vmem>>, vector<72x128xf32>
    tpu.vector_store %arg9[%c0_2, %c512], %2 {strides = array<i32>} : memref<72x640xf32, #tpu.memory_space<vmem>>, vector<72x128xf32>,
    %c0_3 = arith.constant 0 : index
    %c0_4 = arith.constant 0 : index
    %4 = vector.load %arg2[%c0_3, %c0_4] : memref<16x4xf32, #tpu.memory_space<vmem>>, vector<16x1xf32>
    %c0_5 = arith.constant 0 : index
    %c1 = arith.constant 1 : index
    %5 = vector.load %arg2[%c0_5, %c1] : memref<16x4xf32, #tpu.memory_space<vmem>>, vector<16x1xf32>
    %c0_6 = arith.constant 0 : index
    %c2 = arith.constant 2 : index
    %6 = vector.load %arg2[%c0_6, %c2] : memref<16x4xf32, #tpu.memory_space<vmem>>, vector<8x1xf32>
    %c0_7 = arith.constant 0 : index
    %c0_8 = arith.constant 0 : index
    %c0_9 = arith.constant 0 : index
    %7 = vector.load %arg4[%c0_7, %c0_8, %c0_9] : memref<2x16x400xf32, #tpu.memory_space<vmem>>, vector<1x16x400xf32>
    %8 = vector.shape_cast %7 : vector<1x16x400xf32> to vector<16x400xf32>
    %c1_10 = arith.constant 1 : index
    %c0_11 = arith.constant 0 : index
    %c0_12 = arith.constant 0 : index
    %9 = vector.load %arg4[%c1_10, %c0_11, %c0_12] : memref<2x16x400xf32, #tpu.memory_space<vmem>>, vector<1x16x400xf32>
    %10 = vector.shape_cast %9 : vector<1x16x400xf32> to vector<16x400xf32>
    %c0_13 = arith.constant 0 : index
    %c0_14 = arith.constant 0 : index
    %11 = vector.load %arg7[%c0_13, %c0_14] : memref<2x400xf32, #tpu.memory_space<vmem>>, vector<1x400xf32>
    %c1_15 = arith.constant 1 : index
    %c0_16 = arith.constant 0 : index
    %12 = vector.load %arg7[%c1_15, %c0_16] : memref<2x400xf32, #tpu.memory_space<vmem>>, vector<1x400xf32>
    %c0_17 = arith.constant 0 : index
    %c0_18 = arith.constant 0 : index
    %c0_19 = arith.constant 0 : index
    %13 = vector.load %arg1[%c0_17, %c0_18, %c0_19] : memref<2x16x400xf32, #tpu.memory_space<vmem>>, vector<1x16x400xf32>
    %14 = vector.shape_cast %13 : vector<1x16x400xf32> to vector<16x400xf32>
    %cst_20 = arith.constant dense<0.000000e+00> : vector<16xf32>
    %15 = vector.multi_reduction <add>, %14, %cst_20 [1] : vector<16x400xf32> to vector<16xf32>
    %16 = vector.shape_cast %15 : vector<16xf32> to vector<16x1xf32>
    %cst_21 = arith.constant 2.500000e-03 : f32
    %17 = vector.broadcast %cst_21 : f32 to vector<16x1xf32>
    %18 = arith.mulf %16, %17 : vector<16x1xf32>
    %19 = vector.broadcast %18 : vector<16x1xf32> to vector<16x400xf32>
    %20 = arith.subf %14, %19 : vector<16x400xf32>
    %21 = arith.mulf %20, %20 : vector<16x400xf32>
    %cst_22 = arith.constant dense<0.000000e+00> : vector<16xf32>
    %22 = vector.multi_reduction <add>, %21, %cst_22 [1] : vector<16x400xf32> to vector<16xf32>
    %23 = vector.shape_cast %22 : vector<16xf32> to vector<16x1xf32>
    %cst_23 = arith.constant 0.00250626565 : f32
    %24 = vector.broadcast %cst_23 : f32 to vector<16x1xf32>
    %25 = arith.mulf %23, %24 : vector<16x1xf32>
    %26 = math.sqrt %25 : vector<16x1xf32>
    %cst_24 = arith.constant 1.000000e-10 : f32
    %27 = vector.broadcast %cst_24 : f32 to vector<16x1xf32>
    %28 = arith.addf %26, %27 : vector<16x1xf32>
    %29 = arith.divf %4, %28 : vector<16x1xf32>
    %cst_25 = arith.constant 1.000000e+00 : f32
    %30 = vector.broadcast %cst_25 : f32 to vector<16x1xf32>
    %31 = arith.addf %30, %29 : vector<16x1xf32>
    %32 = vector.broadcast %31 : vector<16x1xf32> to vector<16x400xf32>
    %33 = arith.mulf %14, %32 : vector<16x400xf32>
    %34 = arith.mulf %18, %29 : vector<16x1xf32>
    %35 = arith.subf %5, %34 : vector<16x1xf32>
    %36 = vector.broadcast %35 : vector<16x1xf32> to vector<16x400xf32>
    %37 = arith.addf %33, %36 : vector<16x400xf32>
    %cst_26 = arith.constant 0.000000e+00 : f32
    %38 = vector.broadcast %cst_26 : f32 to vector<16x400xf32>
    %39 = arith.cmpf oge, %37, %38 : vector<16x400xf32>
    %cst_27 = arith.constant 0.000000e+00 : f32
    %40 = vector.broadcast %cst_27 : f32 to vector<16x400xf32>
    %41 = arith.select %39, %14, %40 : vector<16x400xi1>, vector<16x400xf32>
    %c0_28 = arith.constant 0 : index
    %c0_29 = arith.constant 0 : index
    %42 = vector.load %arg3[%c0_28, %c0_29] : memref<32x16xf32, #tpu.memory_space<vmem>>, vector<32x16xf32>
    %cst_30 = arith.constant dense<0.000000e+00> : vector<32x400xf32>
    %43 = tpu.matmul %42, %41, %cst_30 {dimension_numbers = #tpu.dot_dimension_numbers<[1], [0], [0], [1], [0, 0, 1, 1], [], []>} : vector<32x16xf32>, vector<16x400xf32>, vector<32x400xf32> -> vector<32x400xf32>
    %44 = vector.extract_strided_slice %43 {offsets = [0, 0], sizes = [16, 400], strides = [1, 1]} : vector<32x400xf32> to vector<16x400xf32>
    %45 = vector.extract_strided_slice %43 {offsets = [16, 0], sizes = [16, 400], strides = [1, 1]} : vector<32x400xf32> to vector<16x400xf32>
    %46 = arith.mulf %44, %8 : vector<16x400xf32>
    %47 = arith.mulf %45, %10 : vector<16x400xf32>
    %48 = arith.subf %46, %47 : vector<16x400xf32>
    %49 = arith.mulf %44, %10 : vector<16x400xf32>
    %50 = arith.mulf %45, %8 : vector<16x400xf32>
    %51 = arith.addf %49, %50 : vector<16x400xf32>
    %c0_31 = arith.constant 0 : index
    %c0_32 = arith.constant 0 : index
    %c0_33 = arith.constant 0 : index
    %52 = vector.load %arg5[%c0_31, %c0_32, %c0_33] : memref<2x16x16xf32, #tpu.memory_space<vmem>>, vector<1x16x16xf32>
    %53 = vector.shape_cast %52 : vector<1x16x16xf32> to vector<16x16xf32>
    %cst_34 = arith.constant dense<0.000000e+00> : vector<16x400xf32>
    %54 = tpu.matmul %53, %48, %cst_34 {dimension_numbers = #tpu.dot_dimension_numbers<[1], [0], [0], [1], [0, 0, 1, 1], [], []>} : vector<16x16xf32>, vector<16x400xf32>, vector<16x400xf32> -> vector<16x400xf32>
    %c1_35 = arith.constant 1 : index
    %c0_36 = arith.constant 0 : index
    %c0_37 = arith.constant 0 : index
    %55 = vector.load %arg5[%c1_35, %c0_36, %c0_37] : memref<2x16x16xf32, #tpu.memory_space<vmem>>, vector<1x16x16xf32>
    %56 = vector.shape_cast %55 : vector<1x16x16xf32> to vector<16x16xf32>
    %cst_38 = arith.constant dense<0.000000e+00> : vector<16x400xf32>
    %57 = tpu.matmul %56, %51, %cst_38 {dimension_numbers = #tpu.dot_dimension_numbers<[1], [0], [0], [1], [0, 0, 1, 1], [], []>} : vector<16x16xf32>, vector<16x400xf32>, vector<16x400xf32> -> vector<16x400xf32>
    %58 = arith.addf %54, %57 : vector<16x400xf32>
    %59 = arith.addf %58, %41 : vector<16x400xf32>
    %c0_39 = arith.constant 0 : index
    %c0_40 = arith.constant 0 : index
    %60 = vector.load %arg6[%c0_39, %c0_40] : memref<88x16xf32, #tpu.memory_space<vmem>>, vector<88x16xf32>
    %cst_41 = arith.constant dense<0.000000e+00> : vector<88x400xf32>
    %61 = tpu.matmul %60, %59, %cst_41 {dimension_numbers = #tpu.dot_dimension_numbers<[1], [0], [0], [1], [0, 0, 1, 1], [], []>} : vector<88x16xf32>, vector<16x400xf32>, vector<88x400xf32> -> vector<88x400xf32>
    %62 = vector.extract_strided_slice %61 {offsets = [0, 0], sizes = [8, 400], strides = [1, 1]} : vector<88x400xf32> to vector<8x400xf32>
    %63 = vector.extract_strided_slice %61 {offsets = [8, 0], sizes = [8, 400], strides = [1, 1]} : vector<88x400xf32> to vector<8x400xf32>
    %64 = vector.extract_strided_slice %61 {offsets = [16, 0], sizes = [72, 400], strides = [1, 1]} : vector<88x400xf32> to vector<72x400xf32>
    %c0_42 = arith.constant 0 : index
    %c128 = arith.constant 128 : index
    %65 = vector.load %arg9[%c0_42, %c128] : memref<72x640xf32, #tpu.memory_space<vmem>>, vector<72x400xf32>
    tpu.vector_store %arg9[%c0_42, %c128], %64 {strides = array<i32>} : memref<72x640xf32, #tpu.memory_space<vmem>>, vector<72x400xf32>,
    %66 = vector.extract_strided_slice %61 {offsets = [48, 0], sizes = [8, 400], strides = [1, 1]} : vector<88x400xf32> to vector<8x400xf32>
    %c0_43 = arith.constant 0 : index
    %c107 = arith.constant 107 : index
    %67 = vector.load %arg9[%c0_43, %c107] : memref<72x640xf32, #tpu.memory_space<vmem>>, vector<8x400xf32>
    %68 = vector.broadcast %11 : vector<1x400xf32> to vector<8x400xf32>
    %69 = arith.mulf %67, %68 : vector<8x400xf32>
    %70 = arith.addf %66, %69 : vector<8x400xf32>
    %c8 = arith.constant 8 : index
    %c108 = arith.constant 108 : index
    %71 = vector.load %arg9[%c8, %c108] : memref<72x640xf32, #tpu.memory_space<vmem>>, vector<8x400xf32>
    %72 = arith.addf %70, %71 : vector<8x400xf32>
    %c16 = arith.constant 16 : index
    %c109 = arith.constant 109 : index
    %73 = vector.load %arg9[%c16, %c109] : memref<72x640xf32, #tpu.memory_space<vmem>>, vector<8x400xf32>
    %74 = vector.broadcast %12 : vector<1x400xf32> to vector<8x400xf32>
    %75 = arith.mulf %73, %74 : vector<8x400xf32>
    %76 = arith.addf %72, %75 : vector<8x400xf32>
    %c24 = arith.constant 24 : index
    %c127 = arith.constant 127 : index
    %77 = vector.load %arg9[%c24, %c127] : memref<72x640xf32, #tpu.memory_space<vmem>>, vector<8x400xf32>
    %78 = vector.broadcast %11 : vector<1x400xf32> to vector<8x400xf32>
    %79 = arith.mulf %77, %78 : vector<8x400xf32>
    %80 = arith.addf %76, %79 : vector<8x400xf32>
    %c40 = arith.constant 40 : index
    %c129 = arith.constant 129 : index
    %81 = vector.load %arg9[%c40, %c129] : memref<72x640xf32, #tpu.memory_space<vmem>>, vector<8x400xf32>
    %82 = vector.broadcast %12 : vector<1x400xf32> to vector<8x400xf32>
    %83 = arith.mulf %81, %82 : vector<8x400xf32>
    %84 = arith.addf %80, %83 : vector<8x400xf32>
    %c48 = arith.constant 48 : index
    %c147 = arith.constant 147 : index
    %85 = vector.load %arg9[%c48, %c147] : memref<72x640xf32, #tpu.memory_space<vmem>>, vector<8x400xf32>
    %86 = vector.broadcast %11 : vector<1x400xf32> to vector<8x400xf32>
    %87 = arith.mulf %85, %86 : vector<8x400xf32>
    %88 = arith.addf %84, %87 : vector<8x400xf32>
    %c56 = arith.constant 56 : index
    %c148 = arith.constant 148 : index
    %89 = vector.load %arg9[%c56, %c148] : memref<72x640xf32, #tpu.memory_space<vmem>>, vector<8x400xf32>
    %90 = arith.addf %88, %89 : vector<8x400xf32>
    %c64 = arith.constant 64 : index
    %c149 = arith.constant 149 : index
    %91 = vector.load %arg9[%c64, %c149] : memref<72x640xf32, #tpu.memory_space<vmem>>, vector<8x400xf32>
    %92 = vector.broadcast %12 : vector<1x400xf32> to vector<8x400xf32>
    %93 = arith.mulf %91, %92 : vector<8x400xf32>
    %94 = arith.addf %90, %93 : vector<8x400xf32>
    %95 = arith.addf %62, %94 : vector<8x400xf32>
    %96 = vector.broadcast %6 : vector<8x1xf32> to vector<8x400xf32>
    %97 = arith.addf %95, %96 : vector<8x400xf32>
    %cst_44 = arith.constant dense<0.000000e+00> : vector<8xf32>
    %98 = vector.multi_reduction <add>, %97, %cst_44 [1] : vector<8x400xf32> to vector<8xf32>
    %99 = vector.shape_cast %98 : vector<8xf32> to vector<8x1xf32>
    %cst_45 = arith.constant 2.500000e-03 : f32
    %100 = vector.broadcast %cst_45 : f32 to vector<8x1xf32>
    %101 = arith.mulf %99, %100 : vector<8x1xf32>
    %cst_46 = arith.constant dense<0.000000e+00> : vector<8xf32>
    %102 = vector.multi_reduction <add>, %63, %cst_46 [1] : vector<8x400xf32> to vector<8xf32>
    %103 = vector.shape_cast %102 : vector<8xf32> to vector<8x1xf32>
    %cst_47 = arith.constant 2.500000e-03 : f32
    %104 = vector.broadcast %cst_47 : f32 to vector<8x1xf32>
    %105 = arith.mulf %103, %104 : vector<8x1xf32>
    %cst_48 = arith.constant dense<0xFF800000> : vector<1xf32>
    %106 = vector.multi_reduction <maximumf>, %101, %cst_48 [0] : vector<8x1xf32> to vector<1xf32>
    %107 = vector.shape_cast %106 : vector<1xf32> to vector<1x1xf32>
    %cst_49 = arith.constant dense<0xFF800000> : vector<1xf32>
    %108 = vector.multi_reduction <maximumf>, %105, %cst_49 [0] : vector<8x1xf32> to vector<1xf32>
    %109 = vector.shape_cast %108 : vector<1xf32> to vector<1x1xf32>
    %110 = arith.maximumf %107, %109 : vector<1x1xf32>
    %111 = vector.broadcast %110 : vector<1x1xf32> to vector<8x1xf32>
    %112 = arith.subf %101, %111 : vector<8x1xf32>
    %113 = math.exp %112 : vector<8x1xf32>
    %114 = vector.broadcast %110 : vector<1x1xf32> to vector<8x1xf32>
    %115 = arith.subf %105, %114 : vector<8x1xf32>
    %116 = math.exp %115 : vector<8x1xf32>
    %cst_50 = arith.constant dense<0.000000e+00> : vector<1xf32>
    %117 = vector.multi_reduction <add>, %113, %cst_50 [0] : vector<8x1xf32> to vector<1xf32>
    %118 = vector.shape_cast %117 : vector<1xf32> to vector<1x1xf32>
    %cst_51 = arith.constant dense<0.000000e+00> : vector<1xf32>
    %119 = vector.multi_reduction <add>, %116, %cst_51 [0] : vector<8x1xf32> to vector<1xf32>
    %120 = vector.shape_cast %119 : vector<1xf32> to vector<1x1xf32>
    %121 = arith.addf %118, %120 : vector<1x1xf32>
    %cst_52 = arith.constant 1.000000e+00 : f32
    %122 = vector.broadcast %cst_52 : f32 to vector<1x1xf32>
    %123 = arith.divf %122, %121 : vector<1x1xf32>
    %124 = vector.broadcast %123 : vector<1x1xf32> to vector<8x1xf32>
    %125 = arith.mulf %113, %124 : vector<8x1xf32>
    %126 = vector.broadcast %125 : vector<8x1xf32> to vector<8x400xf32>
    %127 = arith.mulf %126, %97 : vector<8x400xf32>
    %c0_53 = arith.constant 0 : index
    %c0_54 = arith.constant 0 : index
    %c0_55 = arith.constant 0 : index
    %128 = vector.load %arg8[%c0_53, %c0_54, %c0_55] : memref<2x16x400xf32, #tpu.memory_space<vmem>>, vector<1x8x400xf32>
    %129 = vector.shape_cast %128 : vector<1x8x400xf32> to vector<8x400xf32>
    %130 = vector.shape_cast %127 : vector<8x400xf32> to vector<1x8x400xf32>
    tpu.vector_store %arg8[%c0_53, %c0_54, %c0_55], %130 {strides = array<i32>} : memref<2x16x400xf32, #tpu.memory_space<vmem>>, vector<1x8x400xf32>,
    %131 = vector.broadcast %123 : vector<1x1xf32> to vector<8x1xf32>
    %132 = arith.mulf %116, %131 : vector<8x1xf32>
    %133 = vector.broadcast %132 : vector<8x1xf32> to vector<8x400xf32>
    %134 = arith.mulf %133, %63 : vector<8x400xf32>
    %c0_56 = arith.constant 0 : index
    %c8_57 = arith.constant 8 : index
    %c0_58 = arith.constant 0 : index
    %135 = vector.load %arg8[%c0_56, %c8_57, %c0_58] : memref<2x16x400xf32, #tpu.memory_space<vmem>>, vector<1x8x400xf32>
    %136 = vector.shape_cast %135 : vector<1x8x400xf32> to vector<8x400xf32>
    %137 = vector.shape_cast %134 : vector<8x400xf32> to vector<1x8x400xf32>
    tpu.vector_store %arg8[%c0_56, %c8_57, %c0_58], %137 {strides = array<i32>} : memref<2x16x400xf32, #tpu.memory_space<vmem>>, vector<1x8x400xf32>,
    %c1_59 = arith.constant 1 : index
    %c0_60 = arith.constant 0 : index
    %c0_61 = arith.constant 0 : index
    %138 = vector.load %arg1[%c1_59, %c0_60, %c0_61] : memref<2x16x400xf32, #tpu.memory_space<vmem>>, vector<1x16x400xf32>
    %139 = vector.shape_cast %138 : vector<1x16x400xf32> to vector<16x400xf32>
    %cst_62 = arith.constant dense<0.000000e+00> : vector<16xf32>
    %140 = vector.multi_reduction <add>, %139, %cst_62 [1] : vector<16x400xf32> to vector<16xf32>
    %141 = vector.shape_cast %140 : vector<16xf32> to vector<16x1xf32>
    %cst_63 = arith.constant 2.500000e-03 : f32
    %142 = vector.broadcast %cst_63 : f32 to vector<16x1xf32>
    %143 = arith.mulf %141, %142 : vector<16x1xf32>
    %144 = vector.broadcast %143 : vector<16x1xf32> to vector<16x400xf32>
    %145 = arith.subf %139, %144 : vector<16x400xf32>
    %146 = arith.mulf %145, %145 : vector<16x400xf32>
    %cst_64 = arith.constant dense<0.000000e+00> : vector<16xf32>
    %147 = vector.multi_reduction <add>, %146, %cst_64 [1] : vector<16x400xf32> to vector<16xf32>
    %148 = vector.shape_cast %147 : vector<16xf32> to vector<16x1xf32>
    %cst_65 = arith.constant 0.00250626565 : f32
    %149 = vector.broadcast %cst_65 : f32 to vector<16x1xf32>
    %150 = arith.mulf %148, %149 : vector<16x1xf32>
    %151 = math.sqrt %150 : vector<16x1xf32>
    %cst_66 = arith.constant 1.000000e-10 : f32
    %152 = vector.broadcast %cst_66 : f32 to vector<16x1xf32>
    %153 = arith.addf %151, %152 : vector<16x1xf32>
    %154 = arith.divf %4, %153 : vector<16x1xf32>
    %cst_67 = arith.constant 1.000000e+00 : f32
    %155 = vector.broadcast %cst_67 : f32 to vector<16x1xf32>
    %156 = arith.addf %155, %154 : vector<16x1xf32>
    %157 = vector.broadcast %156 : vector<16x1xf32> to vector<16x400xf32>
    %158 = arith.mulf %139, %157 : vector<16x400xf32>
    %159 = arith.mulf %143, %154 : vector<16x1xf32>
    %160 = arith.subf %5, %159 : vector<16x1xf32>
    %161 = vector.broadcast %160 : vector<16x1xf32> to vector<16x400xf32>
    %162 = arith.addf %158, %161 : vector<16x400xf32>
    %cst_68 = arith.constant 0.000000e+00 : f32
    %163 = vector.broadcast %cst_68 : f32 to vector<16x400xf32>
    %164 = arith.cmpf oge, %162, %163 : vector<16x400xf32>
    %cst_69 = arith.constant 0.000000e+00 : f32
    %165 = vector.broadcast %cst_69 : f32 to vector<16x400xf32>
    %166 = arith.select %164, %139, %165 : vector<16x400xi1>, vector<16x400xf32>
    %c0_70 = arith.constant 0 : index
    %c0_71 = arith.constant 0 : index
    %167 = vector.load %arg3[%c0_70, %c0_71] : memref<32x16xf32, #tpu.memory_space<vmem>>, vector<32x16xf32>
    %cst_72 = arith.constant dense<0.000000e+00> : vector<32x400xf32>
    %168 = tpu.matmul %167, %166, %cst_72 {dimension_numbers = #tpu.dot_dimension_numbers<[1], [0], [0], [1], [0, 0, 1, 1], [], []>} : vector<32x16xf32>, vector<16x400xf32>, vector<32x400xf32> -> vector<32x400xf32>
    %169 = vector.extract_strided_slice %168 {offsets = [0, 0], sizes = [16, 400], strides = [1, 1]} : vector<32x400xf32> to vector<16x400xf32>
    %170 = vector.extract_strided_slice %168 {offsets = [16, 0], sizes = [16, 400], strides = [1, 1]} : vector<32x400xf32> to vector<16x400xf32>
    %171 = arith.mulf %169, %8 : vector<16x400xf32>
    %172 = arith.mulf %170, %10 : vector<16x400xf32>
    %173 = arith.subf %171, %172 : vector<16x400xf32>
    %174 = arith.mulf %169, %10 : vector<16x400xf32>
    %175 = arith.mulf %170, %8 : vector<16x400xf32>
    %176 = arith.addf %174, %175 : vector<16x400xf32>
    %c0_73 = arith.constant 0 : index
    %c0_74 = arith.constant 0 : index
    %c0_75 = arith.constant 0 : index
    %177 = vector.load %arg5[%c0_73, %c0_74, %c0_75] : memref<2x16x16xf32, #tpu.memory_space<vmem>>, vector<1x16x16xf32>
    %178 = vector.shape_cast %177 : vector<1x16x16xf32> to vector<16x16xf32>
    %cst_76 = arith.constant dense<0.000000e+00> : vector<16x400xf32>
    %179 = tpu.matmul %178, %173, %cst_76 {dimension_numbers = #tpu.dot_dimension_numbers<[1], [0], [0], [1], [0, 0, 1, 1], [], []>} : vector<16x16xf32>, vector<16x400xf32>, vector<16x400xf32> -> vector<16x400xf32>
    %c1_77 = arith.constant 1 : index
    %c0_78 = arith.constant 0 : index
    %c0_79 = arith.constant 0 : index
    %180 = vector.load %arg5[%c1_77, %c0_78, %c0_79] : memref<2x16x16xf32, #tpu.memory_space<vmem>>, vector<1x16x16xf32>
    %181 = vector.shape_cast %180 : vector<1x16x16xf32> to vector<16x16xf32>
    %cst_80 = arith.constant dense<0.000000e+00> : vector<16x400xf32>
    %182 = tpu.matmul %181, %176, %cst_80 {dimension_numbers = #tpu.dot_dimension_numbers<[1], [0], [0], [1], [0, 0, 1, 1], [], []>} : vector<16x16xf32>, vector<16x400xf32>, vector<16x400xf32> -> vector<16x400xf32>
    %183 = arith.addf %179, %182 : vector<16x400xf32>
    %184 = arith.addf %183, %166 : vector<16x400xf32>
    %c0_81 = arith.constant 0 : index
    %c0_82 = arith.constant 0 : index
    %185 = vector.load %arg6[%c0_81, %c0_82] : memref<88x16xf32, #tpu.memory_space<vmem>>, vector<88x16xf32>
    %cst_83 = arith.constant dense<0.000000e+00> : vector<88x400xf32>
    %186 = tpu.matmul %185, %184, %cst_83 {dimension_numbers = #tpu.dot_dimension_numbers<[1], [0], [0], [1], [0, 0, 1, 1], [], []>} : vector<88x16xf32>, vector<16x400xf32>, vector<88x400xf32> -> vector<88x400xf32>
    %187 = vector.extract_strided_slice %186 {offsets = [0, 0], sizes = [8, 400], strides = [1, 1]} : vector<88x400xf32> to vector<8x400xf32>
    %188 = vector.extract_strided_slice %186 {offsets = [8, 0], sizes = [8, 400], strides = [1, 1]} : vector<88x400xf32> to vector<8x400xf32>
    %189 = vector.extract_strided_slice %186 {offsets = [16, 0], sizes = [72, 400], strides = [1, 1]} : vector<88x400xf32> to vector<72x400xf32>
    %c0_84 = arith.constant 0 : index
    %c128_85 = arith.constant 128 : index
    %190 = vector.load %arg9[%c0_84, %c128_85] : memref<72x640xf32, #tpu.memory_space<vmem>>, vector<72x400xf32>
    tpu.vector_store %arg9[%c0_84, %c128_85], %189 {strides = array<i32>} : memref<72x640xf32, #tpu.memory_space<vmem>>, vector<72x400xf32>,
    %191 = vector.extract_strided_slice %186 {offsets = [48, 0], sizes = [8, 400], strides = [1, 1]} : vector<88x400xf32> to vector<8x400xf32>
    %c0_86 = arith.constant 0 : index
    %c107_87 = arith.constant 107 : index
    %192 = vector.load %arg9[%c0_86, %c107_87] : memref<72x640xf32, #tpu.memory_space<vmem>>, vector<8x400xf32>
    %193 = vector.broadcast %11 : vector<1x400xf32> to vector<8x400xf32>
    %194 = arith.mulf %192, %193 : vector<8x400xf32>
    %195 = arith.addf %191, %194 : vector<8x400xf32>
    %c8_88 = arith.constant 8 : index
    %c108_89 = arith.constant 108 : index
    %196 = vector.load %arg9[%c8_88, %c108_89] : memref<72x640xf32, #tpu.memory_space<vmem>>, vector<8x400xf32>
    %197 = arith.addf %195, %196 : vector<8x400xf32>
    %c16_90 = arith.constant 16 : index
    %c109_91 = arith.constant 109 : index
    %198 = vector.load %arg9[%c16_90, %c109_91] : memref<72x640xf32, #tpu.memory_space<vmem>>, vector<8x400xf32>
    %199 = vector.broadcast %12 : vector<1x400xf32> to vector<8x400xf32>
    %200 = arith.mulf %198, %199 : vector<8x400xf32>
    %201 = arith.addf %197, %200 : vector<8x400xf32>
    %c24_92 = arith.constant 24 : index
    %c127_93 = arith.constant 127 : index
    %202 = vector.load %arg9[%c24_92, %c127_93] : memref<72x640xf32, #tpu.memory_space<vmem>>, vector<8x400xf32>
    %203 = vector.broadcast %11 : vector<1x400xf32> to vector<8x400xf32>
    %204 = arith.mulf %202, %203 : vector<8x400xf32>
    %205 = arith.addf %201, %204 : vector<8x400xf32>
    %c40_94 = arith.constant 40 : index
    %c129_95 = arith.constant 129 : index
    %206 = vector.load %arg9[%c40_94, %c129_95] : memref<72x640xf32, #tpu.memory_space<vmem>>, vector<8x400xf32>
    %207 = vector.broadcast %12 : vector<1x400xf32> to vector<8x400xf32>
    %208 = arith.mulf %206, %207 : vector<8x400xf32>
    %209 = arith.addf %205, %208 : vector<8x400xf32>
    %c48_96 = arith.constant 48 : index
    %c147_97 = arith.constant 147 : index
    %210 = vector.load %arg9[%c48_96, %c147_97] : memref<72x640xf32, #tpu.memory_space<vmem>>, vector<8x400xf32>
    %211 = vector.broadcast %11 : vector<1x400xf32> to vector<8x400xf32>
    %212 = arith.mulf %210, %211 : vector<8x400xf32>
    %213 = arith.addf %209, %212 : vector<8x400xf32>
    %c56_98 = arith.constant 56 : index
    %c148_99 = arith.constant 148 : index
    %214 = vector.load %arg9[%c56_98, %c148_99] : memref<72x640xf32, #tpu.memory_space<vmem>>, vector<8x400xf32>
    %215 = arith.addf %213, %214 : vector<8x400xf32>
    %c64_100 = arith.constant 64 : index
    %c149_101 = arith.constant 149 : index
    %216 = vector.load %arg9[%c64_100, %c149_101] : memref<72x640xf32, #tpu.memory_space<vmem>>, vector<8x400xf32>
    %217 = vector.broadcast %12 : vector<1x400xf32> to vector<8x400xf32>
    %218 = arith.mulf %216, %217 : vector<8x400xf32>
    %219 = arith.addf %215, %218 : vector<8x400xf32>
    %220 = arith.addf %187, %219 : vector<8x400xf32>
    %221 = vector.broadcast %6 : vector<8x1xf32> to vector<8x400xf32>
    %222 = arith.addf %220, %221 : vector<8x400xf32>
    %cst_102 = arith.constant dense<0.000000e+00> : vector<8xf32>
    %223 = vector.multi_reduction <add>, %222, %cst_102 [1] : vector<8x400xf32> to vector<8xf32>
    %224 = vector.shape_cast %223 : vector<8xf32> to vector<8x1xf32>
    %cst_103 = arith.constant 2.500000e-03 : f32
    %225 = vector.broadcast %cst_103 : f32 to vector<8x1xf32>
    %226 = arith.mulf %224, %225 : vector<8x1xf32>
    %cst_104 = arith.constant dense<0.000000e+00> : vector<8xf32>
    %227 = vector.multi_reduction <add>, %188, %cst_104 [1] : vector<8x400xf32> to vector<8xf32>
    %228 = vector.shape_cast %227 : vector<8xf32> to vector<8x1xf32>
    %cst_105 = arith.constant 2.500000e-03 : f32
    %229 = vector.broadcast %cst_105 : f32 to vector<8x1xf32>
    %230 = arith.mulf %228, %229 : vector<8x1xf32>
    %cst_106 = arith.constant dense<0xFF800000> : vector<1xf32>
    %231 = vector.multi_reduction <maximumf>, %226, %cst_106 [0] : vector<8x1xf32> to vector<1xf32>
    %232 = vector.shape_cast %231 : vector<1xf32> to vector<1x1xf32>
    %cst_107 = arith.constant dense<0xFF800000> : vector<1xf32>
    %233 = vector.multi_reduction <maximumf>, %230, %cst_107 [0] : vector<8x1xf32> to vector<1xf32>
    %234 = vector.shape_cast %233 : vector<1xf32> to vector<1x1xf32>
    %235 = arith.maximumf %232, %234 : vector<1x1xf32>
    %236 = vector.broadcast %235 : vector<1x1xf32> to vector<8x1xf32>
    %237 = arith.subf %226, %236 : vector<8x1xf32>
    %238 = math.exp %237 : vector<8x1xf32>
    %239 = vector.broadcast %235 : vector<1x1xf32> to vector<8x1xf32>
    %240 = arith.subf %230, %239 : vector<8x1xf32>
    %241 = math.exp %240 : vector<8x1xf32>
    %cst_108 = arith.constant dense<0.000000e+00> : vector<1xf32>
    %242 = vector.multi_reduction <add>, %238, %cst_108 [0] : vector<8x1xf32> to vector<1xf32>
    %243 = vector.shape_cast %242 : vector<1xf32> to vector<1x1xf32>
    %cst_109 = arith.constant dense<0.000000e+00> : vector<1xf32>
    %244 = vector.multi_reduction <add>, %241, %cst_109 [0] : vector<8x1xf32> to vector<1xf32>
    %245 = vector.shape_cast %244 : vector<1xf32> to vector<1x1xf32>
    %246 = arith.addf %243, %245 : vector<1x1xf32>
    %cst_110 = arith.constant 1.000000e+00 : f32
    %247 = vector.broadcast %cst_110 : f32 to vector<1x1xf32>
    %248 = arith.divf %247, %246 : vector<1x1xf32>
    %249 = vector.broadcast %248 : vector<1x1xf32> to vector<8x1xf32>
    %250 = arith.mulf %238, %249 : vector<8x1xf32>
    %251 = vector.broadcast %250 : vector<8x1xf32> to vector<8x400xf32>
    %252 = arith.mulf %251, %222 : vector<8x400xf32>
    %c1_111 = arith.constant 1 : index
    %c0_112 = arith.constant 0 : index
    %c0_113 = arith.constant 0 : index
    %253 = vector.load %arg8[%c1_111, %c0_112, %c0_113] : memref<2x16x400xf32, #tpu.memory_space<vmem>>, vector<1x8x400xf32>
    %254 = vector.shape_cast %253 : vector<1x8x400xf32> to vector<8x400xf32>
    %255 = vector.shape_cast %252 : vector<8x400xf32> to vector<1x8x400xf32>
    tpu.vector_store %arg8[%c1_111, %c0_112, %c0_113], %255 {strides = array<i32>} : memref<2x16x400xf32, #tpu.memory_space<vmem>>, vector<1x8x400xf32>,
    %256 = vector.broadcast %248 : vector<1x1xf32> to vector<8x1xf32>
    %257 = arith.mulf %241, %256 : vector<8x1xf32>
    %258 = vector.broadcast %257 : vector<8x1xf32> to vector<8x400xf32>
    %259 = arith.mulf %258, %188 : vector<8x400xf32>
    %c1_114 = arith.constant 1 : index
    %c8_115 = arith.constant 8 : index
    %c0_116 = arith.constant 0 : index
    %260 = vector.load %arg8[%c1_114, %c8_115, %c0_116] : memref<2x16x400xf32, #tpu.memory_space<vmem>>, vector<1x8x400xf32>
    %261 = vector.shape_cast %260 : vector<1x8x400xf32> to vector<8x400xf32>
    %262 = vector.shape_cast %259 : vector<8x400xf32> to vector<1x8x400xf32>
    tpu.vector_store %arg8[%c1_114, %c8_115, %c0_116], %262 {strides = array<i32>} : memref<2x16x400xf32, #tpu.memory_space<vmem>>, vector<1x8x400xf32>,
    return
  }
  func.func @transform_0(%arg0: i32) -> (i32, i32, i32) {
    %c0_i32 = arith.constant 0 : i32
    %c0_i32_0 = arith.constant 0 : i32
    %c0_i32_1 = arith.constant 0 : i32
    return %arg0, %c0_i32, %c0_i32_0 : i32, i32, i32
  }
  func.func @transform_1(%arg0: i32) -> (i32, i32) {
    %c0_i32 = arith.constant 0 : i32
    %c0_i32_0 = arith.constant 0 : i32
    %c0_i32_1 = arith.constant 0 : i32
    return %c0_i32, %c0_i32_0 : i32, i32
  }
  func.func @transform_2(%arg0: i32) -> (i32, i32) {
    %c0_i32 = arith.constant 0 : i32
    %c0_i32_0 = arith.constant 0 : i32
    %c0_i32_1 = arith.constant 0 : i32
    return %c0_i32, %c0_i32_0 : i32, i32
  }
  func.func @transform_3(%arg0: i32) -> (i32, i32, i32) {
    %c0_i32 = arith.constant 0 : i32
    %c0_i32_0 = arith.constant 0 : i32
    %c0_i32_1 = arith.constant 0 : i32
    %c0_i32_2 = arith.constant 0 : i32
    return %c0_i32, %c0_i32_0, %c0_i32_1 : i32, i32, i32
  }
  func.func @transform_4(%arg0: i32) -> (i32, i32, i32) {
    %c0_i32 = arith.constant 0 : i32
    %c0_i32_0 = arith.constant 0 : i32
    %c0_i32_1 = arith.constant 0 : i32
    %c0_i32_2 = arith.constant 0 : i32
    return %c0_i32, %c0_i32_0, %c0_i32_1 : i32, i32, i32
  }
  func.func @transform_5(%arg0: i32) -> (i32, i32) {
    %c0_i32 = arith.constant 0 : i32
    %c0_i32_0 = arith.constant 0 : i32
    %c0_i32_1 = arith.constant 0 : i32
    return %c0_i32, %c0_i32_0 : i32, i32
  }
  func.func @transform_6(%arg0: i32) -> (i32, i32) {
    %c0_i32 = arith.constant 0 : i32
    %c0_i32_0 = arith.constant 0 : i32
    %c0_i32_1 = arith.constant 0 : i32
    return %c0_i32, %c0_i32_0 : i32, i32
  }
  func.func @transform_7(%arg0: i32) -> (i32, i32, i32) {
    %c0_i32 = arith.constant 0 : i32
    %c0_i32_0 = arith.constant 0 : i32
    %c0_i32_1 = arith.constant 0 : i32
    return %arg0, %c0_i32, %c0_i32_0 : i32, i32, i32
  }
}

</mosaic_0001>

<bundles_post_ra>
// kernel: forward.1
= control target key start
LH: loop header
LB: loop body
LE: loop exit
PB: predicated region body
PF: predicated region fallthrough
CT: control target
= control target key end

     0   :  { %s3557_s24 = smov 0   ;;  %s4829_s0 = inlined_call_operand.vmem [shape: f32[4,16,400], index: 0, kind: input, shape index: {}]   ;;  %s4830_s1 = inlined_call_operand.vmem [shape: f32[16,4], index: 1, kind: input, shape index: {}]   ;;  %s4831_s2 = inlined_call_operand.vmem [shape: f32[32,16], index: 2, kind: input, shape index: {}]   ;;  %s4832_s3 = inlined_call_operand.vmem [shape: f32[2,16,400], index: 3, kind: input, shape index: {}]   ;;  %s4833_s4 = inlined_call_operand.vmem [shape: f32[2,16,16], index: 4, kind: input, shape index: {}]   ;;  %s4834_s5 = inlined_call_operand.vmem [shape: f32[88,16], index: 5, kind: input, shape index: {}]   ;;  %s4835_s6 = inlined_call_operand.vmem [shape: f32[2,400], index: 6, kind: input, shape index: {}]   ;;  %s4836_s7 = inlined_call_operand.vmem [shape: f32[4,16,400], index: 7, kind: output, shape index: {}]  }
   0x1 LB: > { %s3275_s25 = sadd.s32 4294967295, %s3503_s24   ;;  %p3279_p0 = scmp.ge.s32.totalorder %s3503_s24, 1  ;;  %s3503_s24 = sphi %s3557_s24, %s17_s24  }
   0x2   : > { %p239_p1 = scmp.lt.s32.totalorder %s3503_s24, 3 }
   0x4   : > { %p240_p2 = pnand %p3279_p0, %p239_p1 }
   0x6   : > { %243 = sbr.rel (%p240_p2) target bundleno = 2120 (0x848), region = 48 }
   0xb   : > { %s3280_s26 = sshll.u32 %s3275_s25, 1  ;;  %vm337_vm0 = vcmask 130048   ;;  %v3505_v44 = vmov 0   ;;  %v4837_v61 = vmov 1   ;;  %v3623_v62 = vld [vmem:[%s4830_s1 + $0x8] sm:$0xff]  ;;  %s3507_s12 = smov 1  }
   0xc   : > { %p274_p3 = scmp.lt.s32.totalorder %s3280_s26, 3  ;;  %3431 = vset.pattern.permute.xlu1 %v3505_v44  ;;  %3432 = vset.pattern.permute.xlu0 %v4837_v61  ;;  %s3509_s8 = smov 107  }
   0xd   : > { %s3510_s11 = smov 109   ;;  %s3511_s13 = smov 127  }
   0xe   : > { %s5058_s26 = smov (!%p274_p3, %s3280_s26), 3  ;;  %s3512_s14 = smov 19  }
   0xf   : > { %s3409_s27 = sshll.u32 %s5058_s26, 6  ;;  %s3513_s15 = smov 21  }
  0x10   : > { %s3573_s30 = scalar_lea.vmem %s4829_s0, %s3409_s27  ;;  %s3514_s28 = smov 20  }
  0x11   : > { %v3576_v0 = vld [vmem:[%s3573_s30 + $0x20] sm:$0xff]  ;;  %v3579_v1 = vld [vmem:[%s3573_s30 + $0x28] sm:$0xff]  ;;  %v3582_v2 = vld [vmem:[%s3573_s30 + $0x30] sm:$0xff]  ;;  %s3516_s10 = smov 108  }
  0x12   : > { %4918 = vst [vmem:[#allocation3_spill] sm:$0xff] %v3576_v0  ;;  %4919 = vst [vmem:[#allocation4_spill] sm:$0xff] %v3579_v1  ;;  %v3585_v3 = vld [vmem:[%s3573_s30 + $0x38] sm:$0xff]  ;;  %v342_v4 = vadd.f32 %v3579_v1, %v3576_v0  ;;  %v3590_v5 = vld [vmem:[%s3573_s30] sm:$0xff] }
  0x13   : > { %4920 = vst [vmem:[#allocation5_spill] sm:$0xff] %v3582_v2  ;;  %4921 = vst [vmem:[#allocation6_spill] sm:$0xff] %v3585_v3  ;;  %v3593_v6 = vld [vmem:[%s3573_s30 + $0x8] sm:$0xff]  ;;  %v344_v7 = vsel %vm337_vm0, %v3585_v3, 0.0  ;;  %v3598_v8 = vld [vmem:[%s3573_s30 + $0x10] sm:$0xff] }
  0x14   : > { %4922 = vst [vmem:[#allocation7_spill] sm:$0xff] %v3590_v5  ;;  %4923 = vst [vmem:[#allocation8_spill] sm:$0xff] %v3593_v6  ;;  %v3601_v9 = vld [vmem:[%s3573_s30 + $0x18] sm:$0xff]  ;;  %v335_v10 = vadd.f32 %v3593_v6, %v3590_v5  ;;  %v343_v11 = vadd.f32 %v342_v4, %v3582_v2 }
  0x15   : > { %4924 = vst [vmem:[#allocation9_spill] sm:$0xff] %v3598_v8  ;;  %4925 = vst [vmem:[#allocation10_spill] sm:$0xff] %v3601_v9  ;;  %v338_v13 = vsel %vm337_vm0, %v3601_v9, 0.0 }
  0x16   : > { %v336_v12 = vadd.f32 %v335_v10, %v3598_v8  ;;  %v345_v14 = vadd.f32 %v344_v7, %v343_v11  ;;  %v3629_v7 = vld [vmem:[%s4830_s1] sm:$0xff] }
  0x17   : > { %4926 = vst [vmem:[#allocation11_spill] sm:$0xff] %v3629_v7 }
  0x18   : > { %346 = vadd.xlane.f32.xlu0 %v345_v14  ;;  %v339_v15 = vadd.f32 %v338_v13, %v336_v12 }
  0x1c   : > { %340 = vadd.xlane.f32.xlu0 %v339_v15 }
  0xa1   : > { %v347_v16 = vpop.xlane.xlu0 %346 }
  0xa2   : > { %v349_v17 = vmul.f32 0.0025, %v347_v16 }
  0xa4   : > { %v354_v18 = vsub.f32 %v3576_v0, %v349_v17  ;;  %v355_v19 = vsub.f32 %v3579_v1, %v349_v17  ;;  %v356_v20 = vsub.f32 %v3582_v2, %v349_v17  ;;  %v357_v21 = vsub.f32 %v3585_v3, %v349_v17 }
  0xa5   : > { %v341_v22 = vpop.xlane.xlu0 %340 }
  0xa6   : > { %v348_v23 = vmul.f32 0.0025, %v341_v22  ;;  %v362_v24 = vmul.f32 %v354_v18, %v354_v18  ;;  %v363_v25 = vmul.f32 %v355_v19, %v355_v19  ;;  %v364_v26 = vmul.f32 %v356_v20, %v356_v20  ;;  %v3649_v22 = vld [vmem:[%s3573_s30 + $0x48] sm:$0xff] }
  0xa7   : > { %v365_v27 = vmul.f32 %v357_v21, %v357_v21  ;;  %v4839_v20 = vmov 0.0   ;;  %v3646_v21 = vld [vmem:[%s3573_s30 + $0x40] sm:$0xff]  ;;  %4928 = vst [vmem:[#allocation13_spill] sm:$0xff] %v3649_v22 }
  0xa8   : > { %v372_v28 = vadd.f32 %v363_v25, %v362_v24  ;;  %v350_v29 = vsub.f32 %v3590_v5, %v348_v23  ;;  %v351_v30 = vsub.f32 %v3593_v6, %v348_v23  ;;  %v352_v31 = vsub.f32 %v3598_v8, %v348_v23  ;;  %291 = vst [vmem:[#allocation2 + $0xa0] sm:$0xff] %v4839_v20  ;;  %v3654_v24 = vld [vmem:[%s3573_s30 + $0x50] sm:$0xff]  ;;  %v3657_v25 = vld [vmem:[%s3573_s30 + $0x58] sm:$0xff] }
  0xa9   : > { %v353_v32 = vsub.f32 %v3601_v9, %v348_v23  ;;  %v374_v36 = vsel %vm337_vm0, %v365_v27, 0.0  ;;  %546 = vmatprep.mubr.f32.mxu0 %v4839_v20  ;;  %299 = vst [vmem:[#allocation2 + $0x98] sm:$0xff] %v4839_v20  ;;  %301 = vst [vmem:[#allocation2 + $0xe8] sm:$0xff] %v4839_v20  ;;  %635 = vmatprep.mubr.f32.mxu1 %v4839_v20  ;;  %v1852_v27 = vsel %vm337_vm0, %v3657_v25, 0.0 }
  0xaa   : > { %v373_v33 = vadd.f32 %v372_v28, %v364_v26  ;;  %v358_v34 = vmul.f32 %v350_v29, %v350_v29  ;;  %v359_v35 = vmul.f32 %v351_v30, %v351_v30  ;;  %v360_v39 = vmul.f32 %v352_v31, %v352_v31  ;;  %302 = vst [vmem:[#allocation2 + $0x110] sm:$0xff] %v4839_v20  ;;  %v3663_v28 = vld [vmem:[%s3573_s30 + $0x60] sm:$0xff]  ;;  %v3666_v29 = vld [vmem:[%s3573_s30 + $0x68] sm:$0xff] }
  0xab   : > { %v361_v37 = vmul.f32 %v353_v32, %v353_v32  ;;  %303 = vst [vmem:[#allocation2 + $0x138] sm:$0xff] %v4839_v20  ;;  %304 = vst [vmem:[#allocation2 + $0x160] sm:$0xff] %v4839_v20  ;;  %v1856_v31 = vadd.f32 %v3666_v29, %v3663_v28  ;;  %v3671_v32 = vld [vmem:[%s3573_s30 + $0x70] sm:$0xff] }
  0xac   : > { %v375_v38 = vadd.f32 %v374_v36, %v373_v33  ;;  %v366_v40 = vadd.f32 %v359_v35, %v358_v34  ;;  %4927 = vst [vmem:[#allocation12_spill] sm:$0xff] %v3646_v21  ;;  %4929 = vst [vmem:[#allocation14_spill] sm:$0xff] %v3654_v24  ;;  %v3674_v33 = vld [vmem:[%s3573_s30 + $0x78] sm:$0xff] }
  0xad   : > { %v368_v42 = vsel %vm337_vm0, %v361_v37, 0.0  ;;  %4930 = vst [vmem:[#allocation15_spill] sm:$0xff] %v3657_v25  ;;  %4931 = vst [vmem:[#allocation16_spill] sm:$0xff] %v3663_v28  ;;  %v1857_v34 = vadd.f32 %v3671_v32, %v1856_v31  ;;  %v1858_v35 = vsel %vm337_vm0, %v3674_v33, 0.0 }
  0xae   : > { %376 = vadd.xlane.f32.xlu1 %v375_v38  ;;  %v367_v41 = vadd.f32 %v366_v40, %v360_v39  ;;  %4932 = vst [vmem:[#allocation17_spill] sm:$0xff] %v3666_v29  ;;  %4933 = vst [vmem:[#allocation18_spill] sm:$0xff] %v3671_v32 }
  0xaf   : > { %4934 = vst [vmem:[#allocation19_spill] sm:$0xff] %v3674_v33  ;;  %v1859_v36 = vadd.f32 %v1858_v35, %v1857_v34 }
  0xb0   : > { %v369_v43 = vadd.f32 %v368_v42, %v367_v41 }
  0xb2   : > { %370 = vadd.xlane.f32.xlu1 %v369_v43 }
 0x137   : > { %v377_v45 = vpop.xlane.xlu1 %376 }
 0x138   : > { %v379_v46 = vmul.f32 0.0025062656, %v377_v45 }
 0x13a   : > { %3443 = vrsqrt.f32 %v379_v46  ;;  %vm389_vm1 = vcmp.eq.f32.partialorder %v379_v46, inf  ;;  %v392_v51 = vand.u32 2147483648, %v379_v46  ;;  %vm391_vm2 = vcmp.eq.f32.partialorder %v379_v46, 0.0 }
 0x13b   : > { %v371_v47 = vpop.xlane.xlu1 %370 }
 0x13c   : > { %v378_v48 = vmul.f32 0.0025062656, %v371_v47 }
 0x13e   : > { %3445 = vrsqrt.f32 %v378_v48  ;;  %vm382_vm3 = vcmp.eq.f32.partialorder %v378_v48, inf  ;;  %v385_v57 = vand.u32 2147483648, %v378_v48  ;;  %vm384_vm4 = vcmp.eq.f32.partialorder %v378_v48, 0.0 }
 0x147   : > { %v3444_v49 = vpop.eup %3443 }
 0x148   : > { %v388_v50 = vmul.f32 %v3444_v49, %v379_v46 }
 0x14a   : > { %v390_v52 = vsel %vm389_vm1, %v379_v46, %v388_v50 }
 0x14b   : > { %v3446_v53 = vpop.eup %3445  ;;  %v393_v54 = vsel %vm391_vm2, %v392_v51, %v390_v52 }
 0x14c   : > { %v381_v55 = vmul.f32 %v3446_v53, %v378_v48  ;;  %v395_v56 = vadd.f32 1e-10, %v393_v54 }
 0x14e   : > { %v383_v58 = vsel %vm382_vm3, %v378_v48, %v381_v55  ;;  %3447 = vrcp.f32 %v395_v56 }
 0x14f   : > { %v386_v59 = vsel %vm384_vm4, %v385_v57, %v383_v58  ;;  %v3725_v57 = vld [vmem:[%s4831_s2] sm:$0xff]  ;;  %v3749_v58 = vld [vmem:[%s4831_s2 + $0x8] sm:$0xff] }
 0x150   : > { %v394_v60 = vadd.f32 1e-10, %v386_v59  ;;  %4943 = vst [vmem:[#allocation28_spill] sm:$0xff] %v3725_v57  ;;  %4944 = vst [vmem:[#allocation29_spill] sm:$0xff] %v3749_v58  ;;  %v3760_v59 = vld [vmem:[%s4831_s2 + $0x10] sm:$0xff] }
 0x151   : > { %4945 = vst [vmem:[#allocation30_spill] sm:$0xff] %v3760_v59 }
 0x152   : > { %3449 = vrcp.f32 %v394_v60  ;;  %v3771_v60 = vld [vmem:[%s4831_s2 + $0x18] sm:$0xff] }
 0x153   : > { %4946 = vst [vmem:[#allocation31_spill] sm:$0xff] %v3771_v60 }
 0x15b   : > { %v3448_v63 = vpop.eup %3447 }
 0x15c   : > { %v399_v4 = vmul.f32 %v3448_v63, %v3623_v62 }
 0x15e   : > { %v421_v10 = vmul.f32 %v399_v4, %v349_v17  ;;  %v401_v14 = vadd.f32 1.0, %v399_v4 }
 0x15f   : > { %v3450_v11 = vpop.eup %3449 }
 0x160   : > { %426 = vrot.lane.b32.xlu0 %v421_v10, %s3507_s12  ;;  %v397_v12 = vmul.f32 %v3450_v11, %v3629_v7 }
 0x162   : > { %v420_v13 = vmul.f32 %v397_v12, %v348_v23  ;;  %v400_v15 = vadd.f32 1.0, %v397_v12  ;;  %v1850_v23 = vadd.f32 %v3649_v22, %v3646_v21 }
 0x164   : > { %424 = vrot.lane.b32.xlu1 %v420_v13, %s3507_s12  ;;  %v1851_v26 = vadd.f32 %v3654_v24, %v1850_v23 }
 0x166   : > { %v1853_v30 = vadd.f32 %v1852_v27, %v1851_v26 }
 0x168   : > { %409 = vperm.xlu1 %3431, %v401_v14  }
 0x16c   : > { %404 = vperm.xlu1 %3431, %v400_v15  }
 0x170   : > { %3433 = vset.pattern.permute.xlu1 %v4837_v61 }
 0x1d2   : > { %v427_v16 = vpop.permute.xlu0 %426 }
 0x1d3   : > { %v431_v18 = vsub.f32 %v3623_v62, %v427_v16 }
 0x1d5   : > { %439 = vperm.xlu0 %3432, %v431_v18  }
 0x1d6   : > { %v425_v17 = vpop.permute.xlu1 %424 }
 0x1d7   : > { %v430_v19 = vsub.f32 %v3629_v7, %v425_v17 }
 0x1d9   : > { %434 = vperm.xlu1 %3433, %v430_v19  }
 0x1dd   : > { %3434 = vset.pattern.permute.xlu1 %v3505_v44 }
 0x1e3   : > { %v410_v37 = vpop.permute.xlu1 %409 }
 0x1e4   : > { %v417_v39 = vmul.f32 %v410_v37, %v3579_v1  ;;  %v419_v40 = vmul.f32 %v410_v37, %v3585_v3  ;;  %v416_v41 = vmul.f32 %v410_v37, %v3576_v0  ;;  %v418_v42 = vmul.f32 %v410_v37, %v3582_v2 }
 0x1e7   : > { %v405_v38 = vpop.permute.xlu1 %404 }
 0x1e8   : > { %v413_v48 = vmul.f32 %v405_v38, %v3593_v6  ;;  %v415_v49 = vmul.f32 %v405_v38, %v3601_v9  ;;  %v412_v50 = vmul.f32 %v405_v38, %v3590_v5  ;;  %v414_v52 = vmul.f32 %v405_v38, %v3598_v8 }
 0x1f4   : > { %1854 = vadd.xlane.f32.xlu0 %v1853_v30 }
 0x1fd   : > { %1860 = vadd.xlane.f32.xlu1 %v1859_v36 }
 0x250   : > { %v440_v43 = vpop.permute.xlu0 %439 }
 0x251   : > { %v3683_v44 = vadd.f32 %v440_v43, %v417_v39  ;;  %v3685_v45 = vadd.f32 %v440_v43, %v419_v40  ;;  %v3687_v46 = vadd.f32 %v440_v43, %v416_v41  ;;  %v3689_v47 = vadd.f32 %v440_v43, %v418_v42 }
 0x253   : > { %4935 = vst [vmem:[#allocation20_spill] sm:$0xff] %v3683_v44  ;;  %4936 = vst [vmem:[#allocation21_spill] sm:$0xff] %v3685_v45  ;;  %vm455_vm5 = vcmp.ge.f32.partialorder %v3683_v44, 0.0  ;;  %vm457_vm6 = vcmp.ge.f32.partialorder %v3685_v45, 0.0  ;;  %vm454_vm7 = vcmp.ge.f32.partialorder %v3687_v46, 0.0  ;;  %vm456_vm8 = vcmp.ge.f32.partialorder %v3689_v47, 0.0 }
 0x254   : > { %4937 = vst [vmem:[#allocation22_spill] sm:$0xff] %v3687_v46  ;;  %4938 = vst [vmem:[#allocation23_spill] sm:$0xff] %v3689_v47  ;;  %v435_v51 = vpop.permute.xlu1 %434  ;;  %3295 = vmatprep.subr.msk.mxu0 %vm455_vm5, %v3579_v1  ;;  %3303 = vmatprep.subr.msk.mxu1 %vm457_vm6, %v3585_v3 }
 0x255   : > { %3296 = vmatpush1.msk.msra.mxu0 %vm454_vm7, %v3576_v0  ;;  %3304 = vmatpush1.msk.msra.mxu1 %vm456_vm8, %v3582_v2  ;;  %v3711_v53 = vadd.f32 %v435_v51, %v413_v48  ;;  %v3713_v54 = vadd.f32 %v435_v51, %v415_v49  ;;  %v3715_v55 = vadd.f32 %v435_v51, %v412_v50 }
 0x256   : > { %v3717_v56 = vadd.f32 %v435_v51, %v414_v52 }
 0x257   : > { %4939 = vst [vmem:[#allocation24_spill] sm:$0xff] %v3711_v53  ;;  %4940 = vst [vmem:[#allocation25_spill] sm:$0xff] %v3713_v54  ;;  %vm451_vm9 = vcmp.ge.f32.partialorder %v3711_v53, 0.0  ;;  %vm453_vm10 = vcmp.ge.f32.partialorder %v3713_v54, 0.0  ;;  %vm450_vm11 = vcmp.ge.f32.partialorder %v3715_v55, 0.0 }
 0x258   : > { %4941 = vst [vmem:[#allocation26_spill] sm:$0xff] %v3715_v55  ;;  %4942 = vst [vmem:[#allocation27_spill] sm:$0xff] %v3717_v56  ;;  %3297 = vmatprep.subr.msk.mxu0 %vm451_vm9, %v3593_v6  ;;  %3305 = vmatprep.subr.msk.mxu1 %vm453_vm10, %v3601_v9  ;;  %vm452_vm12 = vcmp.ge.f32.partialorder %v3717_v56, 0.0 }
 0x259   : > { %3298 = vmatpush1.msk.msra.mxu0 %vm450_vm11, %v3590_v5  ;;  %3306 = vmatpush1.msk.msra.mxu1 %vm452_vm12, %v3598_v8 }
 0x25a   : > { %3299 = vmatmul.mubr.msk.f32.vlgmr.msra.gmra.mxu0 %vm337_vm0, %v3725_v57  ;;  %3307 = vmatmul.mubr.msk.f32.vlgmr.msra.gmra.mxu1 %vm337_vm0, %v3725_v57  ;;  %v314_v57 = vld [vmem:[%s4832_s3 + $0x38] sm:$0xff] }
 0x25b   : > { %552 = vmatprep.mubr.f32.mxu0 %v4839_v20  ;;  %641 = vmatprep.mubr.f32.mxu1 %v4839_v20 }
 0x25e   : > { %3300 = vmatmul.mubr.msk.f32.gmra.mxu0 %vm337_vm0, %v3749_v58  ;;  %3308 = vmatmul.mubr.msk.f32.gmra.mxu1 %vm337_vm0, %v3749_v58 }
 0x25f   : > { %558 = vmatprep.mubr.f32.mxu0 %v4839_v20  ;;  %647 = vmatprep.mubr.f32.mxu1 %v4839_v20 }
 0x262   : > { %3301 = vmatmul.mubr.msk.f32.gmra.mxu0 %vm337_vm0, %v3760_v59  ;;  %3309 = vmatmul.mubr.msk.f32.gmra.mxu1 %vm337_vm0, %v3760_v59 }
 0x263   : > { %564 = vmatprep.mubr.f32.mxu0 %v4839_v20  ;;  %653 = vmatprep.mubr.f32.mxu1 %v4839_v20 }
 0x266   : > { %3302 = vmatmul.mubr.msk.f32.gmra.mxu0 %vm337_vm0, %v3771_v60  ;;  %3310 = vmatmul.mubr.msk.f32.gmra.mxu1 %vm337_vm0, %v3771_v60  ;;  %v3289_v60 = vld [vmem:[%s4832_s3 + $0x58] sm:$0xff] }
 0x267   : > { %783 = vmatprep.mubr.f32.mxu0 %v4839_v20  ;;  %860 = vmatprep.mubr.f32.mxu1 %v4839_v20 }
 0x27d   : > { %v1855_v63 = vpop.xlane.xlu0 %1854 }
 0x27e   : > { %v3779_v4 = vmul.f32 0.0025, %v1855_v63 }
 0x280   : > { %4947 = vst [vmem:[#allocation32_spill] sm:$0xff] %v3779_v4  ;;  %v1864_v10 = vsub.f32 %v3646_v21, %v3779_v4  ;;  %v1865_v11 = vsub.f32 %v3649_v22, %v3779_v4  ;;  %v1866_v14 = vsub.f32 %v3654_v24, %v3779_v4  ;;  %v1867_v26 = vsub.f32 %v3657_v25, %v3779_v4 }
 0x282   : > { %v1872_v15 = vmul.f32 %v1864_v10, %v1864_v10  ;;  %v1873_v16 = vmul.f32 %v1865_v11, %v1865_v11  ;;  %v1874_v36 = vmul.f32 %v1866_v14, %v1866_v14  ;;  %v1875_v38 = vmul.f32 %v1867_v26, %v1867_v26 }
 0x284   : > { %v1880_v37 = vadd.f32 %v1873_v16, %v1872_v15  ;;  %v1882_v43 = vsel %vm337_vm0, %v1875_v38, 0.0 }
 0x286   : > { %v1861_v12 = vpop.xlane.xlu1 %1860  ;;  %v1881_v42 = vadd.f32 %v1880_v37, %v1874_v36  ;;  %v3292_v36 = vld [vmem:[%s4832_s3 + $0x70] sm:$0xff] }
 0x287   : > { %v3785_v13 = vmul.f32 0.0025, %v1861_v12 }
 0x288   : > { %v1883_v48 = vadd.f32 %v1882_v43, %v1881_v42 }
 0x289   : > { %v1868_v18 = vsub.f32 %v3663_v28, %v3785_v13  ;;  %v1869_v17 = vsub.f32 %v3666_v29, %v3785_v13  ;;  %v1870_v19 = vsub.f32 %v3671_v32, %v3785_v13  ;;  %v1871_v23 = vsub.f32 %v3674_v33, %v3785_v13 }
 0x28b   : > { %v1876_v27 = vmul.f32 %v1868_v18, %v1868_v18  ;;  %v1877_v30 = vmul.f32 %v1869_v17, %v1869_v17  ;;  %v1879_v31 = vmul.f32 %v1871_v23, %v1871_v23  ;;  %v1878_v34 = vmul.f32 %v1870_v19, %v1870_v19  ;;  %v307_v18 = vld [vmem:[%s4832_s3] sm:$0xff] }
 0x28c   : > { %v3810_v17 = vld [vmem:[%s4832_s3 + $0x40] sm:$0xff] }
 0x28d   : > { %v1886_v35 = vadd.f32 %v1877_v30, %v1876_v27  ;;  %v1888_v40 = vsel %vm337_vm0, %v1879_v31, 0.0  ;;  %v309_v27 = vld [vmem:[%s4832_s3 + $0x10] sm:$0xff]  ;;  %v311_v31 = vld [vmem:[%s4832_s3 + $0x20] sm:$0xff] }
 0x28e   : > { %v3824_v30 = vld [vmem:[%s4832_s3 + $0x50] sm:$0xff] }
 0x28f   : > { %v1887_v39 = vadd.f32 %v1886_v35, %v1878_v34  ;;  %v3290_v34 = vld [vmem:[%s4832_s3 + $0x60] sm:$0xff]  ;;  %v313_v35 = vld [vmem:[%s4832_s3 + $0x30] sm:$0xff] }
 0x291   : > { %v1889_v41 = vadd.f32 %v1888_v40, %v1887_v39  ;;  %v308_v39 = vld [vmem:[%s4832_s3 + $0x8] sm:$0xff] }
 0x292   : > { %v3291_v40 = vld [vmem:[%s4832_s3 + $0x68] sm:$0xff] }
 0x293   : > { %1890 = vadd.xlane.f32.xlu0 %v1889_v41  ;;  %v3293_v41 = vld [vmem:[%s4832_s3 + $0x78] sm:$0xff] }
 0x297   : > { %1884 = vadd.xlane.f32.xlu0 %v1883_v48 }
 0x31a   : > { %v548_v49 = vpop.f32.mrf.mxu0  ;;  %v637_v50 = vpop.f32.mrf.mxu1 }
 0x31b   : > { %v3852_v42 = vmul.f32 %v548_v49, %v307_v18  ;;  %v684_v43 = vmul.f32 %v3810_v17, %v548_v49  ;;  %v3855_v48 = vmul.f32 %v637_v50, %v309_v27  ;;  %v312_v49 = vld [vmem:[%s4832_s3 + $0x28] sm:$0xff]  ;;  %v686_v22 = vmul.f32 %v3824_v30, %v637_v50 }
 0x31c   : > { %v550_v51 = vpop.f32.mrf.mxu0  ;;  %v639_v52 = vpop.f32.mrf.mxu1 }
 0x31d   : > { %v1891_v63 = vpop.xlane.xlu0 %1890  ;;  %v3873_v21 = vmul.f32 %v550_v51, %v308_v39  ;;  %v687_v54 = vmul.f32 %v3289_v60, %v639_v52 }
 0x31e   : > { %v3801_v10 = vmul.f32 0.0025062656, %v1891_v63  ;;  %v554_v11 = vpop.f32.mrf.mxu0  ;;  %v643_v12 = vpop.f32.mrf.mxu1  ;;  %v3287_v63 = vld [vmem:[%s4832_s3 + $0x48] sm:$0xff] }
 0x31f   : > { %v688_v59 = vmul.f32 %v3290_v34, %v554_v11  ;;  %v690_v58 = vmul.f32 %v3292_v36, %v643_v12  ;;  %v685_v56 = vmul.f32 %v3287_v63, %v550_v51  ;;  %v664_v47 = vmul.f32 %v554_v11, %v311_v31 }
 0x320   : > { %3451 = vrsqrt.f32 %v3801_v10  ;;  %v556_v14 = vpop.f32.mrf.mxu0  ;;  %v645_v15 = vpop.f32.mrf.mxu1  ;;  %v666_v1 = vmul.f32 %v643_v12, %v313_v35  ;;  %vm1903_vm13 = vcmp.eq.f32.partialorder %v3801_v10, inf  ;;  %vm1905_vm14 = vcmp.eq.f32.partialorder %v3801_v10, 0.0  ;;  %v4949_v12 = vld [vmem:[#allocation11_spill] sm:$0xff] }
 0x321   : > { %v1885_v16 = vpop.xlane.xlu0 %1884  ;;  %v689_v33 = vmul.f32 %v3291_v40, %v556_v14  ;;  %v691_v29 = vmul.f32 %v3293_v41, %v645_v15  ;;  %v667_v0 = vmul.f32 %v645_v15, %v314_v57  ;;  %v665_v4 = vmul.f32 %v556_v14, %v312_v49 }
 0x322   : > { %v3812_v19 = vmul.f32 0.0025062656, %v1885_v16  ;;  %v3814_v23 = vpop.f32.mrf.mxu0  ;;  %v3816_v26 = vpop.f32.mrf.mxu1  ;;  %v310_v16 = vld [vmem:[%s4832_s3 + $0x18] sm:$0xff] }
 0x323   : > { %v3875_v8 = vmul.f32 %v639_v52, %v310_v16  ;;  %v692_v55 = vmul.f32 %v3814_v23, %v307_v18  ;;  %v694_v50 = vmul.f32 %v3816_v26, %v309_v27 }
 0x324   : > { %3453 = vrsqrt.f32 %v3812_v19  ;;  %v3839_v37 = vpop.f32.mrf.mxu0  ;;  %v3841_v38 = vpop.f32.mrf.mxu1  ;;  %vm1896_vm15 = vcmp.eq.f32.partialorder %v3812_v19, inf  ;;  %vm1898_vm1 = vcmp.eq.f32.partialorder %v3812_v19, 0.0 }
 0x325   : > { %v693_v5 = vmul.f32 %v3839_v37, %v308_v39  ;;  %v695_v9 = vmul.f32 %v3841_v38, %v310_v16  ;;  %v700_v18 = vadd.f32 %v692_v55, %v684_v43 }
 0x326   : > { %v566_v61 = vpop.f32.mrf.mxu0  ;;  %v655_v20 = vpop.f32.mrf.mxu1 }
 0x327   : > { %v696_v25 = vmul.f32 %v566_v61, %v311_v31  ;;  %v698_v24 = vmul.f32 %v655_v20, %v313_v35  ;;  %v701_v7 = vadd.f32 %v693_v5, %v685_v56  ;;  %v703_v39 = vadd.f32 %v695_v9, %v687_v54 }
 0x328   : > { %v568_v32 = vpop.f32.mrf.mxu0  ;;  %v657_v28 = vpop.f32.mrf.mxu1  ;;  %v668_v9 = vmul.f32 %v3810_v17, %v3814_v23  ;;  %v4950_v17 = vld [vmem:[#allocation32_spill] sm:$0xff] }
 0x329   : > { %v697_v53 = vmul.f32 %v568_v32, %v312_v49  ;;  %v699_v6 = vmul.f32 %v657_v28, %v314_v57  ;;  %v704_v2 = vadd.f32 %v696_v25, %v688_v59  ;;  %v706_v46 = vadd.f32 %v698_v24, %v690_v58 }
 0x32a   : > { %v675_v3 = vmul.f32 %v3293_v41, %v657_v28  ;;  %v673_v16 = vmul.f32 %v3291_v40, %v568_v32  ;;  %v1906_v25 = vand.u32 2147483648, %v3801_v10  ;;  %v702_v24 = vadd.f32 %v694_v50, %v686_v22 }
 0x32b   : > { %v705_v45 = vadd.f32 %v697_v53, %v689_v33  ;;  %v707_v51 = vadd.f32 %v699_v6, %v691_v29  ;;  %v672_v57 = vmul.f32 %v3290_v34, %v566_v61  ;;  %v674_v33 = vmul.f32 %v3292_v36, %v655_v20  ;;  %v3311_v6 = vld [vmem:[%s4833_s4 + $0x10] sm:$0xff]  ;;  %v3312_v53 = vld [vmem:[%s4833_s4 + $0x18] sm:$0xff] }
 0x32c   : > { %v683_v28 = vsub.f32 %v667_v0, %v675_v3  ;;  %v669_v61 = vmul.f32 %v3287_v63, %v3839_v37  ;;  %v670_v32 = vmul.f32 %v3824_v30, %v3816_v26  ;;  %v1899_v3 = vand.u32 2147483648, %v3812_v19  ;;  %v324_v37 = vld [vmem:[%s4835_s6] ss:$2 sm:$0xf] }
 0x32d   : > { %v3452_v44 = vpop.eup %3451  ;;  %747 = vmatprep.subr.mxu0 %v705_v45  ;;  %824 = vmatprep.subr.mxu1 %v707_v51  ;;  %v682_v45 = vsub.f32 %v666_v1, %v674_v33  ;;  %v676_v56 = vsub.f32 %v3852_v42, %v668_v9  ;;  %v4951_v26 = vmov 1   ;;  %v1388_v34 = vlaneseq }
 0x32e   : > { %v1902_v52 = vmul.f32 %v3452_v44, %v3801_v10  ;;  %748 = vmatpush1.msra.mxu0 %v704_v2  ;;  %825 = vmatpush1.msra.mxu1 %v706_v46  ;;  %v671_v2 = vmul.f32 %v3289_v60, %v3841_v38  ;;  %v681_v44 = vsub.f32 %v665_v4, %v673_v16  ;;  %v4948_v46 = vmov 0.0  }
 0x32f   : > { %749 = vmatprep.subr.mxu0 %v701_v7  ;;  %826 = vmatprep.subr.mxu1 %v703_v39  ;;  %v680_v7 = vsub.f32 %v664_v47, %v672_v57  ;;  %v677_v55 = vsub.f32 %v3873_v21, %v669_v61  ;;  %v678_v59 = vsub.f32 %v3855_v48, %v670_v32  ;;  %v708_v21 = vld [vmem:[%s4833_s4] sm:$0xff]  ;;  %v1389_v35 = vshrl.u32 %v1388_v34, 7  ;;  %v4964_v34 = vld [vmem:[#allocation7_spill] sm:$0xff] }
 0x330   : > { %v1904_v5 = vsel %vm1903_vm13, %v3801_v10, %v1902_v52  ;;  %750 = vmatpush1.msra.mxu0 %v700_v18  ;;  %827 = vmatpush1.msra.mxu1 %v702_v24  ;;  %v679_v47 = vsub.f32 %v3875_v8, %v671_v2  ;;  %v709_v8 = vld [vmem:[%s4833_s4 + $0x8] sm:$0xff]  ;;  %vm1583_vm13 = vcmask 7168  }
 0x331   : > { %v3454_v29 = vpop.eup %3453  ;;  %v1907_v20 = vsel %vm1905_vm14, %v1906_v25, %v1904_v5  ;;  %3313 = vmatmul.mubr.msk.f32.vlgmr.msra.gmra.mxu0 %vm337_vm0, %v3311_v6  ;;  %3315 = vmatmul.mubr.msk.f32.vlgmr.msra.gmra.mxu1 %vm337_vm0, %v3311_v6  ;;  %v1390_v36 = vsub.s32 0, %v1389_v35  ;;  %v1398_v40 = vsub.s32 2, %v1389_v35  ;;  %v1394_v42 = vsub.s32 1, %v1389_v35 }
 0x332   : > { %v1895_v22 = vmul.f32 %v3454_v29, %v3812_v19  ;;  %v1909_v0 = vadd.f32 1e-10, %v1907_v20  ;;  %789 = vmatprep.mubr.f32.mxu0 %v4948_v46  ;;  %866 = vmatprep.mubr.f32.mxu1 %v4948_v46  ;;  %v1402_v43 = vsub.s32 3, %v1389_v35  ;;  %vm1529_vm14 = vcmask 154624  }
 0x333   : > { %907 = vmatprep.subr.mxu0 %v681_v44  ;;  %984 = vmatprep.subr.mxu1 %v683_v28  ;;  %v1391_v38 = vrot.slane %v324_v37, %v1390_v36  ;;  %v1399_v41 = vrot.slane %v324_v37, %v1398_v40  ;;  %v1395_v63 = vrot.slane %v324_v37, %v1394_v42 }
 0x334   : > { %v1897_v54 = vsel %vm1896_vm15, %v3812_v19, %v1895_v22  ;;  %3455 = vrcp.f32 %v1909_v0  ;;  %908 = vmatpush1.msra.mxu0 %v680_v7  ;;  %985 = vmatpush1.msra.mxu1 %v682_v45  ;;  %v1403_v49 = vrot.slane %v324_v37, %v1402_v43  ;;  %v4966_v37 = vld [vmem:[#allocation9_spill] sm:$0xff]  ;;  %vm1436_vm15 = vcmask 171008  }
 0x335   : > { %v1900_v1 = vsel %vm1898_vm1, %v1899_v3, %v1897_v54  ;;  %3314 = vmatmul.mubr.msk.f32.gmra.mxu0 %vm337_vm0, %v3312_v53  ;;  %3316 = vmatmul.mubr.msk.f32.gmra.mxu1 %vm337_vm0, %v3312_v53  ;;  %v4952_v53 = vld [vmem:[#allocation4_spill] sm:$0xff]  ;;  %vm1464_vm1 = vcmask 162816  }
 0x336   : > { %v1908_v58 = vadd.f32 1e-10, %v1900_v1  ;;  %909 = vmatprep.subr.mxu0 %v677_v55  ;;  %986 = vmatprep.subr.mxu1 %v679_v47  ;;  %v463_v55 = vsel %vm455_vm5, %v4952_v53, 0.0  ;;  %v4954_v47 = vld [vmem:[#allocation6_spill] sm:$0xff]  ;;  %v4976_v53 = vld [vmem:[#allocation13_spill] sm:$0xff]  ;;  %v4978_v1 = vld [vmem:[#allocation15_spill] sm:$0xff] }
 0x337   : > { %910 = vmatpush1.msra.mxu0 %v676_v56  ;;  %943 = vmatprep.mubr.f32.mxu0 %v4948_v46  ;;  %v465_v56 = vsel %vm457_vm6, %v4954_v47, 0.0 }
 0x338   : > { %3457 = vrcp.f32 %v1908_v58  ;;  %987 = vmatpush1.msra.mxu1 %v678_v59  ;;  %1020 = vmatprep.mubr.f32.mxu1 %v4948_v46 }
 0x339   : > { %3317 = vmatmul.mubr.msk.f32.vlgmr.msra.gmra.mxu0 %vm337_vm0, %v708_v21  ;;  %3319 = vmatmul.mubr.msk.f32.vlgmr.msra.gmra.mxu1 %vm337_vm0, %v708_v21  ;;  %v4956_v21 = vld [vmem:[#allocation3_spill] sm:$0xff] }
 0x33a   : > { %949 = vmatprep.mubr.f32.mxu0 %v4948_v46  ;;  %1026 = vmatprep.mubr.f32.mxu1 %v4948_v46 }
 0x33d   : > { %3318 = vmatmul.mubr.msk.f32.gmra.mxu0 %vm337_vm0, %v709_v8  ;;  %3320 = vmatmul.mubr.msk.f32.gmra.mxu1 %vm337_vm0, %v709_v8 }
 0x33e   : > { %1149 = vmatprep.mubr.f32.mxu0 %v4948_v46  ;;  %1280 = vmatprep.mubr.f32.mxu1 %v4948_v46 }
 0x341   : > { %v3456_v60 = vpop.eup %3455 }
 0x342   : > { %v1913_v4 = vmul.f32 %v3456_v60, %v3623_v62  ;;  %v462_v60 = vsel %vm454_vm7, %v4956_v21, 0.0 }
 0x344   : > { %v1935_v10 = vmul.f32 %v1913_v4, %v3785_v13  ;;  %v1915_v15 = vadd.f32 1.0, %v1913_v4  ;;  %v4958_v4 = vld [vmem:[#allocation5_spill] sm:$0xff] }
 0x345   : > { %v3458_v11 = vpop.eup %3457 }
 0x346   : > { %1940 = vrot.lane.b32.xlu1 %v1935_v10, %s3507_s12  ;;  %v1911_v14 = vmul.f32 %v3458_v11, %v4949_v12  ;;  %v464_v11 = vsel %vm456_vm8, %v4958_v4, 0.0 }
 0x348   : > { %v1934_v19 = vmul.f32 %v1911_v14, %v4950_v17  ;;  %v1914_v23 = vadd.f32 1.0, %v1911_v14 }
 0x34a   : > { %1923 = vperm.xlu1 %3434, %v1915_v15   ;;  %1938 = vrot.lane.b32.xlu0 %v1934_v19, %s3507_s12  ;;  %v4960_v15 = vld [vmem:[#allocation8_spill] sm:$0xff] }
 0x34b   : > { %v459_v19 = vsel %vm451_vm9, %v4960_v15, 0.0 }
 0x34e   : > { %1918 = vperm.xlu1 %3434, %v1914_v23   ;;  %v4962_v23 = vld [vmem:[#allocation10_spill] sm:$0xff] }
 0x352   : > { %3435 = vset.pattern.permute.xlu1 %v4951_v26 }
 0x3b8   : > { %v1941_v27 = vpop.permute.xlu1 %1940 }
 0x3b9   : > { %v1945_v30 = vsub.f32 %v3623_v62, %v1941_v27  ;;  %v3294_v62 = vld [vmem:[%s4835_s6 + $0x1] ss:$2 sm:$0xf]  ;;  %v3515_v27 = vmov 2  }
 0x3ba   : > { %v1484_v48 = vrot.slane %v3294_v62, %v1390_v36  ;;  %v1492_v50 = vrot.slane %v3294_v62, %v1398_v40  ;;  %v1488_v51 = vrot.slane %v3294_v62, %v1394_v42  ;;  %v1496_v18 = vrot.slane %v3294_v62, %v1402_v43 }
 0x3bb   : > { %1953 = vperm.xlu1 %3435, %v1945_v30   ;;  %v461_v30 = vsel %vm453_vm10, %v4962_v23, 0.0  ;;  %v458_v36 = vsel %vm450_vm11, %v4964_v34, 0.0  ;;  %v460_v40 = vsel %vm452_vm12, %v4966_v37, 0.0  ;;  %vm1412_vm10 = vcmask 875520  }
 0x3bc   : > { %v1939_v13 = vpop.permute.xlu0 %1938  ;;  %vm1505_vm11 = vcmask 891904   ;;  %vm4917_vm12 = vcmask 1039360  }
 0x3bd   : > { %v1944_v31 = vsub.f32 %v4949_v12, %v1939_v13 }
 0x3bf   : > { %1948 = vperm.xlu0 %3432, %v1944_v31   ;;  %1404 = vrot.lane.b32.xlu1 %v1391_v38, %s3509_s8 }
 0x3c3   : > { %1408 = vrot.lane.b32.xlu1 %v1399_v41, %s3509_s8  ;;  %1406 = vrot.lane.b32.xlu0 %v1395_v63, %s3509_s8 }
 0x3c4   : > { %3441 = vset.pattern.permute.xlu0 %v3515_v27 }
 0x3c7   : > { %1497 = vrot.lane.b32.xlu1 %v1484_v48, %s3510_s11  ;;  %1410 = vrot.lane.b32.xlu0 %v1403_v49, %s3509_s8 }
 0x3cb   : > { %1501 = vrot.lane.b32.xlu1 %v1492_v50, %s3510_s11  ;;  %1499 = vrot.lane.b32.xlu0 %v1488_v51, %s3510_s11 }
 0x3cf   : > { %1546 = vrot.lane.b32.xlu1 %v1391_v38, %s3511_s13  ;;  %1503 = vrot.lane.b32.xlu0 %v1496_v18, %s3510_s11 }
 0x3d3   : > { %1550 = vrot.lane.b32.xlu1 %v1399_v41, %s3511_s13  ;;  %1548 = vrot.lane.b32.xlu0 %v1395_v63, %s3511_s13 }
 0x3d7   : > { %1600 = vrot.lane.b32.xlu1 %v1484_v48, %s3507_s12  ;;  %1552 = vrot.lane.b32.xlu0 %v1403_v49, %s3511_s13 }
 0x3db   : > { %1604 = vrot.lane.b32.xlu1 %v1492_v50, %s3507_s12  ;;  %1602 = vrot.lane.b32.xlu0 %v1488_v51, %s3507_s12 }
 0x3df   : > { %1646 = vrot.lane.b32.xlu1 %v1391_v38, %s3512_s14  ;;  %1606 = vrot.lane.b32.xlu0 %v1496_v18, %s3507_s12 }
 0x3e3   : > { %1650 = vrot.lane.b32.xlu1 %v1399_v41, %s3512_s14  ;;  %1648 = vrot.lane.b32.xlu0 %v1395_v63, %s3512_s14  ;;  %v1042_v63 = vld [vmem:[%s4834_s5 + $0x8] sm:$0xff] }
 0x3e7   : > { %1720 = vrot.lane.b32.xlu1 %v1484_v48, %s3513_s15  ;;  %1652 = vrot.lane.b32.xlu0 %v1403_v49, %s3512_s14  ;;  %v1041_v48 = vld [vmem:[%s4834_s5] sm:$0xff]  ;;  %v1043_v49 = vld [vmem:[%s4834_s5 + $0x10] sm:$0xff] }
 0x3eb   : > { %1724 = vrot.lane.b32.xlu1 %v1492_v50, %s3513_s15  ;;  %1722 = vrot.lane.b32.xlu0 %v1488_v51, %s3513_s15  ;;  %v1044_v50 = vld [vmem:[%s4834_s5 + $0x18] sm:$0xff]  ;;  %v1045_v51 = vld [vmem:[%s4834_s5 + $0x20] sm:$0xff] }
 0x3ef   : > { %1726 = vrot.lane.b32.xlu0 %v1496_v18, %s3513_s15  ;;  %v1046_v18 = vld [vmem:[%s4834_s5 + $0x28] sm:$0xff] }
 0x3f1   : > { %v785_v52 = vpop.f32.mrf.mxu0  ;;  %v862_v39 = vpop.f32.mrf.mxu1 }
 0x3f3   : > { %v787_v16 = vpop.f32.mrf.mxu0  ;;  %v864_v25 = vpop.f32.mrf.mxu1 }
 0x3f5   : > { %v791_v24 = vpop.f32.mrf.mxu0  ;;  %v868_v57 = vpop.f32.mrf.mxu1 }
 0x3f7   : > { %v793_v33 = vpop.f32.mrf.mxu0  ;;  %v870_v6 = vpop.f32.mrf.mxu1 }
 0x3f9   : > { %v945_v5 = vpop.f32.mrf.mxu0  ;;  %v1022_v9 = vpop.f32.mrf.mxu1 }
 0x3fa   : > { %v946_v58 = vadd.f32 %v945_v5, %v785_v52  ;;  %v1023_v59 = vadd.f32 %v1022_v9, %v862_v39  ;;  %v1047_v52 = vld [vmem:[%s4834_s5 + $0x30] sm:$0xff]  ;;  %v1048_v39 = vld [vmem:[%s4834_s5 + $0x38] sm:$0xff]  ;;  %v4969_v9 = vld [vmem:[#allocation18_spill] sm:$0xff] }
 0x3fb   : > { %v947_v28 = vpop.f32.mrf.mxu0  ;;  %v1024_v29 = vpop.f32.mrf.mxu1 }
 0x3fc   : > { %v948_v0 = vadd.f32 %v947_v28, %v787_v16  ;;  %v1025_v3 = vadd.f32 %v1024_v29, %v864_v25  ;;  %v1033_v42 = vadd.f32 %v946_v58, %v458_v36  ;;  %v1035_v43 = vadd.f32 %v1023_v59, %v460_v40  ;;  %v1049_v16 = vld [vmem:[%s4834_s5 + $0x40] sm:$0xff]  ;;  %v1050_v25 = vld [vmem:[%s4834_s5 + $0x48] sm:$0xff]  ;;  %v4970_v29 = vld [vmem:[#allocation17_spill] sm:$0xff] }
 0x3fd   : > { %v951_v61 = vpop.f32.mrf.mxu0  ;;  %v1028_v2 = vpop.f32.mrf.mxu1 }
 0x3fe   : > { %v952_v20 = vadd.f32 %v951_v61, %v791_v24  ;;  %v1029_v22 = vadd.f32 %v1028_v2, %v868_v57  ;;  %v1034_v41 = vadd.f32 %v948_v0, %v459_v19  ;;  %v1036_v62 = vadd.f32 %v1025_v3, %v461_v30  ;;  %v1924_v24 = vpop.permute.xlu1 %1923  ;;  %v1051_v57 = vld [vmem:[%s4834_s5 + $0x50] sm:$0xff]  ;;  %v4971_v2 = vld [vmem:[#allocation19_spill] sm:$0xff]  ;;  %v4985_v19 = vld [vmem:[#allocation30_spill] sm:$0xff] }
 0x3ff   : > { %v953_v32 = vpop.f32.mrf.mxu0  ;;  %v1030_v44 = vpop.f32.mrf.mxu1  ;;  %v1932_v28 = vmul.f32 %v4969_v9, %v1924_v24  ;;  %v1931_v61 = vmul.f32 %v4970_v29, %v1924_v24  ;;  %v3471_v30 = vld [vmem:[%s4830_s1] sm:$0xff] }
 0x400   : > { %v954_v7 = vadd.f32 %v953_v32, %v793_v33  ;;  %v1031_v45 = vadd.f32 %v1030_v44, %v870_v6  ;;  %v1037_v13 = vadd.f32 %v952_v20, %v462_v60  ;;  %v1039_v31 = vadd.f32 %v1029_v22, %v464_v11  ;;  %v4968_v6 = vld [vmem:[#allocation16_spill] sm:$0xff] }
 0x401   : > { %v1930_v5 = vmul.f32 %v4968_v6, %v1924_v24  ;;  %v1933_v20 = vmul.f32 %v4971_v2, %v1924_v24  ;;  %v4983_v11 = vld [vmem:[#allocation28_spill] sm:$0xff] }
 0x402   : > { %v1038_v12 = vadd.f32 %v954_v7, %v463_v55  ;;  %v1040_v14 = vadd.f32 %v1031_v45, %v465_v56  ;;  %v1919_v33 = vpop.permute.xlu1 %1918  ;;  %v4975_v7 = vld [vmem:[#allocation12_spill] sm:$0xff]  ;;  %v4977_v55 = vld [vmem:[#allocation14_spill] sm:$0xff] }
 0x403   : > { %v1926_v45 = vmul.f32 %v4975_v7, %v1919_v33  ;;  %v1927_v54 = vmul.f32 %v4976_v53, %v1919_v33  ;;  %v1928_v47 = vmul.f32 %v4977_v55, %v1919_v33  ;;  %v1929_v56 = vmul.f32 %v4978_v1, %v1919_v33 }
 0x404   : > { %1113 = vmatprep.subr.mxu0 %v1038_v12  ;;  %1244 = vmatprep.subr.mxu1 %v1040_v14  ;;  %v4984_v14 = vld [vmem:[#allocation29_spill] sm:$0xff] }
 0x405   : > { %1114 = vmatpush1.msra.mxu0 %v1037_v13  ;;  %1245 = vmatpush1.msra.mxu1 %v1039_v31  ;;  %v4986_v13 = vld [vmem:[#allocation31_spill] sm:$0xff] }
 0x406   : > { %1115 = vmatprep.subr.mxu0 %v1034_v41  ;;  %1246 = vmatprep.subr.mxu1 %v1036_v62 }
 0x407   : > { %1116 = vmatpush1.msra.mxu0 %v1033_v42  ;;  %1247 = vmatpush1.msra.mxu1 %v1035_v43 }
 0x408   : > { %3321 = vmatmul.mubr.msk.f32.vlgmr.msra.gmra.mxu0 %vm337_vm0, %v1041_v48  ;;  %3332 = vmatmul.mubr.msk.f32.vlgmr.msra.gmra.mxu1 %vm337_vm0, %v1041_v48 }
 0x409   : > { %1155 = vmatprep.mubr.f32.mxu0 %v4948_v46  ;;  %1286 = vmatprep.mubr.f32.mxu1 %v4948_v46 }
 0x40c   : > { %3322 = vmatmul.mubr.msk.f32.gmra.mxu0 %vm337_vm0, %v1042_v63  ;;  %3333 = vmatmul.mubr.msk.f32.gmra.mxu1 %vm337_vm0, %v1042_v63 }
 0x40d   : > { %1161 = vmatprep.mubr.f32.mxu0 %v4948_v46  ;;  %1292 = vmatprep.mubr.f32.mxu1 %v4948_v46 }
 0x410   : > { %3323 = vmatmul.mubr.msk.f32.gmra.mxu0 %vm337_vm0, %v1043_v49  ;;  %3334 = vmatmul.mubr.msk.f32.gmra.mxu1 %vm337_vm0, %v1043_v49 }
 0x411   : > { %1167 = vmatprep.mubr.f32.mxu0 %v4948_v46  ;;  %1298 = vmatprep.mubr.f32.mxu1 %v4948_v46 }
 0x414   : > { %3324 = vmatmul.mubr.msk.f32.gmra.mxu0 %vm337_vm0, %v1044_v50  ;;  %3335 = vmatmul.mubr.msk.f32.gmra.mxu1 %vm337_vm0, %v1044_v50 }
 0x415   : > { %1173 = vmatprep.mubr.f32.mxu0 %v4948_v46  ;;  %1304 = vmatprep.mubr.f32.mxu1 %v4948_v46 }
 0x418   : > { %3325 = vmatmul.mubr.msk.f32.gmra.mxu0 %vm337_vm0, %v1045_v51  ;;  %3336 = vmatmul.mubr.msk.f32.gmra.mxu1 %vm337_vm0, %v1045_v51 }
 0x419   : > { %1179 = vmatprep.mubr.f32.mxu0 %v4948_v46  ;;  %1310 = vmatprep.mubr.f32.mxu1 %v4948_v46 }
 0x41c   : > { %3326 = vmatmul.mubr.msk.f32.gmra.mxu0 %vm337_vm0, %v1046_v18  ;;  %3337 = vmatmul.mubr.msk.f32.gmra.mxu1 %vm337_vm0, %v1046_v18 }
 0x41d   : > { %1185 = vmatprep.mubr.f32.mxu0 %v4948_v46  ;;  %1316 = vmatprep.mubr.f32.mxu1 %v4948_v46 }
 0x420   : > { %3327 = vmatmul.mubr.msk.f32.gmra.mxu0 %vm337_vm0, %v1047_v52  ;;  %3338 = vmatmul.mubr.msk.f32.gmra.mxu1 %vm337_vm0, %v1047_v52 }
 0x421   : > { %1191 = vmatprep.mubr.f32.mxu0 %v4948_v46  ;;  %1322 = vmatprep.mubr.f32.mxu1 %v4948_v46 }
 0x424   : > { %3328 = vmatmul.mubr.msk.f32.gmra.mxu0 %vm337_vm0, %v1048_v39  ;;  %3339 = vmatmul.mubr.msk.f32.gmra.mxu1 %vm337_vm0, %v1048_v39 }
 0x425   : > { %1197 = vmatprep.mubr.f32.mxu0 %v4948_v46  ;;  %1328 = vmatprep.mubr.f32.mxu1 %v4948_v46 }
 0x428   : > { %3329 = vmatmul.mubr.msk.f32.gmra.mxu0 %vm337_vm0, %v1049_v16  ;;  %3340 = vmatmul.mubr.msk.f32.gmra.mxu1 %vm337_vm0, %v1049_v16 }
 0x429   : > { %1203 = vmatprep.mubr.f32.mxu0 %v4948_v46  ;;  %1334 = vmatprep.mubr.f32.mxu1 %v4948_v46 }
 0x42c   : > { %3330 = vmatmul.mubr.msk.f32.gmra.mxu0 %vm337_vm0, %v1050_v25  ;;  %3341 = vmatmul.mubr.msk.f32.gmra.mxu1 %vm337_vm0, %v1050_v25 }
 0x42d   : > { %1209 = vmatprep.mubr.f32.mxu0 %v4948_v46  ;;  %1340 = vmatprep.mubr.f32.mxu1 %v4948_v46 }
 0x430   : > { %3331 = vmatmul.mubr.msk.f32.gmra.mxu0 %vm337_vm0, %v1051_v57  ;;  %3342 = vmatmul.mubr.msk.f32.gmra.mxu1 %vm337_vm0, %v1051_v57 }
 0x431   : > { %2060 = vmatprep.mubr.f32.mxu0 %v4948_v46  ;;  %2149 = vmatprep.mubr.f32.mxu1 %v4948_v46 }
 0x436   : > { %v1954_v22 = vpop.permute.xlu1 %1953 }
 0x437   : > { %v4073_v32 = vadd.f32 %v1954_v22, %v1930_v5  ;;  %v4075_v44 = vadd.f32 %v1954_v22, %v1932_v28  ;;  %v4077_v0 = vadd.f32 %v1954_v22, %v1931_v61  ;;  %v4079_v3 = vadd.f32 %v1954_v22, %v1933_v20 }
 0x439   : > { %4972 = vst [vmem:[#allocation11_spill] sm:$0xff] %v4073_v32  ;;  %4973 = vst [vmem:[#allocation32_spill] sm:$0xff] %v4075_v44  ;;  %vm1969_vm2 = vcmp.ge.f32.partialorder %v4077_v0, 0.0  ;;  %vm1971_vm3 = vcmp.ge.f32.partialorder %v4079_v3, 0.0  ;;  %vm1968_vm4 = vcmp.ge.f32.partialorder %v4073_v32, 0.0  ;;  %vm1970_vm5 = vcmp.ge.f32.partialorder %v4075_v44, 0.0 }
 0x43a   : > { %4974 = vst [vmem:[#allocation4_spill] sm:$0xff] %v4079_v3  ;;  %v1949_v58 = vpop.permute.xlu0 %1948  ;;  %3351 = vmatprep.subr.msk.mxu0 %vm1969_vm2, %v4970_v29  ;;  %3359 = vmatprep.subr.msk.mxu1 %vm1971_vm3, %v4971_v2  ;;  %v1405_v4 = vpop.permute.xlu1 %1404  ;;  %v3493_v0 = vld [vmem:[%s3573_s30 + $0x70] sm:$0xff] }
 0x43b   : > { %v4095_v59 = vadd.f32 %v1949_v58, %v1926_v45  ;;  %v4097_v21 = vadd.f32 %v1949_v58, %v1928_v47  ;;  %3352 = vmatpush1.msk.msra.mxu0 %vm1968_vm4, %v4968_v6  ;;  %3360 = vmatpush1.msk.msra.mxu1 %vm1970_vm5, %v4969_v9  ;;  %v4105_v8 = vadd.f32 %v1949_v58, %v1927_v54  ;;  %v2900_v10 = vmul.f32 0.0, %v1405_v4 }
 0x43c   : > { %v4107_v60 = vadd.f32 %v1949_v58, %v1929_v56 }
 0x43d   : > { %4979 = vst [vmem:[#allocation20_spill] sm:$0xff] %v4095_v59  ;;  %4980 = vst [vmem:[#allocation6_spill] sm:$0xff] %v4097_v21  ;;  %vm1965_vm6 = vcmp.ge.f32.partialorder %v4105_v8, 0.0  ;;  %vm1964_vm7 = vcmp.ge.f32.partialorder %v4095_v59, 0.0  ;;  %vm1966_vm8 = vcmp.ge.f32.partialorder %v4097_v21, 0.0  ;;  %2908 = vrot.lane.b32.xlu0 %v2900_v10, %s3513_s15  ;;  %1428 = vrot.lane.b32.xlu1 %v2900_v10, %s3513_s15 }
 0x43e   : > { %4981 = vst [vmem:[#allocation21_spill] sm:$0xff] %v4105_v8  ;;  %4982 = vst [vmem:[#allocation3_spill] sm:$0xff] %v4107_v60  ;;  %3353 = vmatprep.subr.msk.mxu0 %vm1965_vm6, %v4976_v53  ;;  %vm1967_vm9 = vcmp.ge.f32.partialorder %v4107_v60, 0.0  ;;  %v1409_v12 = vpop.permute.xlu1 %1408  ;;  %v1407_v35 = vpop.permute.xlu0 %1406 }
 0x43f   : > { %3361 = vmatprep.subr.msk.mxu1 %vm1967_vm9, %v4978_v1  ;;  %3354 = vmatpush1.msk.msra.mxu0 %vm1964_vm7, %v4975_v7  ;;  %v4183_v63 = vsel %vm1412_vm10, %v1405_v4, %v1407_v35  ;;  %v4189_v18 = vsel %vm1412_vm10, %v1407_v35, %v1409_v12 }
 0x440   : > { %3362 = vmatpush1.msk.msra.mxu1 %vm1966_vm8, %v4977_v55  ;;  %3355 = vmatmul.mubr.msk.f32.vlgmr.msra.gmra.mxu0 %vm337_vm0, %v4983_v11  ;;  %4995 = vst [vmem:[#allocation26_spill] sm:$0xff] %v4183_v63  ;;  %4997 = vst [vmem:[#allocation27_spill] sm:$0xff] %v4189_v18 }
 0x441   : > { %3363 = vmatmul.mubr.msk.f32.vlgmr.msra.gmra.mxu1 %vm337_vm0, %v4983_v11  ;;  %2066 = vmatprep.mubr.f32.mxu0 %v4948_v46 }
 0x442   : > { %2155 = vmatprep.mubr.f32.mxu1 %v4948_v46  ;;  %v1498_v15 = vpop.permute.xlu1 %1497  ;;  %3437 = vrot.lane.b32.xlu0 %v4948_v46, %s3514_s28  ;;  %v1411_v36 = vpop.permute.xlu0 %1410 }
 0x443   : > { %v1513_v17 = vmul.f32 0.0, %v1498_v15  ;;  %v4186_v49 = vsel %vm1412_vm10, %v1409_v12, %v1411_v36 }
 0x444   : > { %3356 = vmatmul.mubr.msk.f32.gmra.mxu0 %vm337_vm0, %v4984_v14  ;;  %4996 = vst [vmem:[#allocation9_spill] sm:$0xff] %v4186_v49 }
 0x445   : > { %3364 = vmatmul.mubr.msk.f32.gmra.mxu1 %vm337_vm0, %v4984_v14  ;;  %2072 = vmatprep.mubr.f32.mxu0 %v4948_v46 }
 0x446   : > { %2161 = vmatprep.mubr.f32.mxu1 %v4948_v46  ;;  %1521 = vrot.lane.b32.xlu1 %v1513_v17, %s3512_s14  ;;  %v4147_v23 = vpop.permute.xlu1 %1501  ;;  %v1500_v37 = vpop.permute.xlu0 %1499 }
 0x447   : > { %1768 = vperm.xlu0 %3441, %v3471_v30   ;;  %v4199_v2 = vsel %vm1505_vm11, %v1498_v15, %v1500_v37  ;;  %v4203_v20 = vsel %vm1505_vm11, %v1500_v37, %v4147_v23 }
 0x448   : > { %3357 = vmatmul.mubr.msk.f32.gmra.mxu0 %vm337_vm0, %v4985_v19  ;;  %4998 = vst [vmem:[#allocation16_spill] sm:$0xff] %v4199_v2  ;;  %4999 = vst [vmem:[#allocation18_spill] sm:$0xff] %v4203_v20 }
 0x449   : > { %3365 = vmatmul.mubr.msk.f32.gmra.mxu1 %vm337_vm0, %v4985_v19  ;;  %2078 = vmatprep.mubr.f32.mxu0 %v4948_v46 }
 0x44a   : > { %2167 = vmatprep.mubr.f32.mxu1 %v4948_v46  ;;  %2966 = vrot.lane.b32.xlu1 %v1513_v17, %s3512_s14  ;;  %v4158_v31 = vpop.permute.xlu1 %1546 }
 0x44b   : > { %v1563_v34 = vmul.f32 0.0, %v4158_v31  ;;  %3442 = vset.pattern.permute.xlu0 %v4951_v26  ;;  %v1504_v26 = vpop.permute.xlu0 %1503 }
 0x44c   : > { %3358 = vmatmul.mubr.msk.f32.gmra.mxu0 %vm337_vm0, %v4986_v13  ;;  %v4215_v56 = vsel %vm1505_vm11, %v4147_v23, %v1504_v26 }
 0x44d   : > { %3366 = vmatmul.mubr.msk.f32.gmra.mxu1 %vm337_vm0, %v4986_v13  ;;  %2296 = vmatprep.mubr.f32.mxu0 %v4948_v46  ;;  %5002 = vst [vmem:[#allocation12_spill] sm:$0xff] %v4215_v56 }
 0x44e   : > { %2373 = vmatprep.mubr.f32.mxu1 %v4948_v46  ;;  %1573 = vrot.lane.b32.xlu1 %v1563_v34, %s3507_s12  ;;  %v1551_v5 = vpop.permute.xlu1 %1550 }
 0x44f   : > { %v1549_v57 = vpop.permute.xlu0 %1548 }
 0x450   : > { %v4218_v58 = vsel %vm4917_vm12, %v1549_v57, %v1551_v5  ;;  %v4231_v19 = vsel %vm4917_vm12, %v4158_v31, %v1549_v57 }
 0x451   : > { %5003 = vst [vmem:[#allocation13_spill] sm:$0xff] %v4218_v58  ;;  %5004 = vst [vmem:[#allocation14_spill] sm:$0xff] %v4231_v19 }
 0x452   : > { %3000 = vrot.lane.b32.xlu1 %v1563_v34, %s3507_s12  ;;  %v4211_v55 = vpop.permute.xlu1 %1600 }
 0x453   : > { %v4205_v22 = vpop.permute.xlu0 %1552  ;;  %5001 = vst [vmem:[#allocation19_spill] sm:$0xff] %v4211_v55 }
 0x454   : > { %5000 = vst [vmem:[#allocation17_spill] sm:$0xff] %v4205_v22  ;;  %v4242_v36 = vsel %vm4917_vm12, %v1551_v5, %v4205_v22 }
 0x455   : > { %5005 = vst [vmem:[#allocation15_spill] sm:$0xff] %v4242_v36 }
 0x456   : > { %v1605_v23 = vpop.permute.xlu1 %1604 }
 0x457   : > { %v1603_v14 = vpop.permute.xlu0 %1602 }
 0x458   : > { %v4245_v31 = vsel %vm1583_vm13, %v1603_v14, %v1605_v23 }
 0x459   : > { %5006 = vst [vmem:[#allocation28_spill] sm:$0xff] %v4245_v31 }
 0x45a   : > { %v4257_v5 = vpop.permute.xlu1 %1646 }
 0x45b   : > { %v1607_v26 = vpop.permute.xlu0 %1606  ;;  %5007 = vst [vmem:[#allocation29_spill] sm:$0xff] %v4257_v5 }
 0x4c8   : > { %v4166_v38 = vpop.f32.mrf.mxu0  ;;  %v4168_v40 = vpop.f32.mrf.mxu1 }
 0x4c9   : > { %4987 = vst [vmem:[#allocation22_spill] sm:$0xff] %v4166_v38  ;;  %4988 = vst [vmem:[#allocation5_spill] sm:$0xff] %v4168_v40  ;;  %v3476_v40 = vld [vmem:[%s4832_s3 + $0x20] sm:$0xff] }
 0x4ca   : > { %v4170_v41 = vpop.f32.mrf.mxu0  ;;  %v4172_v62 = vpop.f32.mrf.mxu1  ;;  %v3477_v38 = vld [vmem:[%s4832_s3] sm:$0xff] }
 0x4cb   : > { %4989 = vst [vmem:[#allocation23_spill] sm:$0xff] %v4170_v41  ;;  %4990 = vst [vmem:[#allocation8_spill] sm:$0xff] %v4172_v62 }
 0x4cc   : > { %v4174_v42 = vpop.f32.mrf.mxu0  ;;  %v4176_v46 = vpop.f32.mrf.mxu1 }
 0x4cd   : > { %4991 = vst [vmem:[#allocation24_spill] sm:$0xff] %v4174_v42  ;;  %4992 = vst [vmem:[#allocation10_spill] sm:$0xff] %v4176_v46 }
 0x4ce   : > { %v4178_v43 = vpop.f32.mrf.mxu0  ;;  %v4180_v48 = vpop.f32.mrf.mxu1 }
 0x4cf   : > { %4993 = vst [vmem:[#allocation25_spill] sm:$0xff] %v4178_v43  ;;  %4994 = vst [vmem:[#allocation7_spill] sm:$0xff] %v4180_v48  ;;  %v3478_v43 = vld [vmem:[%s4832_s3 + $0x30] sm:$0xff] }
 0x4d0   : > { %v1163_v50 = vpop.f32.mrf.mxu0  ;;  %v1294_v51 = vpop.f32.mrf.mxu1 }
 0x4d1   : > { %v1421_v52 = vmul.f32 %v4183_v63, %v1163_v50  ;;  %v1423_v39 = vmul.f32 %v4186_v49, %v1294_v51 }
 0x4d2   : > { %v1165_v16 = vpop.f32.mrf.mxu0  ;;  %v1296_v25 = vpop.f32.mrf.mxu1 }
 0x4d3   : > { %v1422_v24 = vmul.f32 %v4189_v18, %v1165_v16  ;;  %1430 = vrot.lane.b32.xlu0 %v1421_v52, %s3513_s15  ;;  %1434 = vrot.lane.b32.xlu1 %v1423_v39, %s3513_s15 }
 0x4d4   : > { %v1169_v33 = vpop.f32.mrf.mxu0  ;;  %v1300_v6 = vpop.f32.mrf.mxu1 }
 0x4d6   : > { %v1171_v9 = vpop.f32.mrf.mxu0  ;;  %v1302_v28 = vpop.f32.mrf.mxu1 }
 0x4d7   : > { %1462 = vrot.lane.b32.xlu0 %v1300_v6, %s3514_s28  ;;  %1432 = vrot.lane.b32.xlu1 %v1422_v24, %s3513_s15  ;;  %v1649_v6 = vpop.permute.xlu0 %1648  ;;  %v4264_v28 = vsel %vm1583_vm13, %v1605_v23, %v1607_v26 }
 0x4d8   : > { %v1175_v29 = vpop.f32.mrf.mxu0  ;;  %v1306_v61 = vpop.f32.mrf.mxu1  ;;  %5009 = vst [vmem:[#allocation31_spill] sm:$0xff] %v4264_v28 }
 0x4d9   : > { %v1514_v53 = vmul.f32 %v4199_v2, %v1175_v29  ;;  %v1516_v11 = vmul.f32 %v4215_v56, %v1306_v61  ;;  %v3487_v2 = vld [vmem:[%s4832_s3 + $0x58] sm:$0xff] }
 0x4da   : > { %v1177_v7 = vpop.f32.mrf.mxu0  ;;  %v1308_v45 = vpop.f32.mrf.mxu1 }
 0x4db   : > { %v1515_v54 = vmul.f32 %v4203_v20, %v1177_v7  ;;  %1460 = vrot.lane.b32.xlu0 %v1171_v9, %s3514_s28  ;;  %1458 = vrot.lane.b32.xlu1 %v1169_v33, %s3514_s28  ;;  %v4261_v9 = vsel %vm1583_vm13, %v4211_v55, %v1603_v14 }
 0x4dc   : > { %v1181_v47 = vpop.f32.mrf.mxu0  ;;  %v1312_v1 = vpop.f32.mrf.mxu1  ;;  %5008 = vst [vmem:[#allocation30_spill] sm:$0xff] %v4261_v9 }
 0x4dd   : > { %v1564_v13 = vmul.f32 %v4231_v19, %v1181_v47  ;;  %v1566_v39 = vmul.f32 %v4242_v36, %v1312_v1 }
 0x4de   : > { %v1183_v4 = vpop.f32.mrf.mxu0  ;;  %v1314_v10 = vpop.f32.mrf.mxu1 }
 0x4df   : > { %1362 = vst.msk [vmem:[#allocation2 + $0x98] sm:$0xff] %vm337_vm0, %v1314_v10  ;;  %1523 = vrot.lane.b32.xlu0 %v1514_v53, %s3512_s14  ;;  %1525 = vrot.lane.b32.xlu1 %v1515_v54, %s3512_s14  ;;  %v1565_v12 = vmul.f32 %v4218_v58, %v1183_v4  ;;  %v4268_v53 = vsel %vm1529_vm14, %v4257_v5, %v1649_v6  ;;  %v3486_v58 = vld [vmem:[%s4832_s3 + $0x10] sm:$0xff] }
 0x4e0   : > { %v4225_v15 = vpop.f32.mrf.mxu0  ;;  %v4227_v17 = vpop.f32.mrf.mxu1  ;;  %5010 = vst [vmem:[#allocation33_spill] sm:$0xff] %v4268_v53 }
 0x4e2   : > { %v4233_v27 = vpop.f32.mrf.mxu0  ;;  %v4235_v30 = vpop.f32.mrf.mxu1 }
 0x4e3   : > { %1527 = vrot.lane.b32.xlu0 %v1516_v11, %s3512_s14  ;;  %1577 = vrot.lane.b32.xlu1 %v1565_v12, %s3507_s12  ;;  %v1651_v11 = vpop.permute.xlu1 %1650 }
 0x4e4   : > { %v1193_v34 = vpop.f32.mrf.mxu0  ;;  %v1324_v35 = vpop.f32.mrf.mxu1 }
 0x4e5   : > { %v1615_v37 = vmul.f32 %v4211_v55, %v1193_v34  ;;  %v1617_v52 = vmul.f32 %v4245_v31, %v1324_v35  ;;  %v1653_v34 = vpop.permute.xlu0 %1652 }
 0x4e6   : > { %v1326_v50 = vpop.f32.mrf.mxu1  ;;  %v1195_v51 = vpop.f32.mrf.mxu0  ;;  %v1545_v16 = vld [vmem:[#allocation2 + $0x98] sm:$0xff]  ;;  %v4287_v26 = vsel %vm1529_vm14, %v1651_v11, %v1653_v34 }
 0x4e7   : > { %1370 = vst.msk [vmem:[#allocation2 + $0xe8] sm:$0xff] %vm337_vm0, %v1326_v50  ;;  %1575 = vrot.lane.b32.xlu0 %v1564_v13, %s3507_s12  ;;  %1623 = vrot.lane.b32.xlu1 %v1615_v37, %s3511_s13  ;;  %v1567_v33 = vmul.f32 %v4205_v22, %v1545_v16  ;;  %v1616_v47 = vmul.f32 %v4261_v9, %v1195_v51  ;;  %v4284_v35 = vpop.permute.xlu1 %1720  ;;  %5013 = vst [vmem:[#allocation36_spill] sm:$0xff] %v4287_v26  ;;  %v3484_v9 = vld [vmem:[%s4832_s3 + $0x48] sm:$0xff]  ;;  %v3485_v22 = vld [vmem:[%s4832_s3 + $0x70] sm:$0xff] }
 0x4e8   : > { %v1330_v25 = vpop.f32.mrf.mxu1  ;;  %v1199_v24 = vpop.f32.mrf.mxu0  ;;  %v4281_v13 = vsel %vm1529_vm14, %v1649_v6, %v1651_v11  ;;  %5012 = vst [vmem:[#allocation35_spill] sm:$0xff] %v4284_v35 }
 0x4e9   : > { %v1661_v14 = vmul.f32 %v4257_v5, %v1199_v24  ;;  %5011 = vst [vmem:[#allocation34_spill] sm:$0xff] %v4281_v13  ;;  %v1663_v51 = vmul.f32 %v4281_v13, %v1330_v25  ;;  %v1723_v25 = vpop.permute.xlu0 %1722  ;;  %v3482_v13 = vld [vmem:[%s4832_s3 + $0x18] sm:$0xff] }
 0x4ea   : > { %v1332_v57 = vpop.f32.mrf.mxu1  ;;  %v1201_v61 = vpop.f32.mrf.mxu0  ;;  %v3483_v5 = vld [vmem:[%s4832_s3 + $0x38] sm:$0xff] }
 0x4eb   : > { %1579 = vrot.lane.b32.xlu0 %v1566_v39, %s3507_s12  ;;  %1627 = vrot.lane.b32.xlu1 %v1617_v52, %s3511_s13  ;;  %1374 = vst.msk [vmem:[#allocation2 + $0x110] sm:$0xff] %vm337_vm0, %v1332_v57  ;;  %v1662_v10 = vmul.f32 %v4268_v53, %v1201_v61  ;;  %v4294_v16 = vpop.permute.xlu1 %1724 }
 0x4ec   : > { %v1336_v29 = vpop.f32.mrf.mxu1  ;;  %v1205_v4 = vpop.f32.mrf.mxu0  ;;  %5014 = vst [vmem:[#allocation37_spill] sm:$0xff] %v4294_v16  ;;  %v4304_v6 = vsel %vm1436_vm15, %v1723_v25, %v4294_v16 }
 0x4ed   : > { %5015 = vst [vmem:[#allocation38_spill] sm:$0xff] %v4304_v6 }
 0x4ee   : > { %v1599_v7 = vld [vmem:[#allocation2 + $0xe8] sm:$0xff]  ;;  %v1338_v45 = vpop.f32.mrf.mxu1  ;;  %v1207_v23 = vpop.f32.mrf.mxu0 }
 0x4ef   : > { %v1618_v54 = vmul.f32 %v4264_v28, %v1599_v7  ;;  %1581 = vrot.lane.b32.xlu0 %v1567_v33, %s3507_s12  ;;  %1378 = vst.msk [vmem:[#allocation2 + $0x138] sm:$0xff] %vm337_vm0, %v1338_v45 }
 0x4f0   : > { %v1342_v1 = vpop.f32.mrf.mxu1  ;;  %v1211_v50 = vpop.f32.mrf.mxu0 }
 0x4f1   : > { %1629 = vrot.lane.b32.xlu1 %v1618_v54, %s3511_s13  ;;  %v1735_v57 = vmul.f32 %v4284_v35, %v1211_v50  ;;  %v1737_v45 = vmul.f32 %v4304_v6, %v1342_v1  ;;  %v3472_v50 = vld [vmem:[%s4832_s3 + $0x40] sm:$0xff]  ;;  %v3479_v6 = vld [vmem:[%s4832_s3 + $0x28] sm:$0xff] }
 0x4f2   : > { %v1344_v12 = vpop.f32.mrf.mxu1  ;;  %v1645_v37 = vld [vmem:[#allocation2 + $0x110] sm:$0xff]  ;;  %v1213_v39 = vpop.f32.mrf.mxu0 }
 0x4f3   : > { %1625 = vrot.lane.b32.xlu0 %v1616_v47, %s3511_s13  ;;  %1382 = vst.msk [vmem:[#allocation2 + $0x160] sm:$0xff] %vm337_vm0, %v1344_v12  ;;  %v1664_v52 = vmul.f32 %v4287_v26, %v1645_v37 }
 0x4f5   : > { %1671 = vrot.lane.b32.xlu1 %v1662_v10, %s3510_s11  ;;  %v4320_v10 = vsel %vm1436_vm15, %v4284_v35, %v1723_v25  ;;  %v3474_v25 = vld [vmem:[%s4832_s3 + $0x8] sm:$0xff] }
 0x4f6   : > { %5016 = vst [vmem:[#allocation39_spill] sm:$0xff] %v4320_v10  ;;  %v1691_v11 = vld [vmem:[#allocation2 + $0x138] sm:$0xff] }
 0x4f7   : > { %1669 = vrot.lane.b32.xlu0 %v1661_v14, %s3510_s11 }
 0x4f9   : > { %1696 = vrot.lane.b32.xlu1 %v1205_v4, %s3516_s10 }
 0x4fb   : > { %1673 = vrot.lane.b32.xlu0 %v1663_v51, %s3510_s11 }
 0x4fd   : > { %1700 = vrot.lane.b32.xlu1 %v1336_v29, %s3516_s10 }
 0x4ff   : > { %1675 = vrot.lane.b32.xlu0 %v1664_v52, %s3510_s11 }
 0x500   : > { %v4296_v24 = vpop.f32.mrf.mxu0 }
 0x501   : > { %v4300_v33 = vpop.f32.mrf.mxu1  ;;  %1743 = vrot.lane.b32.xlu1 %v1735_v57, %s3509_s8  ;;  %v2198_v51 = vmul.f32 %v3472_v50, %v4296_v24  ;;  %v4340_v57 = vld [vmem:[%s4832_s3 + $0x50] sm:$0xff] }
 0x502   : > { %v2064_v61 = vpop.f32.mrf.mxu0 }
 0x503   : > { %v4307_v29 = vpop.f32.mrf.mxu1  ;;  %1698 = vrot.lane.b32.xlu0 %v1207_v23, %s3516_s10  ;;  %v1736_v23 = vmul.f32 %v4320_v10, %v1213_v39  ;;  %v2200_v39 = vmul.f32 %v4340_v57, %v4300_v33  ;;  %v3480_v10 = vld [vmem:[%s4832_s3 + $0x60] sm:$0xff]  ;;  %v2199_v55 = vmul.f32 %v3484_v9, %v2064_v61 }
 0x504   : > { %v2068_v7 = vpop.f32.mrf.mxu0  ;;  %v2201_v20 = vmul.f32 %v3487_v2, %v4307_v29 }
 0x505   : > { %v4311_v54 = vpop.f32.mrf.mxu1  ;;  %1747 = vrot.lane.b32.xlu1 %v1737_v45, %s3509_s8  ;;  %v4347_v45 = vmul.f32 %v3474_v25, %v2064_v61  ;;  %v2202_v26 = vmul.f32 %v3480_v10, %v2068_v7  ;;  %v2178_v61 = vmul.f32 %v3476_v40, %v2068_v7 }
 0x506   : > { %v4313_v47 = vpop.f32.mrf.mxu0  ;;  %v2204_v19 = vmul.f32 %v3485_v22, %v4311_v54 }
 0x507   : > { %v4316_v4 = vpop.f32.mrf.mxu1  ;;  %1702 = vrot.lane.b32.xlu0 %v1691_v11, %s3516_s10  ;;  %v3475_v11 = vld [vmem:[%s4832_s3 + $0x68] sm:$0xff] }
 0x508   : > { %v4322_v12 = vpop.f32.mrf.mxu0 }
 0x509   : > { %v4325_v14 = vpop.f32.mrf.mxu1  ;;  %v2206_v48 = vmul.f32 %v3477_v38, %v4322_v12 }
 0x50a   : > { %v4327_v1 = vpop.f32.mrf.mxu0  ;;  %v2208_v56 = vmul.f32 %v3486_v58, %v4325_v14 }
 0x50b   : > { %v4330_v34 = vpop.f32.mrf.mxu1  ;;  %1745 = vrot.lane.b32.xlu0 %v1736_v23, %s3509_s8  ;;  %v2203_v23 = vmul.f32 %v3475_v11, %v4313_v47  ;;  %v2207_v46 = vmul.f32 %v3474_v25, %v4327_v1  ;;  %v3481_v25 = vld [vmem:[%s4832_s3 + $0x78] sm:$0xff]  ;;  %v2214_v63 = vadd.f32 %v2206_v48, %v2198_v51 }
 0x50c   : > { %v2080_v37 = vpop.f32.mrf.mxu0  ;;  %v2205_v53 = vmul.f32 %v3481_v25, %v4316_v4  ;;  %v2209_v28 = vmul.f32 %v3482_v13, %v4330_v34  ;;  %v2216_v32 = vadd.f32 %v2208_v56, %v2200_v39  ;;  %v2185_v48 = vmul.f32 %v3487_v2, %v4330_v34  ;;  %v1429_v56 = vpop.permute.xlu1 %1428 }
 0x50d   : > { %v2169_v52 = vpop.f32.mrf.mxu1  ;;  %v2210_v62 = vmul.f32 %v3476_v40, %v2080_v37  ;;  %v2215_v21 = vadd.f32 %v2207_v46, %v2199_v55  ;;  %v2186_v8 = vmul.f32 %v3480_v10, %v2080_v37  ;;  %v2182_v46 = vmul.f32 %v3472_v50, %v4322_v12  ;;  %v2223_v55 = vld [vmem:[%s4833_s4 + $0x8] sm:$0xff] }
 0x50e   : > { %v2082_v41 = vpop.f32.mrf.mxu0  ;;  %v2212_v42 = vmul.f32 %v3478_v43, %v2169_v52  ;;  %v2217_v44 = vadd.f32 %v2209_v28, %v2201_v20  ;;  %v2188_v40 = vmul.f32 %v3485_v22, %v2169_v52 }
 0x50f   : > { %v2211_v35 = vmul.f32 %v3479_v6, %v2082_v41  ;;  %v2171_v16 = vpop.f32.mrf.mxu1  ;;  %v2218_v49 = vadd.f32 %v2210_v62, %v2202_v26  ;;  %v2187_v59 = vmul.f32 %v3475_v11, %v2082_v41  ;;  %v2180_v62 = vmul.f32 %v3478_v43, %v4311_v54  ;;  %v4409_v43 = vld [vmem:[#allocation2 + $0xa0] sm:$0xff] }
 0x510   : > { %v2213_v31 = vmul.f32 %v3483_v5, %v2171_v16  ;;  %v2220_v60 = vadd.f32 %v2212_v42, %v2204_v19  ;;  %v2189_v3 = vmul.f32 %v3481_v25, %v2171_v16  ;;  %v2181_v41 = vmul.f32 %v3483_v5, %v4316_v4  ;;  %v4438_v19 = vpop.permute.xlu0 %1726 }
 0x511   : > { %v2219_v36 = vadd.f32 %v2211_v35, %v2203_v23  ;;  %v3367_v35 = vld [vmem:[%s4833_s4 + $0x10] sm:$0xff]  ;;  %v2179_v23 = vmul.f32 %v3479_v6, %v4313_v47  ;;  %v2183_v42 = vmul.f32 %v3484_v9, %v4327_v1 }
 0x512   : > { %v2221_v18 = vadd.f32 %v2213_v31, %v2205_v53 }
 0x513   : > { %2260 = vmatprep.subr.mxu0 %v2219_v36 }
 0x514   : > { %2337 = vmatprep.subr.mxu1 %v2221_v18  ;;  %2261 = vmatpush1.msra.mxu0 %v2218_v49  ;;  %v2195_v49 = vsub.f32 %v2179_v23, %v2187_v59  ;;  %v2197_v18 = vsub.f32 %v2181_v41, %v2189_v3  ;;  %v2174_v59 = vmul.f32 %v3477_v38, %v4296_v24  ;;  %v2222_v38 = vld [vmem:[%s4833_s4] sm:$0xff]  ;;  %v4440_v36 = vpop.permute.xlu0 %2908 }
 0x515   : > { %2338 = vmatpush1.msra.mxu1 %v2220_v60  ;;  %2262 = vmatprep.subr.mxu0 %v2215_v21  ;;  %v2184_v60 = vmul.f32 %v4340_v57, %v4325_v14  ;;  %v2194_v21 = vsub.f32 %v2178_v61, %v2186_v8  ;;  %v2176_v3 = vmul.f32 %v3486_v58, %v4300_v33  ;;  %v1522_v58 = vpop.permute.xlu1 %1521 }
 0x516   : > { %2339 = vmatprep.subr.mxu1 %v2217_v44  ;;  %2263 = vmatpush1.msra.mxu0 %v2214_v63  ;;  %v3368_v44 = vld [vmem:[%s4833_s4 + $0x18] sm:$0xff]  ;;  %v2196_v63 = vsub.f32 %v2180_v62, %v2188_v40  ;;  %v2191_v8 = vsub.f32 %v4347_v45, %v2183_v42  ;;  %v2190_v2 = vsub.f32 %v2174_v59, %v2182_v46 }
 0x517   : > { %2340 = vmatpush1.msra.mxu1 %v2216_v32  ;;  %3369 = vmatmul.mubr.msk.f32.vlgmr.msra.gmra.mxu0 %vm337_vm0, %v3367_v35  ;;  %v2177_v32 = vmul.f32 %v3482_v13, %v4307_v29  ;;  %v2192_v22 = vsub.f32 %v2176_v3, %v2184_v60 }
 0x518   : > { %3371 = vmatmul.mubr.msk.f32.vlgmr.msra.gmra.mxu1 %vm337_vm0, %v3367_v35  ;;  %2302 = vmatprep.mubr.f32.mxu0 %v4409_v43  ;;  %v4444_v5 = vpop.permute.xlu0 %3437 }
 0x519   : > { %2379 = vmatprep.mubr.f32.mxu1 %v4409_v43  ;;  %2420 = vmatprep.subr.mxu0 %v2195_v49  ;;  %v2193_v20 = vsub.f32 %v2177_v32, %v2185_v48  ;;  %v4442_v31 = vpop.permute.xlu1 %2966  ;;  %v3439_v24 = vunpack.i.l.bf16 %v4444_v5 }
 0x51a   : > { %2497 = vmatprep.subr.mxu1 %v2197_v18  ;;  %2421 = vmatpush1.msra.mxu0 %v2194_v21 }
 0x51b   : > { %3370 = vmatmul.mubr.msk.f32.gmra.mxu0 %vm337_vm0, %v3368_v44  ;;  %2498 = vmatpush1.msra.mxu1 %v2196_v63 }
 0x51c   : > { %3372 = vmatmul.mubr.msk.f32.gmra.mxu1 %vm337_vm0, %v3368_v44  ;;  %2422 = vmatprep.subr.mxu0 %v2191_v8  ;;  %v4446_v28 = vpop.permute.xlu0 %1768 }
 0x51d   : > { %2499 = vmatprep.subr.mxu1 %v2193_v20  ;;  %2423 = vmatpush1.msra.mxu0 %v2190_v2  ;;  %v1574_v9 = vpop.permute.xlu1 %1573 }
 0x51e   : > { %2456 = vmatprep.mubr.f32.mxu0 %v4409_v43  ;;  %2500 = vmatpush1.msra.mxu1 %v2192_v22 }
 0x51f   : > { %2533 = vmatprep.mubr.f32.mxu1 %v4409_v43  ;;  %3373 = vmatmul.mubr.msk.f32.vlgmr.msra.gmra.mxu0 %vm337_vm0, %v2222_v38 }
 0x520   : > { %3375 = vmatmul.mubr.msk.f32.vlgmr.msra.gmra.mxu1 %vm337_vm0, %v2222_v38  ;;  %2462 = vmatprep.mubr.f32.mxu0 %v4409_v43 }
 0x521   : > { %2539 = vmatprep.mubr.f32.mxu1 %v4409_v43  ;;  %v4448_v53 = vpop.permute.xlu1 %3000 }
 0x523   : > { %3374 = vmatmul.mubr.msk.f32.gmra.mxu0 %vm337_vm0, %v2223_v55 }
 0x524   : > { %3376 = vmatmul.mubr.msk.f32.gmra.mxu1 %vm337_vm0, %v2223_v55  ;;  %2662 = vmatprep.mubr.f32.mxu0 %v4409_v43 }
 0x525   : > { %2793 = vmatprep.mubr.f32.mxu1 %v4409_v43 }
 0x545   : > { %v1431_v13 = vpop.permute.xlu0 %1430  ;;  %v1435_v26 = vpop.permute.xlu1 %1434 }
 0x546   : > { %v1447_v16 = vadd.f32 %v1435_v26, %v4235_v30  ;;  %v1437_v29 = vsel %vm1436_vm15, %v1429_v56, %v1431_v13 }
 0x547   : > { %v1444_v4 = vadd.f32 %v1437_v29, %v4225_v15 }
 0x549   : > { %v1463_v33 = vpop.permute.xlu0 %1462  ;;  %v1433_v6 = vpop.permute.xlu1 %1432 }
 0x54a   : > { %v1475_v7 = vadd.f32 %v1463_v33, %v1447_v16  ;;  %v1438_v54 = vsel %vm1436_vm15, %v1431_v13, %v1433_v6  ;;  %v1439_v47 = vsel %vm1436_vm15, %v1433_v6, %v1435_v26 }
 0x54b   : > { %v1445_v10 = vadd.f32 %v1438_v54, %v4233_v27  ;;  %v1446_v12 = vadd.f32 %v1439_v47, %v4227_v17 }
 0x54d   : > { %v1461_v14 = vpop.permute.xlu0 %1460  ;;  %v1459_v30 = vpop.permute.xlu1 %1458 }
 0x54e   : > { %v1467_v1 = vsel %vm1464_vm1, %v1461_v14, %v1463_v33  ;;  %v1465_v34 = vsel %vm1464_vm1, %v3439_v24, %v1459_v30  ;;  %v1466_v37 = vsel %vm1464_vm1, %v1459_v30, %v1461_v14 }
 0x54f   : > { %v1474_v50 = vadd.f32 %v1467_v1, %v1446_v12  ;;  %v1472_v51 = vadd.f32 %v1465_v34, %v1444_v4  ;;  %v1473_v52 = vadd.f32 %v1466_v37, %v1445_v10 }
 0x551   : > { %v1524_v57 = vpop.permute.xlu0 %1523  ;;  %v1526_v39 = vpop.permute.xlu1 %1525 }
 0x552   : > { %v1530_v45 = vsel %vm1529_vm14, %v1522_v58, %v1524_v57  ;;  %v1531_v15 = vsel %vm1529_vm14, %v1524_v57, %v1526_v39 }
 0x553   : > { %v1537_v27 = vadd.f32 %v1530_v45, %v1472_v51  ;;  %v1538_v11 = vadd.f32 %v1531_v15, %v1473_v52 }
 0x555   : > { %v1528_v17 = vpop.permute.xlu0 %1527  ;;  %v1578_v25 = vpop.permute.xlu1 %1577 }
 0x556   : > { %v1532_v61 = vsel %vm1529_vm14, %v1526_v39, %v1528_v17  ;;  %v1540_v35 = vadd.f32 %v1528_v17, %v1475_v7 }
 0x557   : > { %v1539_v23 = vadd.f32 %v1532_v61, %v1474_v50 }
 0x559   : > { %v1576_v40 = vpop.permute.xlu0 %1575  ;;  %v1624_v62 = vpop.permute.xlu1 %1623 }
 0x55a   : > { %v1584_v41 = vsel %vm1583_vm13, %v1574_v9, %v1576_v40  ;;  %v1585_v42 = vsel %vm1583_vm13, %v1576_v40, %v1578_v25 }
 0x55b   : > { %v1592_v46 = vadd.f32 %v1584_v41, %v1537_v27  ;;  %v1593_v48 = vadd.f32 %v1585_v42, %v1538_v11 }
 0x55d   : > { %v1580_v49 = vpop.permute.xlu0 %1579  ;;  %v1628_v60 = vpop.permute.xlu1 %1627 }
 0x55e   : > { %v1586_v21 = vsel %vm1583_vm13, %v1578_v25, %v1580_v49 }
 0x55f   : > { %v1594_v18 = vadd.f32 %v1586_v21, %v1539_v23 }
 0x561   : > { %v1582_v44 = vpop.permute.xlu0 %1581 }
 0x562   : > { %v1587_v59 = vsel %vm1583_vm13, %v1580_v49, %v1582_v44 }
 0x563   : > { %v1595_v32 = vadd.f32 %v1587_v59, %v1540_v35  ;;  %v1630_v63 = vpop.permute.xlu1 %1629  ;;  %v3490_v59 = vld [vmem:[%s3573_s30 + $0x60] sm:$0xff] }
 0x564   : > { %v1633_v3 = vsel %vm4917_vm12, %v1628_v60, %v1630_v63 }
 0x565   : > { %v1640_v8 = vadd.f32 %v1633_v3, %v1594_v18  ;;  %v1641_v2 = vadd.f32 %v1630_v63, %v1595_v32  ;;  %v1626_v20 = vpop.permute.xlu0 %1625  ;;  %v1976_v63 = vsel %vm1968_vm4, %v3490_v59, 0.0 }
 0x566   : > { %v1631_v22 = vsel %vm4917_vm12, %v1624_v62, %v1626_v20  ;;  %v1632_v38 = vsel %vm4917_vm12, %v1626_v20, %v1628_v60  ;;  %vm1704_vm12 = vcmask 883712   ;;  %v3489_v60 = vld [vmem:[%s3573_s30 + $0x68] sm:$0xff] }
 0x567   : > { %v1638_v55 = vadd.f32 %v1631_v22, %v1592_v46  ;;  %v1639_v56 = vadd.f32 %v1632_v38, %v1593_v48  ;;  %v1672_v9 = vpop.permute.xlu1 %1671  ;;  %v1977_v21 = vsel %vm1969_vm2, %v3489_v60, 0.0  ;;  %v3492_v22 = vld [vmem:[%s3573_s30 + $0x48] sm:$0xff]  ;;  %vm5050_vm2 = vcmask 1039360  }
 0x568   : > { %vm5054_vm4 = vmmov %vm5050_vm2 }
 0x569   : > { %v1670_v58 = vpop.permute.xlu0 %1669 }
 0x56a   : > { %v1677_v13 = vsel %vm1505_vm11, %v1670_v58, %v1672_v9 }
 0x56b   : > { %v1684_v26 = vadd.f32 %v1677_v13, %v1638_v55  ;;  %v1697_v47 = vpop.permute.xlu1 %1696  ;;  %v1973_v55 = vsel %vm1965_vm6, %v3492_v22, 0.0  ;;  %v5026_v22 = vld [vmem:[#allocation9_spill] sm:$0xff] }
 0x56d   : > { %v1674_v16 = vpop.permute.xlu0 %1673 }
 0x56e   : > { %v1678_v24 = vsel %vm1505_vm11, %v1672_v9, %v1674_v16  ;;  %v1978_v9 = vsel %vm1970_vm5, %v3493_v0, 0.0 }
 0x56f   : > { %v4473_v33 = vadd.f32 %v1678_v24, %v1639_v56  ;;  %v4484_v14 = vpop.permute.xlu1 %1700 }
 0x571   : > { %v1676_v6 = vpop.permute.xlu0 %1675 }
 0x572   : > { %v1679_v29 = vsel %vm1505_vm11, %v1674_v16, %v1676_v6  ;;  %v4476_v7 = vadd.f32 %v1676_v6, %v1641_v2 }
 0x573   : > { %v1686_v54 = vadd.f32 %v1679_v29, %v1640_v8  ;;  %v3491_v8 = vld [vmem:[%s3573_s30 + $0x78] sm:$0xff] }
 0x574   : > { %v1979_v20 = vsel %vm1971_vm3, %v3491_v8, 0.0  ;;  %v3495_v29 = vld [vmem:[%s3573_s30 + $0x58] sm:$0xff]  ;;  %vm5053_vm3 = vmmov %vm5050_vm2 }
 0x575   : > { %v4478_v4 = vpop.permute.xlu0 %1698 }
 0x576   : > { %v1705_v10 = vsel %vm1704_vm12, %v1697_v47, %v4478_v4  ;;  %v1975_v47 = vsel %vm1967_vm9, %v3495_v29, 0.0 }
 0x577   : > { %v4482_v12 = vadd.f32 %v1705_v10, %v1684_v26  ;;  %v3494_v26 = vld [vmem:[%s3573_s30 + $0x40] sm:$0xff] }
 0x578   : > { %v1972_v24 = vsel %vm1964_vm7, %v3494_v26, 0.0 }
 0x579   : > { %v4486_v30 = vpop.permute.xlu0 %1702 }
 0x57a   : > { %v1707_v1 = vsel %vm1704_vm12, %v4484_v14, %v4486_v30 }
 0x57b   : > { %v4491_v34 = vadd.f32 %v1707_v1, %v1686_v54 }
 0x5d7   : > { %v2298_v37 = vpop.f32.mrf.mxu0 }
 0x5d8   : > { %v2375_v50 = vpop.f32.mrf.mxu1 }
 0x5d9   : > { %v2300_v51 = vpop.f32.mrf.mxu0 }
 0x5da   : > { %v2377_v52 = vpop.f32.mrf.mxu1 }
 0x5db   : > { %v2304_v57 = vpop.f32.mrf.mxu0 }
 0x5dc   : > { %v2381_v39 = vpop.f32.mrf.mxu1 }
 0x5dd   : > { %v2306_v45 = vpop.f32.mrf.mxu0 }
 0x5de   : > { %v2383_v15 = vpop.f32.mrf.mxu1 }
 0x5df   : > { %v2458_v27 = vpop.f32.mrf.mxu0 }
 0x5e0   : > { %v2535_v11 = vpop.f32.mrf.mxu1  ;;  %v2459_v48 = vadd.f32 %v2458_v27, %v2298_v37  ;;  %v3496_v37 = vld [vmem:[%s3573_s30 + $0x50] sm:$0xff]  ;;  %v2557_v27 = vld [vmem:[%s4834_s5 + $0x18] sm:$0xff] }
 0x5e1   : > { %v2460_v17 = vpop.f32.mrf.mxu0  ;;  %v2536_v44 = vadd.f32 %v2535_v11, %v2375_v50  ;;  %v2558_v11 = vld [vmem:[%s4834_s5 + $0x20] sm:$0xff]  ;;  %v5029_v50 = vld [vmem:[#allocation15_spill] sm:$0xff] }
 0x5e2   : > { %v2537_v25 = vpop.f32.mrf.mxu1  ;;  %v2461_v62 = vadd.f32 %v2460_v17, %v2300_v51  ;;  %v2546_v1 = vadd.f32 %v2459_v48, %v1972_v24  ;;  %v1974_v51 = vsel %vm1966_vm8, %v3496_v37, 0.0  ;;  %v2559_v17 = vld [vmem:[%s4834_s5 + $0x28] sm:$0xff]  ;;  %v5027_v24 = vld [vmem:[#allocation18_spill] sm:$0xff] }
 0x5e3   : > { %v2464_v61 = vpop.f32.mrf.mxu0  ;;  %v2538_v49 = vadd.f32 %v2537_v25, %v2377_v52  ;;  %v2560_v25 = vld [vmem:[%s4834_s5 + $0x30] sm:$0xff] }
 0x5e4   : > { %v2541_v35 = vpop.f32.mrf.mxu1  ;;  %v2465_v23 = vadd.f32 %v2464_v61, %v2304_v57  ;;  %v2547_v6 = vadd.f32 %v2461_v62, %v1973_v55  ;;  %v2554_v57 = vld [vmem:[%s4834_s5] sm:$0xff]  ;;  %v2561_v61 = vld [vmem:[%s4834_s5 + $0x38] sm:$0xff] }
 0x5e5   : > { %v2466_v40 = vpop.f32.mrf.mxu0  ;;  %v2542_v41 = vadd.f32 %v2541_v35, %v2381_v39  ;;  %v2549_v52 = vadd.f32 %v2538_v49, %v1975_v47  ;;  %v2548_v39 = vadd.f32 %v2536_v44, %v1974_v51  ;;  %v2562_v35 = vld [vmem:[%s4834_s5 + $0x40] sm:$0xff]  ;;  %v5028_v47 = vld [vmem:[#allocation16_spill] sm:$0xff] }
 0x5e6   : > { %v2467_v42 = vadd.f32 %v2466_v40, %v2306_v45  ;;  %v2543_v46 = vpop.f32.mrf.mxu1  ;;  %v2550_v56 = vadd.f32 %v2465_v23, %v1976_v63  ;;  %v2555_v45 = vld [vmem:[%s4834_s5 + $0x8] sm:$0xff]  ;;  %v2564_v40 = vld [vmem:[%s4834_s5 + $0x50] sm:$0xff]  ;;  %v5024_v44 = vld [vmem:[#allocation26_spill] sm:$0xff] }
 0x5e7   : > { %v2544_v18 = vadd.f32 %v2543_v46, %v2383_v15  ;;  %v2552_v10 = vadd.f32 %v2542_v41, %v1978_v9  ;;  %v2556_v15 = vld [vmem:[%s4834_s5 + $0x10] sm:$0xff]  ;;  %v2563_v23 = vld [vmem:[%s4834_s5 + $0x48] sm:$0xff] }
 0x5e8   : > { %v2551_v3 = vadd.f32 %v2467_v42, %v1977_v21 }
 0x5e9   : > { %v2553_v13 = vadd.f32 %v2544_v18, %v1979_v20 }
 0x5ea   : > { %2626 = vmatprep.subr.mxu0 %v2551_v3  ;;  %v5025_v3 = vld [vmem:[#allocation27_spill] sm:$0xff] }
 0x5eb   : > { %2757 = vmatprep.subr.mxu1 %v2553_v13  ;;  %2627 = vmatpush1.msra.mxu0 %v2550_v56 }
 0x5ec   : > { %2758 = vmatpush1.msra.mxu1 %v2552_v10  ;;  %2628 = vmatprep.subr.mxu0 %v2547_v6 }
 0x5ed   : > { %2759 = vmatprep.subr.mxu1 %v2549_v52  ;;  %2629 = vmatpush1.msra.mxu0 %v2546_v1 }
 0x5ee   : > { %2760 = vmatpush1.msra.mxu1 %v2548_v39  ;;  %3377 = vmatmul.mubr.msk.f32.vlgmr.msra.gmra.mxu0 %vm337_vm0, %v2554_v57  ;;  %v5030_v39 = vld [vmem:[#allocation12_spill] sm:$0xff] }
 0x5ef   : > { %3388 = vmatmul.mubr.msk.f32.vlgmr.msra.gmra.mxu1 %vm337_vm0, %v2554_v57  ;;  %2668 = vmatprep.mubr.f32.mxu0 %v4409_v43 }
 0x5f0   : > { %2799 = vmatprep.mubr.f32.mxu1 %v4409_v43 }
 0x5f2   : > { %3378 = vmatmul.mubr.msk.f32.gmra.mxu0 %vm337_vm0, %v2555_v45 }
 0x5f3   : > { %3389 = vmatmul.mubr.msk.f32.gmra.mxu1 %vm337_vm0, %v2555_v45  ;;  %2674 = vmatprep.mubr.f32.mxu0 %v4409_v43 }
 0x5f4   : > { %2805 = vmatprep.mubr.f32.mxu1 %v4409_v43 }
 0x5f6   : > { %3379 = vmatmul.mubr.msk.f32.gmra.mxu0 %vm337_vm0, %v2556_v15 }
 0x5f7   : > { %3390 = vmatmul.mubr.msk.f32.gmra.mxu1 %vm337_vm0, %v2556_v15  ;;  %2680 = vmatprep.mubr.f32.mxu0 %v4409_v43 }
 0x5f8   : > { %2811 = vmatprep.mubr.f32.mxu1 %v4409_v43 }
 0x5fa   : > { %3380 = vmatmul.mubr.msk.f32.gmra.mxu0 %vm337_vm0, %v2557_v27 }
 0x5fb   : > { %3391 = vmatmul.mubr.msk.f32.gmra.mxu1 %vm337_vm0, %v2557_v27  ;;  %2686 = vmatprep.mubr.f32.mxu0 %v4409_v43 }
 0x5fc   : > { %2817 = vmatprep.mubr.f32.mxu1 %v4409_v43 }
 0x5fe   : > { %3381 = vmatmul.mubr.msk.f32.gmra.mxu0 %vm337_vm0, %v2558_v11 }
 0x5ff   : > { %3392 = vmatmul.mubr.msk.f32.gmra.mxu1 %vm337_vm0, %v2558_v11  ;;  %2692 = vmatprep.mubr.f32.mxu0 %v4409_v43  ;;  %v5031_v11 = vld [vmem:[#allocation13_spill] sm:$0xff] }
 0x600   : > { %2823 = vmatprep.mubr.f32.mxu1 %v4409_v43 }
 0x602   : > { %3382 = vmatmul.mubr.msk.f32.gmra.mxu0 %vm337_vm0, %v2559_v17 }
 0x603   : > { %3393 = vmatmul.mubr.msk.f32.gmra.mxu1 %vm337_vm0, %v2559_v17  ;;  %2698 = vmatprep.mubr.f32.mxu0 %v4409_v43 }
 0x604   : > { %2829 = vmatprep.mubr.f32.mxu1 %v4409_v43 }
 0x606   : > { %3383 = vmatmul.mubr.msk.f32.gmra.mxu0 %vm337_vm0, %v2560_v25 }
 0x607   : > { %3394 = vmatmul.mubr.msk.f32.gmra.mxu1 %vm337_vm0, %v2560_v25  ;;  %2704 = vmatprep.mubr.f32.mxu0 %v4409_v43 }
 0x608   : > { %2835 = vmatprep.mubr.f32.mxu1 %v4409_v43 }
 0x60a   : > { %3384 = vmatmul.mubr.msk.f32.gmra.mxu0 %vm337_vm0, %v2561_v61 }
 0x60b   : > { %3395 = vmatmul.mubr.msk.f32.gmra.mxu1 %vm337_vm0, %v2561_v61  ;;  %2710 = vmatprep.mubr.f32.mxu0 %v4409_v43 }
 0x60c   : > { %2841 = vmatprep.mubr.f32.mxu1 %v4409_v43 }
 0x60e   : > { %3385 = vmatmul.mubr.msk.f32.gmra.mxu0 %vm337_vm0, %v2562_v35 }
 0x60f   : > { %3396 = vmatmul.mubr.msk.f32.gmra.mxu1 %vm337_vm0, %v2562_v35  ;;  %2716 = vmatprep.mubr.f32.mxu0 %v4409_v43  ;;  %v5032_v35 = vld [vmem:[#allocation14_spill] sm:$0xff] }
 0x610   : > { %2847 = vmatprep.mubr.f32.mxu1 %v4409_v43 }
 0x612   : > { %3386 = vmatmul.mubr.msk.f32.gmra.mxu0 %vm337_vm0, %v2563_v23 }
 0x613   : > { %3397 = vmatmul.mubr.msk.f32.gmra.mxu1 %vm337_vm0, %v2563_v23  ;;  %2722 = vmatprep.mubr.f32.mxu0 %v4409_v43 }
 0x614   : > { %2853 = vmatprep.mubr.f32.mxu1 %v4409_v43 }
 0x616   : > { %3387 = vmatmul.mubr.msk.f32.gmra.mxu0 %vm337_vm0, %v2564_v40 }
 0x617   : > { %3398 = vmatmul.mubr.msk.f32.gmra.mxu1 %vm337_vm0, %v2564_v40 }
 0x6ae   : > { %v4592_v62 = vpop.f32.mrf.mxu0 }
 0x6af   : > { %v4594_v41 = vpop.f32.mrf.mxu1 }
 0x6b0   : > { %v4596_v42 = vpop.f32.mrf.mxu0 }
 0x6b1   : > { %v4598_v46 = vpop.f32.mrf.mxu1 }
 0x6b2   : > { %v4600_v48 = vpop.f32.mrf.mxu0 }
 0x6b3   : > { %v4602_v49 = vpop.f32.mrf.mxu1 }
 0x6b4   : > { %v4604_v60 = vpop.f32.mrf.mxu0 }
 0x6b5   : > { %v4606_v21 = vpop.f32.mrf.mxu1 }
 0x6b6   : > { %v2676_v43 = vpop.f32.mrf.mxu0 }
 0x6b7   : > { %v2807_v18 = vpop.f32.mrf.mxu1  ;;  %v2901_v59 = vmul.f32 %v2676_v43, %v5024_v44  ;;  %v5033_v44 = vld [vmem:[#allocation17_spill] sm:$0xff] }
 0x6b8   : > { %v2678_v32 = vpop.f32.mrf.mxu0  ;;  %v2903_v38 = vmul.f32 %v2807_v18, %v5026_v22  ;;  %v5035_v22 = vld [vmem:[#allocation30_spill] sm:$0xff] }
 0x6b9   : > { %v2809_v63 = vpop.f32.mrf.mxu1  ;;  %2910 = vrot.lane.b32.xlu1 %v2901_v59, %s3513_s15  ;;  %v2902_v8 = vmul.f32 %v2678_v32, %v5025_v3  ;;  %v5034_v3 = vld [vmem:[#allocation19_spill] sm:$0xff] }
 0x6ba   : > { %v2682_v2 = vpop.f32.mrf.mxu0 }
 0x6bb   : > { %v2813_v20 = vpop.f32.mrf.mxu1  ;;  %2912 = vrot.lane.b32.xlu0 %v2902_v8, %s3513_s15 }
 0x6bc   : > { %v2684_v55 = vpop.f32.mrf.mxu0 }
 0x6bd   : > { %v2815_v56 = vpop.f32.mrf.mxu1  ;;  %2914 = vrot.lane.b32.xlu1 %v2903_v38, %s3513_s15 }
 0x6be   : > { %v2688_v0 = vpop.f32.mrf.mxu0 }
 0x6bf   : > { %v2819_v58 = vpop.f32.mrf.mxu1  ;;  %2937 = vrot.lane.b32.xlu0 %v2682_v2, %s3514_s28  ;;  %v2959_v10 = vmul.f32 %v2688_v0, %v5028_v47  ;;  %v5036_v0 = vld [vmem:[#allocation28_spill] sm:$0xff]  ;;  %v5038_v47 = vld [vmem:[#allocation31_spill] sm:$0xff] }
 0x6c0   : > { %v2690_v9 = vpop.f32.mrf.mxu0  ;;  %v2961_v45 = vmul.f32 %v2819_v58, %v5030_v39  ;;  %v5040_v39 = vld [vmem:[#allocation33_spill] sm:$0xff] }
 0x6c1   : > { %v2821_v13 = vpop.f32.mrf.mxu1  ;;  %2939 = vrot.lane.b32.xlu1 %v2684_v55, %s3514_s28  ;;  %v2960_v6 = vmul.f32 %v2690_v9, %v5027_v24 }
 0x6c2   : > { %v2694_v26 = vpop.f32.mrf.mxu0 }
 0x6c3   : > { %v2825_v16 = vpop.f32.mrf.mxu1  ;;  %2941 = vrot.lane.b32.xlu0 %v2813_v20, %s3514_s28  ;;  %v2991_v23 = vmul.f32 %v2694_v26, %v5032_v35  ;;  %v5043_v35 = vld [vmem:[#allocation37_spill] sm:$0xff] }
 0x6c4   : > { %v2696_v29 = vpop.f32.mrf.mxu0  ;;  %v2993_v51 = vmul.f32 %v2825_v16, %v5029_v50  ;;  %v5037_v16 = vld [vmem:[#allocation29_spill] sm:$0xff]  ;;  %v5039_v50 = vld [vmem:[#allocation34_spill] sm:$0xff] }
 0x6c5   : > { %v2827_v54 = vpop.f32.mrf.mxu1  ;;  %2970 = vrot.lane.b32.xlu1 %v2960_v6, %s3512_s14  ;;  %v2992_v17 = vmul.f32 %v2696_v29, %v5031_v11  ;;  %v1719_v29 = vld [vmem:[#allocation2 + $0x160] sm:$0xff] }
 0x6c6   : > { %2875 = vst.msk [vmem:[#allocation2 + $0x98] sm:$0xff] %vm337_vm0, %v2827_v54  ;;  %v4621_v1 = vpop.f32.mrf.mxu0 }
 0x6c7   : > { %v4623_v37 = vpop.f32.mrf.mxu1  ;;  %2968 = vrot.lane.b32.xlu0 %v2959_v10, %s3512_s14 }
 0x6c8   : > { %v4627_v52 = vpop.f32.mrf.mxu0 }
 0x6c9   : > { %v4629_v57 = vpop.f32.mrf.mxu1  ;;  %3006 = vrot.lane.b32.xlu1 %v2993_v51, %s3507_s12 }
 0x6ca   : > { %v2706_v15 = vpop.f32.mrf.mxu0 }
 0x6cb   : > { %v2837_v27 = vpop.f32.mrf.mxu1  ;;  %2972 = vrot.lane.b32.xlu0 %v2961_v45, %s3512_s14  ;;  %v3026_v8 = vmul.f32 %v2706_v15, %v5034_v3  ;;  %v5046_v3 = vld [vmem:[#allocation24_spill] sm:$0xff] }
 0x6cc   : > { %v2708_v25 = vpop.f32.mrf.mxu0  ;;  %v3028_v58 = vmul.f32 %v2837_v27, %v5036_v0  ;;  %v5041_v27 = vld [vmem:[#allocation36_spill] sm:$0xff] }
 0x6cd   : > { %v2839_v61 = vpop.f32.mrf.mxu1  ;;  %3004 = vrot.lane.b32.xlu1 %v2992_v17, %s3507_s12  ;;  %v2989_v40 = vld [vmem:[#allocation2 + $0x98] sm:$0xff]  ;;  %v3027_v38 = vmul.f32 %v2708_v25, %v5035_v22  ;;  %v5042_v25 = vld [vmem:[#allocation39_spill] sm:$0xff] }
 0x6ce   : > { %2883 = vst.msk [vmem:[#allocation2 + $0xe8] sm:$0xff] %vm337_vm0, %v2839_v61  ;;  %v2712_v43 = vpop.f32.mrf.mxu0  ;;  %v2994_v59 = vmul.f32 %v2989_v40, %v5033_v44  ;;  %v5044_v40 = vld [vmem:[#allocation35_spill] sm:$0xff]  ;;  %v5045_v44 = vld [vmem:[#allocation38_spill] sm:$0xff] }
 0x6cf   : > { %v2843_v18 = vpop.f32.mrf.mxu1  ;;  %3002 = vrot.lane.b32.xlu0 %v2991_v23, %s3507_s12  ;;  %v3057_v24 = vmul.f32 %v2712_v43, %v5037_v16  ;;  %v1730_v23 = vsel %vm1436_vm15, %v5043_v35, %v4438_v19  ;;  %v5049_v22 = vld [vmem:[#allocation7_spill] sm:$0xff]  ;;  %v3440_v35 = vunpack.i.h.bf16 %v4444_v5 }
 0x6d0   : > { %v2714_v32 = vpop.f32.mrf.mxu0  ;;  %v3059_v51 = vmul.f32 %v2843_v18, %v5039_v50  ;;  %v1738_v18 = vmul.f32 %v1730_v23, %v1719_v29 }
 0x6d1   : > { %v2845_v63 = vpop.f32.mrf.mxu1  ;;  %3008 = vrot.lane.b32.xlu1 %v2994_v59, %s3507_s12  ;;  %v3058_v45 = vmul.f32 %v2714_v32, %v5040_v39 }
 0x6d2   : > { %2887 = vst.msk [vmem:[#allocation2 + $0x110] sm:$0xff] %vm337_vm0, %v2845_v63  ;;  %v2718_v2 = vpop.f32.mrf.mxu0 }
 0x6d3   : > { %v2849_v20 = vpop.f32.mrf.mxu1  ;;  %3034 = vrot.lane.b32.xlu0 %v3026_v8, %s3511_s13  ;;  %v5047_v8 = vld [vmem:[#allocation25_spill] sm:$0xff] }
 0x6d4   : > { %v2720_v55 = vpop.f32.mrf.mxu0  ;;  %v1782_v19 = vadd.f32 %v5047_v8, %v5046_v3 }
 0x6d5   : > { %v2851_v56 = vpop.f32.mrf.mxu1  ;;  %3036 = vrot.lane.b32.xlu1 %v3027_v38, %s3511_s13  ;;  %v3025_v13 = vld [vmem:[#allocation2 + $0xe8] sm:$0xff]  ;;  %v1784_v38 = vsel %vm337_vm0, %v5049_v22, 0.0 }
 0x6d6   : > { %2891 = vst.msk [vmem:[#allocation2 + $0x138] sm:$0xff] %vm337_vm0, %v2851_v56  ;;  %v2724_v9 = vpop.f32.mrf.mxu0  ;;  %v3029_v10 = vmul.f32 %v3025_v13, %v5038_v47  ;;  %v1744_v56 = vpop.permute.xlu1 %1743 }
 0x6d7   : > { %v2855_v26 = vpop.f32.mrf.mxu1  ;;  %3038 = vrot.lane.b32.xlu0 %v3028_v58, %s3511_s13  ;;  %v3115_v43 = vmul.f32 %v2724_v9, %v5044_v40  ;;  %v1746_v58 = vpop.permute.xlu0 %1745  ;;  %v1706_v40 = vsel %vm1704_vm12, %v4478_v4, %v4484_v14 }
 0x6d8   : > { %v2726_v6 = vpop.f32.mrf.mxu0  ;;  %v3117_v59 = vmul.f32 %v2855_v26, %v5045_v44 }
 0x6d9   : > { %v2857_v54 = vpop.f32.mrf.mxu1  ;;  %3065 = vrot.lane.b32.xlu1 %v3057_v24, %s3510_s11  ;;  %v3056_v15 = vld [vmem:[#allocation2 + $0x110] sm:$0xff]  ;;  %v3116_v61 = vmul.f32 %v2726_v6, %v5042_v25 }
 0x6da   : > { %2895 = vst.msk [vmem:[#allocation2 + $0x160] sm:$0xff] %vm337_vm0, %v2857_v54  ;;  %v3060_v11 = vmul.f32 %v3056_v15, %v5041_v27  ;;  %v4680_v0 = vpop.permute.xlu1 %1747 }
 0x6db   : > { %3040 = vrot.lane.b32.xlu0 %v3029_v10, %s3511_s13 }
 0x6dd   : > { %3069 = vrot.lane.b32.xlu1 %v3059_v51, %s3510_s11  ;;  %v3087_v17 = vld [vmem:[#allocation2 + $0x138] sm:$0xff] }
 0x6df   : > { %3067 = vrot.lane.b32.xlu0 %v3058_v45, %s3510_s11 }
 0x6e1   : > { %3092 = vrot.lane.b32.xlu1 %v2718_v2, %s3516_s10  ;;  %v3114_v32 = vld [vmem:[#allocation2 + $0x160] sm:$0xff] }
 0x6e2   : > { %v3118_v63 = vmul.f32 %v3114_v32, %v1730_v23  ;;  %v5048_v2 = vld [vmem:[#allocation10_spill] sm:$0xff]  ;;  %v1752_v32 = vsel %vm1412_vm10, %v1746_v58, %v4680_v0 }
 0x6e3   : > { %3071 = vrot.lane.b32.xlu0 %v3060_v11, %s3510_s11  ;;  %s4788_s11 = scalar_lea.vmem %s4836_s7, %s3409_s27 }
 0x6e5   : > { %3096 = vrot.lane.b32.xlu1 %v2849_v20, %s3516_s10  ;;  %v1783_v20 = vadd.f32 %v1782_v19, %v5048_v2  ;;  %v1713_v19 = vadd.f32 %v1706_v40, %v4473_v33 }
 0x6e7   : > { %3094 = vrot.lane.b32.xlu0 %v2720_v55, %s3516_s10  ;;  %v1785_v55 = vadd.f32 %v1784_v38, %v1783_v20 }
 0x6e9   : > { %3098 = vrot.lane.b32.xlu1 %v3087_v17, %s3516_s10 }
 0x6eb   : > { %3125 = vrot.lane.b32.xlu0 %v3116_v61, %s3509_s8 }
 0x6ed   : > { %3123 = vrot.lane.b32.xlu1 %v3115_v43, %s3509_s8 }
 0x6ef   : > { %1749 = vrot.lane.b32.xlu0 %v1738_v18, %s3509_s8  ;;  %v1751_v18 = vsel %vm1412_vm10, %v1744_v56, %v1746_v58 }
 0x6f0   : > { %v1758_v14 = vadd.f32 %v1751_v18, %v4482_v12  ;;  %v5051_v18 = vld [vmem:[#allocation22_spill] sm:$0xff] }
 0x6f1   : > { %3127 = vrot.lane.b32.xlu1 %v3117_v59, %s3509_s8 }
 0x6f5   : > { %3129 = vrot.lane.b32.xlu1 %v3118_v63, %s3509_s8 }
 0x719   : > { %1786 = vadd.xlane.f32.xlu1 %v1785_v55 }
 0x72b   : > { %v2911_v9 = vpop.permute.xlu1 %2910 }
 0x72c   : > { %v2916_v23 = vsel %vm1436_vm15, %v4440_v36, %v2911_v9 }
 0x72d   : > { %v2913_v13 = vpop.permute.xlu0 %2912  ;;  %v2923_v63 = vadd.f32 %v2916_v23, %v4621_v1 }
 0x72e   : > { %v2917_v44 = vsel %vm1436_vm15, %v2911_v9, %v2913_v13  ;;  %v1759_v9 = vadd.f32 %v1752_v32, %v1713_v19 }
 0x72f   : > { %v2915_v26 = vpop.permute.xlu1 %2914  ;;  %v2924_v38 = vadd.f32 %v2917_v44, %v4627_v52 }
 0x730   : > { %v2918_v36 = vsel %vm1436_vm15, %v2913_v13, %v2915_v26 }
 0x731   : > { %v2938_v16 = vpop.permute.xlu0 %2937  ;;  %v2925_v13 = vadd.f32 %v2918_v36, %v4623_v37 }
 0x732   : > { %v2943_v59 = vsel %vm1464_vm1, %v3440_v35, %v2938_v16 }
 0x733   : > { %v2940_v24 = vpop.permute.xlu1 %2939  ;;  %v2950_v55 = vadd.f32 %v2943_v59, %v2923_v63 }
 0x734   : > { %v2944_v20 = vsel %vm1464_vm1, %v2938_v16, %v2940_v24 }
 0x735   : > { %v2942_v6 = vpop.permute.xlu0 %2941  ;;  %v2951_v16 = vadd.f32 %v2944_v20, %v2924_v38 }
 0x736   : > { %v2945_v58 = vsel %vm1464_vm1, %v2940_v24, %v2942_v6  ;;  %v1762_v24 = vadd.f32 %v1758_v14, %v5051_v18  ;;  %v5055_v18 = vld [vmem:[#allocation8_spill] sm:$0xff] }
 0x737   : > { %v2971_v29 = vpop.permute.xlu1 %2970  ;;  %v2952_v44 = vadd.f32 %v2945_v58, %v2925_v13 }
 0x739   : > { %v2969_v54 = vpop.permute.xlu0 %2968 }
 0x73a   : > { %v2974_v4 = vsel %vm1529_vm14, %v4442_v31, %v2969_v54  ;;  %v2975_v1 = vsel %vm1529_vm14, %v2969_v54, %v2971_v29  ;;  %v2926_v31 = vadd.f32 %v2915_v26, %v4629_v57 }
 0x73b   : > { %v3007_v47 = vpop.permute.xlu1 %3006  ;;  %v2981_v35 = vadd.f32 %v2974_v4, %v2950_v55  ;;  %v2982_v54 = vadd.f32 %v2975_v1, %v2951_v16 }
 0x73c   : > { %v2953_v37 = vadd.f32 %v2942_v6, %v2926_v31  ;;  %v1715_v6 = vadd.f32 %v4486_v30, %v4476_v7 }
 0x73d   : > { %v2973_v10 = vpop.permute.xlu0 %2972 }
 0x73e   : > { %v2976_v12 = vsel %vm1529_vm14, %v2971_v29, %v2973_v10 }
 0x73f   : > { %v3005_v50 = vpop.permute.xlu1 %3004  ;;  %v2983_v57 = vadd.f32 %v2976_v12, %v2952_v44 }
 0x740   : > { %v3012_v4 = vsel %vm1583_vm13, %v3005_v50, %v3007_v47 }
 0x741   : > { %v3003_v51 = vpop.permute.xlu0 %3002 }
 0x742   : > { %v3010_v33 = vsel %vm1583_vm13, %v4448_v53, %v3003_v51  ;;  %v3011_v52 = vsel %vm1583_vm13, %v3003_v51, %v3005_v50  ;;  %v5052_v53 = vld [vmem:[#allocation23_spill] sm:$0xff] }
 0x743   : > { %v3009_v39 = vpop.permute.xlu1 %3008  ;;  %v3018_v59 = vadd.f32 %v3010_v33, %v2981_v35  ;;  %v1763_v63 = vadd.f32 %v1759_v9, %v5052_v53  ;;  %v3019_v26 = vadd.f32 %v3011_v52, %v2982_v54  ;;  %v5056_v54 = vld [vmem:[#allocation5_spill] sm:$0xff] }
 0x744   : > { %v3013_v29 = vsel %vm1583_vm13, %v3007_v47, %v3009_v39 }
 0x745   : > { %v3035_v45 = vpop.permute.xlu0 %3034 }
 0x747   : > { %v3037_v15 = vpop.permute.xlu1 %3036 }
 0x748   : > { %v3042_v40 = vsel %vm5050_vm2, %v3035_v45, %v3037_v15  ;;  %v2984_v45 = vadd.f32 %v2973_v10, %v2953_v37 }
 0x749   : > { %v3039_v27 = vpop.permute.xlu0 %3038  ;;  %v3049_v51 = vadd.f32 %v3042_v40, %v3018_v59 }
 0x74a   : > { %v3043_v19 = vsel %vm5053_vm3, %v3037_v15, %v3039_v27  ;;  %v4726_v15 = vadd.f32 %v4446_v28, %v1762_v24  ;;  %v3021_v39 = vadd.f32 %v3013_v29, %v2984_v45 }
 0x74b   : > { %v3066_v11 = vpop.permute.xlu1 %3065 }
 0x74d   : > { %v4682_v17 = vpop.permute.xlu0 %3040 }
 0x74e   : > { %v3044_v10 = vsel %vm5054_vm4, %v3039_v27, %v4682_v17  ;;  %v3052_v1 = vadd.f32 %v4682_v17, %v3021_v39 }
 0x74f   : > { %v4684_v25 = vpop.permute.xlu1 %3069 }
 0x751   : > { %v3068_v61 = vpop.permute.xlu0 %3067 }
 0x752   : > { %v3073_v36 = vsel %vm1505_vm11, %v3066_v11, %v3068_v61  ;;  %v3074_v14 = vsel %vm1505_vm11, %v3068_v61, %v4684_v25  ;;  %v3050_v11 = vadd.f32 %v3043_v19, %v3019_v26  ;;  %v4733_v61 = vadd.f32 %v4446_v28, %v1763_v63 }
 0x753   : > { %v3093_v43 = vpop.permute.xlu1 %3092  ;;  %v3080_v55 = vadd.f32 %v3073_v36, %v3049_v51 }
 0x754   : > { %v3081_v58 = vadd.f32 %v3074_v14, %v3050_v11  ;;  %v1775_v63 = vadd.f32 %v4733_v61, %v4726_v15  ;;  %v3157_v14 = vadd.f32 %v4604_v60, %v4600_v48 }
 0x755   : > { %v3072_v5 = vpop.permute.xlu0 %3071 }
 0x756   : > { %v3075_v33 = vsel %vm1505_vm11, %v4684_v25, %v3072_v5  ;;  %v3083_v52 = vadd.f32 %v3072_v5, %v3052_v1 }
 0x757   : > { %v3097_v56 = vpop.permute.xlu1 %3096 }
 0x759   : > { %v3095_v23 = vpop.permute.xlu0 %3094 }
 0x75a   : > { %v3100_v38 = vsel %vm1704_vm12, %v3093_v43, %v3095_v23  ;;  %v3101_v47 = vsel %vm1704_vm12, %v3095_v23, %v3097_v56  ;;  %v3020_v43 = vadd.f32 %v3012_v4, %v2983_v57 }
 0x75b   : > { %v3099_v32 = vpop.permute.xlu1 %3098  ;;  %v3107_v7 = vadd.f32 %v3100_v38, %v3080_v55  ;;  %v3108_v35 = vadd.f32 %v3101_v47, %v3081_v58 }
 0x75c   : > { %v3051_v16 = vadd.f32 %v3044_v10, %v3020_v43  ;;  %v3102_v40 = vsel %vm1704_vm12, %v3097_v56, %v3099_v32  ;;  %v3110_v53 = vadd.f32 %v3099_v32, %v3083_v52 }
 0x75d   : > { %v3126_v20 = vpop.permute.xlu0 %3125 }
 0x75e   : > { %v3082_v44 = vadd.f32 %v3075_v33, %v3051_v16 }
 0x75f   : > { %v3124_v9 = vpop.permute.xlu1 %3123 }
 0x760   : > { %v3131_v50 = vsel %vm1412_vm10, %v3124_v9, %v3126_v20  ;;  %v3159_v9 = vsel %vm337_vm0, %v4606_v21, 0.0 }
 0x761   : > { %v1750_v30 = vpop.permute.xlu0 %1749  ;;  %v3138_v23 = vadd.f32 %v3131_v50, %v3107_v7 }
 0x762   : > { %v1753_v13 = vsel %vm1412_vm10, %v4680_v0, %v1750_v30  ;;  %v1761_v27 = vadd.f32 %v1750_v30, %v1715_v6 }
 0x763   : > { %v1760_v31 = vadd.f32 %v1753_v13, %v4491_v34  ;;  %v3128_v12 = vpop.permute.xlu1 %3127  ;;  %v3109_v34 = vadd.f32 %v3102_v40, %v3082_v44  ;;  %v3142_v5 = vadd.f32 %v3138_v23, %v4592_v62 }
 0x764   : > { %v1765_v24 = vadd.f32 %v1761_v27, %v5055_v18  ;;  %v3132_v17 = vsel %vm1412_vm10, %v3126_v20, %v3128_v12 }
 0x765   : > { %v1764_v25 = vadd.f32 %v1760_v31, %v5056_v54  ;;  %v3139_v59 = vadd.f32 %v3132_v17, %v3108_v35  ;;  %v4764_v20 = vadd.f32 %v3142_v5, %v4446_v28 }
 0x766   : > { %v4746_v0 = vadd.f32 %v4446_v28, %v1765_v24 }
 0x767   : > { %v4752_v56 = vadd.f32 %v4446_v28, %v1764_v25  ;;  %v3143_v37 = vadd.f32 %v3139_v59, %v4596_v42  ;;  %v3130_v19 = vpop.permute.xlu1 %3129 }
 0x768   : > { %v3133_v36 = vsel %vm1412_vm10, %v3128_v12, %v3130_v19  ;;  %v3141_v57 = vadd.f32 %v3130_v19, %v3110_v53  ;;  %v1777_v62 = vsel %vm337_vm0, %v4746_v0, 0.0 }
 0x769   : > { %v4757_v32 = vadd.f32 %v3143_v37, %v4446_v28  ;;  %v3140_v26 = vadd.f32 %v3133_v36, %v3109_v34  ;;  %v1776_v29 = vadd.f32 %v1775_v63, %v4752_v56 }
 0x76a   : > { %v3145_v51 = vadd.f32 %v3141_v57, %v4598_v46 }
 0x76b   : > { %v3144_v42 = vadd.f32 %v3140_v26, %v4594_v41  ;;  %v1778_v45 = vadd.f32 %v1777_v62, %v1776_v29  ;;  %v3150_v46 = vadd.f32 %v4757_v32, %v4764_v20  ;;  %v3158_v41 = vadd.f32 %v3157_v14, %v4602_v49 }
 0x76c   : > { %v4768_v4 = vadd.f32 %v3145_v51, %v4446_v28 }
 0x76d   : > { %v4773_v38 = vadd.f32 %v3144_v42, %v4446_v28  ;;  %1779 = vadd.xlane.f32.xlu0 %v1778_v45  ;;  %v3160_v39 = vadd.f32 %v3159_v9, %v3158_v41 }
 0x76e   : > { %v3152_v11 = vsel %vm337_vm0, %v4768_v4, 0.0 }
 0x76f   : > { %v3151_v6 = vadd.f32 %v3150_v46, %v4773_v38 }
 0x771   : > { %v3153_v55 = vadd.f32 %v3152_v11, %v3151_v6 }
 0x773   : > { %3154 = vadd.xlane.f32.xlu0 %v3153_v55 }
 0x777   : > { %3161 = vadd.xlane.f32.xlu0 %v3160_v39 }
 0x7a2   : > { %v1787_v28 = vpop.xlane.xlu1 %1786 }
 0x7a3   : > { %v1788_v10 = vmul.f32 0.0025, %v1787_v28 }
 0x7a5   : > { %v1795_v47 = vrot.slane %v1788_v10, 4 }
 0x7a7   : > { %v1796_v50 = vmax.f32 %v1788_v10, %v1795_v47 }
 0x7a9   : > { %v1797_v58 = vrot.slane %v1796_v50, 2 }
 0x7ab   : > { %v1798_v1 = vmax.f32 %v1796_v50, %v1797_v58 }
 0x7ad   : > { %v1799_v35 = vrot.slane %v1798_v1, 1 }
 0x7af   : > { %v1800_v24 = vmax.f32 %v1798_v1, %v1799_v35 }
 0x7f6   : > { %v1780_v43 = vpop.xlane.xlu0 %1779 }
 0x7f7   : > { %v1781_v7 = vmul.f32 0.0025, %v1780_v43 }
 0x7f9   : > { %v1789_v30 = vrot.slane %v1781_v7, 4 }
 0x7fb   : > { %v1790_v33 = vmax.f32 %v1781_v7, %v1789_v30 }
 0x7fc   : > { %v3155_v13 = vpop.xlane.xlu0 %3154 }
 0x7fd   : > { %v1791_v27 = vrot.slane %v1790_v33, 2  ;;  %v3156_v16 = vmul.f32 0.0025, %v3155_v13 }
 0x7ff   : > { %v1792_v23 = vmax.f32 %v1790_v33, %v1791_v27  ;;  %v3164_v31 = vrot.slane %v3156_v16, 4 }
 0x800   : > { %v3162_v12 = vpop.xlane.xlu0 %3161 }
 0x801   : > { %v1793_v52 = vrot.slane %v1792_v23, 1  ;;  %v3165_v40 = vmax.f32 %v3156_v16, %v3164_v31  ;;  %v3163_v18 = vmul.f32 0.0025, %v3162_v12 }
 0x803   : > { %v1794_v17 = vmax.f32 %v1792_v23, %v1793_v52  ;;  %v3166_v44 = vrot.slane %v3165_v40, 2  ;;  %v3170_v54 = vrot.slane %v3163_v18, 4 }
 0x805   : > { %v1801_v25 = vmax.f32 %v1794_v17, %v1800_v24  ;;  %v3167_v59 = vmax.f32 %v3165_v40, %v3166_v44  ;;  %v3171_v53 = vmax.f32 %v3163_v18, %v3170_v54 }
 0x807   : > { %v1802_v63 = vsub.f32 %v1781_v7, %v1801_v25  ;;  %v1805_v34 = vsub.f32 %v1788_v10, %v1801_v25  ;;  %v3172_v5 = vrot.slane %v3171_v53, 2  ;;  %v3168_v36 = vrot.slane %v3167_v59, 1 }
 0x809   : > { %v1803_v37 = vmul.f32 1.442695, %v1802_v63  ;;  %v1806_v19 = vmul.f32 1.442695, %v1805_v34  ;;  %v3173_v57 = vmax.f32 %v3171_v53, %v3172_v5  ;;  %v3169_v29 = vmax.f32 %v3167_v59, %v3168_v36 }
 0x80b   : > { %3459 = vpow2.f32 %v1803_v37  ;;  %v3174_v26 = vrot.slane %v3173_v57, 1 }
 0x80c   : > { %3461 = vpow2.f32 %v1806_v19 }
 0x80d   : > { %v3175_v51 = vmax.f32 %v3173_v57, %v3174_v26 }
 0x80f   : > { %v3176_v62 = vmax.f32 %v3169_v29, %v3175_v51 }
 0x811   : > { %v3177_v42 = vsub.f32 %v3156_v16, %v3176_v62  ;;  %v3180_v45 = vsub.f32 %v3163_v18, %v3176_v62 }
 0x813   : > { %v3178_v14 = vmul.f32 1.442695, %v3177_v42  ;;  %v3181_v46 = vmul.f32 1.442695, %v3180_v45 }
 0x815   : > { %3463 = vpow2.f32 %v3178_v14 }
 0x816   : > { %3465 = vpow2.f32 %v3181_v46 }
 0x818   : > { %v3460_v6 = vpop.eup %3459 }
 0x819   : > { %v3462_v11 = vpop.eup %3461  ;;  %v1808_v41 = vrot.slane %v3460_v6, 4 }
 0x81a   : > { %v1814_v55 = vrot.slane %v3462_v11, 4 }
 0x81b   : > { %v1809_v9 = vadd.f32 %v3460_v6, %v1808_v41 }
 0x81c   : > { %v1815_v39 = vadd.f32 %v3462_v11, %v1814_v55 }
 0x81d   : > { %v1810_v28 = vrot.slane %v1809_v9, 2 }
 0x81e   : > { %v1816_v10 = vrot.slane %v1815_v39, 2 }
 0x81f   : > { %v1811_v47 = vadd.f32 %v1810_v28, %v1809_v9 }
 0x820   : > { %v1817_v50 = vadd.f32 %v1816_v10, %v1815_v39 }
 0x821   : > { %v1812_v43 = vrot.slane %v1811_v47, 1 }
 0x822   : > { %v3464_v58 = vpop.eup %3463  ;;  %v1818_v7 = vrot.slane %v1817_v50, 1 }
 0x823   : > { %v3466_v30 = vpop.eup %3465  ;;  %v1813_v1 = vadd.f32 %v1812_v43, %v1811_v47  ;;  %v3183_v33 = vrot.slane %v3464_v58, 4 }
 0x824   : > { %v1819_v13 = vadd.f32 %v1818_v7, %v1817_v50  ;;  %v3189_v27 = vrot.slane %v3466_v30, 4 }
 0x825   : > { %v3184_v16 = vadd.f32 %v3464_v58, %v3183_v33 }
 0x826   : > { %v1820_v35 = vadd.f32 %v1819_v13, %v1813_v1  ;;  %v3190_v23 = vadd.f32 %v3466_v30, %v3189_v27 }
 0x827   : > { %v3185_v31 = vrot.slane %v3184_v16, 2 }
 0x828   : > { %3467 = vrcp.f32 %v1820_v35  ;;  %v3191_v12 = vrot.slane %v3190_v23, 2 }
 0x829   : > { %v3186_v52 = vadd.f32 %v3185_v31, %v3184_v16 }
 0x82a   : > { %v3192_v40 = vadd.f32 %v3191_v12, %v3190_v23 }
 0x82b   : > { %v3187_v18 = vrot.slane %v3186_v52, 1 }
 0x82c   : > { %v3193_v24 = vrot.slane %v3192_v40, 1 }
 0x82d   : > { %v3188_v17 = vadd.f32 %v3187_v18, %v3186_v52 }
 0x82e   : > { %v3194_v44 = vadd.f32 %v3193_v24, %v3192_v40 }
 0x830   : > { %v3195_v54 = vadd.f32 %v3194_v44, %v3188_v17 }
 0x832   : > { %3469 = vrcp.f32 %v3195_v54 }
 0x835   : > { %v3468_v25 = vpop.eup %3467 }
 0x836   : > { %v1823_v59 = vmul.f32 %v3468_v25, %v3460_v6  ;;  %v1832_v53 = vmul.f32 %v3468_v25, %v3462_v11 }
 0x838   : > { %v1824_v63 = vmul.f32 %v1823_v59, %v4726_v15  ;;  %v1825_v34 = vmul.f32 %v1823_v59, %v4733_v61  ;;  %v1826_v5 = vmul.f32 %v1823_v59, %v4752_v56  ;;  %v1827_v37 = vmul.f32 %v1823_v59, %v4746_v0 }
 0x839   : > { %v1833_v19 = vmul.f32 %v1832_v53, %v5046_v3  ;;  %v1834_v36 = vmul.f32 %v1832_v53, %v5047_v8  ;;  %v1835_v57 = vmul.f32 %v1832_v53, %v5048_v2  ;;  %v1836_v26 = vmul.f32 %v1832_v53, %v5049_v22 }
 0x83a   : > { %1828 = vst [vmem:[%s4788_s11] sm:$0xff] %v1824_v63  ;;  %1829 = vst [vmem:[%s4788_s11 + $0x8] sm:$0xff] %v1825_v34 }
 0x83b   : > { %1830 = vst [vmem:[%s4788_s11 + $0x10] sm:$0xff] %v1826_v5  ;;  %1831 = vst.msk [vmem:[%s4788_s11 + $0x18] sm:$0xff] %vm337_vm0, %v1827_v37 }
 0x83c   : > { %1840 = vst.msk [vmem:[%s4788_s11 + $0x38] sm:$0xff] %vm337_vm0, %v1836_v26  ;;  %1837 = vst [vmem:[%s4788_s11 + $0x20] sm:$0xff] %v1833_v19 }
 0x83d   : > { %1838 = vst [vmem:[%s4788_s11 + $0x28] sm:$0xff] %v1834_v36  ;;  %1839 = vst [vmem:[%s4788_s11 + $0x30] sm:$0xff] %v1835_v57 }
 0x83f   : > { %v3470_v3 = vpop.eup %3469 }
 0x840   : > { %v3198_v8 = vmul.f32 %v3470_v3, %v3464_v58  ;;  %v3208_v2 = vmul.f32 %v3470_v3, %v3466_v30 }
 0x842   : > { %v3199_v22 = vmul.f32 %v3198_v8, %v4764_v20  ;;  %v3200_v15 = vmul.f32 %v3198_v8, %v4757_v32  ;;  %v3201_v61 = vmul.f32 %v3198_v8, %v4773_v38  ;;  %v3202_v0 = vmul.f32 %v3198_v8, %v4768_v4 }
 0x843   : > { %v3209_v56 = vmul.f32 %v3208_v2, %v4600_v48  ;;  %v3210_v29 = vmul.f32 %v3208_v2, %v4604_v60  ;;  %v3211_v51 = vmul.f32 %v3208_v2, %v4602_v49  ;;  %v3212_v62 = vmul.f32 %v3208_v2, %v4606_v21 }
 0x844   : > { %3399 = vst [vmem:[%s4788_s11 + $0x40] sm:$0xff] %v3199_v22  ;;  %3400 = vst [vmem:[%s4788_s11 + $0x48] sm:$0xff] %v3200_v15 }
 0x845   : > { %3401 = vst [vmem:[%s4788_s11 + $0x50] sm:$0xff] %v3201_v61  ;;  %3402 = vst.msk [vmem:[%s4788_s11 + $0x58] sm:$0xff] %vm337_vm0, %v3202_v0 }
 0x846   : > { %3403 = vst [vmem:[%s4788_s11 + $0x60] sm:$0xff] %v3209_v56  ;;  %3404 = vst [vmem:[%s4788_s11 + $0x68] sm:$0xff] %v3210_v29 }
 0x847   : > { %3405 = vst [vmem:[%s4788_s11 + $0x70] sm:$0xff] %v3211_v51  ;;  %3406 = vst.msk [vmem:[%s4788_s11 + $0x78] sm:$0xff] %vm337_vm0, %v3212_v62 }
 0x848 PF: > { %s17_s24 = sadd.s32 1, %s3503_s24  }
 0x849   : > { %p14_p4 = scmp.ge.s32.totalorder %s17_s24, 4  }
 0x84b   :  { %16 = sbr.rel (!%p14_p4) target bundleno = 1 (0x1), region = 83 }

</bundles_post_ra>
